<compile_context>
chip_gen: v5e
topology: v5e:2x2
jax: 0.10.0
libtpu: 0.0.40
codegen_flags: <defaults>
</compile_context>

<pallas_src>
import jax
import jax.numpy as jnp
from jax.experimental import pallas as pl
from jax.experimental.pallas import tpu as pltpu

# ---------------- small BART-like config ----------------
VOCAB = 128          # synthetic vocab (stands in for resized BART vocab)
D_MODEL = 64
N_HEADS = 2
HEAD_DIM = D_MODEL // N_HEADS
FFN = 128
MAX_POS = 32         # positional table (includes the BART +2 offset)
N_ENC_LAYERS = 1
N_DEC_LAYERS = 1
PAD_ID = 1
DECODER_START_ID = 2  # BART decoder_start_token_id (eos)
IGNORE_INDEX = -100
LN_EPS = 1e-5
NEG_INF = -1e9


# ---------------- in-kernel helpers (traced inside Pallas kernels) ----------------
def _mm(x, w):
    """bf16-operand MXU matmul with f32 accumulation."""
    return jnp.dot(x.astype(jnp.bfloat16), w.astype(jnp.bfloat16),
                   preferred_element_type=jnp.float32)


def _mm_t(x, w):
    """x @ w.T without materializing the transpose (MXU consumes the transposed operand)."""
    return jax.lax.dot_general(
        x.astype(jnp.bfloat16), w.astype(jnp.bfloat16),
        (((1,), (1,)), ((), ())), preferred_element_type=jnp.float32)


def _ln(x, g, b):
    mu = jnp.mean(x, axis=-1, keepdims=True)
    var = jnp.mean((x - mu) ** 2, axis=-1, keepdims=True)
    return (x - mu) * jax.lax.rsqrt(var + LN_EPS) * g + b


def _gelu(x):
    # TODO(synk): BART uses exact (erf) GELU; tanh-approx GELU used here for robust TPU lowering.
    return jax.nn.gelu(x, approximate=True)


def _mha_proj(q_all, k_all, v_all, add_mask, o_w, o_b):
    """Multi-head attention with the output projection folded in.

    q_all: [Tq, D], k_all/v_all: [Tk, D] with heads packed along the lane axis.
    Returns concat_h(softmax(q_h k_h^T / sqrt(hd)) v_h) @ o_w + o_b computed as a
    per-head sum (avoids lane-concat / head transposes entirely)."""
    scale = 1.0 / (HEAD_DIM ** 0.5)
    acc = None
    for h in range(N_HEADS):            # static unroll over heads
        lo = h * HEAD_DIM
        q = q_all[:, lo:lo + HEAD_DIM] * scale   # BART scales q by head_dim ** -0.5
        k = k_all[:, lo:lo + HEAD_DIM]
        v = v_all[:, lo:lo + HEAD_DIM]
        s = _mm_t(q, k) + add_mask
        s = s - jnp.max(s, axis=-1, keepdims=True)
        p = jnp.exp(s)
        p = p * pl.reciprocal(jnp.sum(p, axis=-1, keepdims=True), approx=True)
        o_h = _mm(p, v)                                  # [Tq, HEAD_DIM]
        proj_h = _mm(o_h, o_w[lo:lo + HEAD_DIM, :])      # [Tq, D]
        acc = proj_h if acc is None else acc + proj_h
    return acc + o_b


# ---------------- Pallas kernels ----------------
def _ln_kernel(x_ref, g_ref, b_ref, o_ref):
    o_ref[...] = _ln(x_ref[...], g_ref[...], b_ref[...])


def _enc_layer_kernel(x_ref, mask_ref,
                      qkv_w_ref, qkv_b_ref, ow_ref, ob_ref, sag_ref, sab_ref,
                      fc1w_ref, fc1b_ref, fc2w_ref, fc2b_ref, fg_ref, fb_ref,
                      o_ref):
    x = x_ref[0]          # [T, D]
    mask = mask_ref[0]    # [T, T] additive key mask
    # fused QKV projection + self-attention + output projection
    qkv = _mm(x, qkv_w_ref[...]) + qkv_b_ref[...]
    attn = _mha_proj(qkv[:, :D_MODEL], qkv[:, D_MODEL:2 * D_MODEL],
                     qkv[:, 2 * D_MODEL:], mask, ow_ref[...], ob_ref[...])
    x1 = _ln(x + attn, sag_ref[...], sab_ref[...])        # residual fused into LN
    # FFN
    h = _gelu(_mm(x1, fc1w_ref[...]) + fc1b_ref[...])
    ffn = _mm(h, fc2w_ref[...]) + fc2b_ref[...]
    o_ref[0] = _ln(x1 + ffn, fg_ref[...], fb_ref[...])


def _dec_layer_kernel(y_ref, enc_ref, causal_ref, cross_ref,
                      s_qkv_w_ref, s_qkv_b_ref, s_ow_ref, s_ob_ref,
                      sag_ref, sab_ref,
                      c_qw_ref, c_qb_ref, c_kvw_ref, c_kvb_ref, c_ow_ref, c_ob_ref,
                      cag_ref, cab_ref,
                      fc1w_ref, fc1b_ref, fc2w_ref, fc2b_ref, fg_ref, fb_ref,
                      o_ref):
    y = y_ref[0]            # [Td, D]
    enc = enc_ref[0]        # [T, D]
    causal = causal_ref[0]  # [Td, Td]
    cross = cross_ref[0]    # [Td, T]

    # causal self-attention (fused QKV + output projection)
    qkv = _mm(y, s_qkv_w_ref[...]) + s_qkv_b_ref[...]
    attn = _mha_proj(qkv[:, :D_MODEL], qkv[:, D_MODEL:2 * D_MODEL],
                     qkv[:, 2 * D_MODEL:], causal, s_ow_ref[...], s_ob_ref[...])
    y1 = _ln(y + attn, sag_ref[...], sab_ref[...])

    # cross-attention over encoder states (fused KV projection)
    q = _mm(y1, c_qw_ref[...]) + c_qb_ref[...]
    kv = _mm(enc, c_kvw_ref[...]) + c_kvb_ref[...]
    cattn = _mha_proj(q, kv[:, :D_MODEL], kv[:, D_MODEL:], cross,
                      c_ow_ref[...], c_ob_ref[...])
    y2 = _ln(y1 + cattn, cag_ref[...], cab_ref[...])

    # FFN
    h = _gelu(_mm(y2, fc1w_ref[...]) + fc1b_ref[...])
    ffn = _mm(h, fc2w_ref[...]) + fc2b_ref[...]
    o_ref[0] = _ln(y2 + ffn, fg_ref[...], fb_ref[...])


def _lm_head_ce_kernel(y_ref, emb_ref, bias_ref, lab_ref, logits_ref, nll_ref):
    # Tied LM head: logits = y @ shared^T + final_logits_bias (transpose consumed by MXU).
    logits = _mm_t(y_ref[...], emb_ref[...]) + bias_ref[...]   # [N, V] f32
    logits_ref[...] = logits
    lab = lab_ref[...]                                         # [N, 1] int32
    m = jnp.max(logits, axis=-1, keepdims=True)
    lse = jnp.log(jnp.sum(jnp.exp(logits - m), axis=-1, keepdims=True)) + m
    hit = jax.lax.broadcasted_iota(jnp.int32, logits.shape, 1) == lab
    tgt = jnp.sum(jnp.where(hit, logits, 0.0), axis=-1, keepdims=True)
    valid = (lab != IGNORE_INDEX).astype(jnp.float32)          # CrossEntropyLoss ignore_index
    nll_ref[...] = (lse - tgt) * valid


# ---------------- Pallas wrappers ----------------
def embed_layer_norm(x, g, b):
    n, d = x.shape
    return pl.pallas_call(
        _ln_kernel,
        out_shape=jax.ShapeDtypeStruct((n, d), jnp.float32),
        grid=(1,),
        in_specs=[pl.BlockSpec((n, d), lambda i: (0, 0)),
                  pl.BlockSpec((1, d), lambda i: (0, 0)),
                  pl.BlockSpec((1, d), lambda i: (0, 0))],
        out_specs=pl.BlockSpec((n, d), lambda i: (0, 0)),
    )(x, g, b)


def encoder_layer(p, x, enc_mask):
    bsz, t, d = x.shape
    sa = p['self_attn']
    wspec = lambda shape: pl.BlockSpec(shape, lambda b: (0, 0))   # weight resident, not re-indexed
    return pl.pallas_call(
        _enc_layer_kernel,
        out_shape=jax.ShapeDtypeStruct((bsz, t, d), jnp.float32),
        grid=(bsz,),
        in_specs=[pl.BlockSpec((1, t, d), lambda b: (b, 0, 0)),
                  pl.BlockSpec((1, t, t), lambda b: (b, 0, 0)),
                  wspec((d, 3 * d)), wspec((1, 3 * d)),
                  wspec((d, d)), wspec((1, d)),
                  wspec((1, d)), wspec((1, d)),
                  wspec((d, FFN)), wspec((1, FFN)),
                  wspec((FFN, d)), wspec((1, d)),
                  wspec((1, d)), wspec((1, d))],
        out_specs=pl.BlockSpec((1, t, d), lambda b: (b, 0, 0)),
        compiler_params=pltpu.CompilerParams(dimension_semantics=("parallel",)),
    )(x, enc_mask,
      sa['qkv_w'], sa['qkv_b'], sa['o_w'], sa['o_b'],
      p['sa_ln_g'], p['sa_ln_b'],
      p['fc1_w'], p['fc1_b'], p['fc2_w'], p['fc2_b'],
      p['f_ln_g'], p['f_ln_b'])


def decoder_layer(p, y, enc_out, causal_mask, cross_mask):
    bsz, td, d = y.shape
    t = enc_out.shape[1]
    sa = p['self_attn']
    ca = p['cross_attn']
    wspec = lambda shape: pl.BlockSpec(shape, lambda b: (0, 0))
    return pl.pallas_call(
        _dec_layer_kernel,
        out_shape=jax.ShapeDtypeStruct((bsz, td, d), jnp.float32),
        grid=(bsz,),
        in_specs=[pl.BlockSpec((1, td, d), lambda b: (b, 0, 0)),
                  pl.BlockSpec((1, t, d), lambda b: (b, 0, 0)),
                  pl.BlockSpec((1, td, td), lambda b: (b, 0, 0)),
                  pl.BlockSpec((1, td, t), lambda b: (b, 0, 0)),
                  wspec((d, 3 * d)), wspec((1, 3 * d)),
                  wspec((d, d)), wspec((1, d)),
                  wspec((1, d)), wspec((1, d)),
                  wspec((d, d)), wspec((1, d)),
                  wspec((d, 2 * d)), wspec((1, 2 * d)),
                  wspec((d, d)), wspec((1, d)),
                  wspec((1, d)), wspec((1, d)),
                  wspec((d, FFN)), wspec((1, FFN)),
                  wspec((FFN, d)), wspec((1, d)),
                  wspec((1, d)), wspec((1, d))],
        out_specs=pl.BlockSpec((1, td, d), lambda b: (b, 0, 0)),
        compiler_params=pltpu.CompilerParams(dimension_semantics=("parallel",)),
    )(y, enc_out, causal_mask, cross_mask,
      sa['qkv_w'], sa['qkv_b'], sa['o_w'], sa['o_b'],
      p['sa_ln_g'], p['sa_ln_b'],
      ca['q_w'], ca['q_b'], ca['kv_w'], ca['kv_b'], ca['o_w'], ca['o_b'],
      p['ca_ln_g'], p['ca_ln_b'],
      p['fc1_w'], p['fc1_b'], p['fc2_w'], p['fc2_b'],
      p['f_ln_g'], p['f_ln_b'])


def lm_head_and_nll(y, shared, bias, labels):
    # TODO(synk): tile the row and vocab axes with proper BlockSpecs (reduction axis
    # 'arbitrary') before scaling to real BART vocab (~50k) so logits/weight tiles fit
    # v7x's 64 MiB VMEM; at VOCAB=128 the whole block trivially fits.
    n, d = y.shape
    v = shared.shape[0]
    logits, nll = pl.pallas_call(
        _lm_head_ce_kernel,
        out_shape=(jax.ShapeDtypeStruct((n, v), jnp.float32),
                   jax.ShapeDtypeStruct((n, 1), jnp.float32)),
        grid=(1,),
        in_specs=[pl.BlockSpec((n, d), lambda i: (0, 0)),
                  pl.BlockSpec((v, d), lambda i: (0, 0)),
                  pl.BlockSpec((1, v), lambda i: (0, 0)),
                  pl.BlockSpec((n, 1), lambda i: (0, 0))],
        out_specs=(pl.BlockSpec((n, v), lambda i: (0, 0)),
                   pl.BlockSpec((n, 1), lambda i: (0, 0))),
    )(y, shared, bias, labels.reshape(n, 1).astype(jnp.int32))
    return logits, nll


# ---------------- model glue (plain JAX around the fused kernels) ----------------
def shift_tokens_right(labels, pad_id, start_id):
    shifted = jnp.roll(labels, 1, axis=-1)
    shifted = shifted.at[:, 0].set(start_id)
    shifted = jnp.where(shifted == IGNORE_INDEX, pad_id, shifted)
    return shifted


def rag_verifier_forward(params, input_ids, attention_mask, labels):
    """Mirrors BartForConditionalGeneration.forward(input_ids, attention_mask, labels)."""
    bsz, t = input_ids.shape
    td = labels.shape[1]
    shared = params['shared']

    # ---- Encoder ----
    pos = jnp.arange(t)
    x = (jnp.take(shared, input_ids, axis=0) +
         jnp.take(params['enc_pos'], pos + 2, axis=0)[None])        # BART +2 pos offset
    x = embed_layer_norm(x.reshape(bsz * t, D_MODEL),
                         params['enc_ln_emb_g'], params['enc_ln_emb_b']
                         ).reshape(bsz, t, D_MODEL)
    key_mask = (1.0 - attention_mask.astype(jnp.float32)) * NEG_INF  # [B, T]
    enc_mask = jnp.broadcast_to(key_mask[:, None, :], (bsz, t, t))
    for lp in params['encoder_layers']:
        x = encoder_layer(lp, x, enc_mask)
    enc_out = x

    # ---- Decoder ----
    dec_ids = shift_tokens_right(labels, PAD_ID, DECODER_START_ID)
    dpos = jnp.arange(td)
    y = (jnp.take(shared, dec_ids, axis=0) +
         jnp.take(params['dec_pos'], dpos + 2, axis=0)[None])
    y = embed_layer_norm(y.reshape(bsz * td, D_MODEL),
                         params['dec_ln_emb_g'], params['dec_ln_emb_b']
                         ).reshape(bsz, td, D_MODEL)
    causal = jnp.where(jnp.arange(td)[:, None] >= jnp.arange(td)[None, :],
                       0.0, NEG_INF).astype(jnp.float32)
    causal = jnp.broadcast_to(causal[None], (bsz, td, td))
    cross = jnp.broadcast_to(key_mask[:, None, :], (bsz, td, t))
    for lp in params['decoder_layers']:
        y = decoder_layer(lp, y, enc_out, causal, cross)

    # ---- LM head (tied to shared embeddings) + ignore_index-aware CE ----
    logits, nll = lm_head_and_nll(y.reshape(bsz * td, D_MODEL), shared,
                                  params['final_logits_bias'],
                                  labels.reshape(bsz * td))
    valid = (labels.reshape(-1) != IGNORE_INDEX).astype(jnp.float32)
    loss = jnp.sum(nll) / jnp.maximum(jnp.sum(valid), 1.0)
    return loss, logits.reshape(bsz, td, VOCAB)


# ---------------- deterministic parameter init (QKV / KV pre-fused) ----------------
def _init_self_attn(key):
    ks = jax.random.split(key, 2)
    return {'qkv_w': jax.random.normal(ks[0], (D_MODEL, 3 * D_MODEL), jnp.float32) * 0.02,
            'qkv_b': jnp.zeros((1, 3 * D_MODEL), jnp.float32),
            'o_w': jax.random.normal(ks[1], (D_MODEL, D_MODEL), jnp.float32) * 0.02,
            'o_b': jnp.zeros((1, D_MODEL), jnp.float32)}


def _init_cross_attn(key):
    ks = jax.random.split(key, 3)
    return {'q_w': jax.random.normal(ks[0], (D_MODEL, D_MODEL), jnp.float32) * 0.02,
            'q_b': jnp.zeros((1, D_MODEL), jnp.float32),
            'kv_w': jax.random.normal(ks[1], (D_MODEL, 2 * D_MODEL), jnp.float32) * 0.02,
            'kv_b': jnp.zeros((1, 2 * D_MODEL), jnp.float32),
            'o_w': jax.random.normal(ks[2], (D_MODEL, D_MODEL), jnp.float32) * 0.02,
            'o_b': jnp.zeros((1, D_MODEL), jnp.float32)}


def _init_enc_layer(key):
    ks = jax.random.split(key, 3)
    return {'self_attn': _init_self_attn(ks[0]),
            'sa_ln_g': jnp.ones((1, D_MODEL), jnp.float32),
            'sa_ln_b': jnp.zeros((1, D_MODEL), jnp.float32),
            'fc1_w': jax.random.normal(ks[1], (D_MODEL, FFN), jnp.float32) * 0.02,
            'fc1_b': jnp.zeros((1, FFN), jnp.float32),
            'fc2_w': jax.random.normal(ks[2], (FFN, D_MODEL), jnp.float32) * 0.02,
            'fc2_b': jnp.zeros((1, D_MODEL), jnp.float32),
            'f_ln_g': jnp.ones((1, D_MODEL), jnp.float32),
            'f_ln_b': jnp.zeros((1, D_MODEL), jnp.float32)}


def _init_dec_layer(key):
    ks = jax.random.split(key, 2)
    p = _init_enc_layer(ks[0])
    p['cross_attn'] = _init_cross_attn(ks[1])
    p['ca_ln_g'] = jnp.ones((1, D_MODEL), jnp.float32)
    p['ca_ln_b'] = jnp.zeros((1, D_MODEL), jnp.float32)
    return p


def init_params(key):
    ks = jax.random.split(key, 3 + N_ENC_LAYERS + N_DEC_LAYERS)
    return {
        'shared': jax.random.normal(ks[0], (VOCAB, D_MODEL), jnp.float32) * 0.02,
        'enc_pos': jax.random.normal(ks[1], (MAX_POS, D_MODEL), jnp.float32) * 0.02,
        'dec_pos': jax.random.normal(ks[2], (MAX_POS, D_MODEL), jnp.float32) * 0.02,
        'enc_ln_emb_g': jnp.ones((1, D_MODEL), jnp.float32),
        'enc_ln_emb_b': jnp.zeros((1, D_MODEL), jnp.float32),
        'dec_ln_emb_g': jnp.ones((1, D_MODEL), jnp.float32),
        'dec_ln_emb_b': jnp.zeros((1, D_MODEL), jnp.float32),
        'final_logits_bias': jnp.zeros((1, VOCAB), jnp.float32),
        'encoder_layers': [_init_enc_layer(ks[3 + i]) for i in range(N_ENC_LAYERS)],
        'decoder_layers': [_init_dec_layer(ks[3 + N_ENC_LAYERS + i])
                           for i in range(N_DEC_LAYERS)],
    }


if __name__ == "__main__":
    key = jax.random.PRNGKey(0)
    pkey, ikey, lkey = jax.random.split(key, 3)
    params = init_params(pkey)

    B, T, TD = 2, 8, 2
    input_ids = jax.random.randint(ikey, (B, T), 3, VOCAB, dtype=jnp.int32)
    attention_mask = jnp.ones((B, T), jnp.int32).at[1, -2:].set(0)
    labels = jax.random.randint(lkey, (B, TD), 3, VOCAB, dtype=jnp.int32)

    loss, logits = jax.jit(rag_verifier_forward)(params, input_ids, attention_mask, labels)
    jax.block_until_ready((loss, logits))
    assert logits.shape == (B, TD, VOCAB)
    assert bool(jnp.isfinite(loss))
    print("KERNEL_OK")
</pallas_src>

<mosaic_0001>
module attributes {stable_mosaic.version = 11 : i64} {
  func.func @_ln_kernel(%arg0: i32, %arg1: memref<4x64xf32, #tpu.memory_space<vmem>>, %arg2: memref<1x64xf32, #tpu.memory_space<vmem>>, %arg3: memref<1x64xf32, #tpu.memory_space<vmem>>, %arg4: memref<4x64xf32, #tpu.memory_space<vmem>>) attributes {dimension_semantics = [#tpu.dimension_semantics<arbitrary>], iteration_bounds = array<i64: 1>, scalar_prefetch = 0 : i64, scratch_operands = 0 : i64, tpu.core_type = #tpu.core_type<tc>, window_params = [{pipeline_mode = #tpu.pipeline_mode<synchronous>, transform_indices = @transform_0, window_bounds = array<i64: 4, 64>}, {pipeline_mode = #tpu.pipeline_mode<synchronous>, transform_indices = @transform_1, window_bounds = array<i64: 1, 64>}, {pipeline_mode = #tpu.pipeline_mode<synchronous>, transform_indices = @transform_2, window_bounds = array<i64: 1, 64>}, {pipeline_mode = #tpu.pipeline_mode<synchronous>, transform_indices = @transform_3, window_bounds = array<i64: 4, 64>}]} {
    %c0 = arith.constant 0 : index
    %c0_0 = arith.constant 0 : index
    %0 = vector.load %arg1[%c0, %c0_0] : memref<4x64xf32, #tpu.memory_space<vmem>>, vector<4x64xf32>
    %c0_1 = arith.constant 0 : index
    %c0_2 = arith.constant 0 : index
    %1 = vector.load %arg2[%c0_1, %c0_2] : memref<1x64xf32, #tpu.memory_space<vmem>>, vector<1x64xf32>
    %c0_3 = arith.constant 0 : index
    %c0_4 = arith.constant 0 : index
    %2 = vector.load %arg3[%c0_3, %c0_4] : memref<1x64xf32, #tpu.memory_space<vmem>>, vector<1x64xf32>
    %cst = arith.constant dense<0.000000e+00> : vector<4xf32>
    %3 = vector.multi_reduction <add>, %0, %cst [1] : vector<4x64xf32> to vector<4xf32>
    %4 = vector.shape_cast %3 : vector<4xf32> to vector<4x1xf32>
    %cst_5 = arith.constant 6.400000e+01 : f32
    %5 = vector.broadcast %cst_5 : f32 to vector<4x1xf32>
    %6 = arith.divf %4, %5 : vector<4x1xf32>
    %7 = vector.broadcast %6 : vector<4x1xf32> to vector<4x64xf32>
    %8 = arith.subf %0, %7 : vector<4x64xf32>
    %9 = arith.mulf %8, %8 : vector<4x64xf32>
    %cst_6 = arith.constant dense<0.000000e+00> : vector<4xf32>
    %10 = vector.multi_reduction <add>, %9, %cst_6 [1] : vector<4x64xf32> to vector<4xf32>
    %11 = vector.shape_cast %10 : vector<4xf32> to vector<4x1xf32>
    %cst_7 = arith.constant 6.400000e+01 : f32
    %12 = vector.broadcast %cst_7 : f32 to vector<4x1xf32>
    %13 = arith.divf %11, %12 : vector<4x1xf32>
    %14 = vector.broadcast %6 : vector<4x1xf32> to vector<4x64xf32>
    %15 = arith.subf %0, %14 : vector<4x64xf32>
    %cst_8 = arith.constant 9.99999974E-6 : f32
    %16 = vector.broadcast %cst_8 : f32 to vector<4x1xf32>
    %17 = arith.addf %13, %16 : vector<4x1xf32>
    %18 = math.rsqrt %17 : vector<4x1xf32>
    %19 = vector.broadcast %18 : vector<4x1xf32> to vector<4x64xf32>
    %20 = arith.mulf %15, %19 : vector<4x64xf32>
    %21 = vector.broadcast %1 : vector<1x64xf32> to vector<4x64xf32>
    %22 = arith.mulf %20, %21 : vector<4x64xf32>
    %23 = vector.broadcast %2 : vector<1x64xf32> to vector<4x64xf32>
    %24 = arith.addf %22, %23 : vector<4x64xf32>
    %c0_9 = arith.constant 0 : index
    %c0_10 = arith.constant 0 : index
    %25 = vector.load %arg4[%c0_9, %c0_10] : memref<4x64xf32, #tpu.memory_space<vmem>>, vector<4x64xf32>
    tpu.vector_store %arg4[%c0_9, %c0_10], %24 {strides = array<i32>} : memref<4x64xf32, #tpu.memory_space<vmem>>, vector<4x64xf32>,
    return
  }
  func.func @transform_0(%arg0: i32) -> (i32, i32) {
    %c0_i32 = arith.constant 0 : i32
    %c0_i32_0 = arith.constant 0 : i32
    %c0_i32_1 = arith.constant 0 : i32
    return %c0_i32, %c0_i32_0 : i32, i32
  }
  func.func @transform_1(%arg0: i32) -> (i32, i32) {
    %c0_i32 = arith.constant 0 : i32
    %c0_i32_0 = arith.constant 0 : i32
    %c0_i32_1 = arith.constant 0 : i32
    return %c0_i32, %c0_i32_0 : i32, i32
  }
  func.func @transform_2(%arg0: i32) -> (i32, i32) {
    %c0_i32 = arith.constant 0 : i32
    %c0_i32_0 = arith.constant 0 : i32
    %c0_i32_1 = arith.constant 0 : i32
    return %c0_i32, %c0_i32_0 : i32, i32
  }
  func.func @transform_3(%arg0: i32) -> (i32, i32) {
    %c0_i32 = arith.constant 0 : i32
    %c0_i32_0 = arith.constant 0 : i32
    %c0_i32_1 = arith.constant 0 : i32
    return %c0_i32, %c0_i32_0 : i32, i32
  }
}

module attributes {stable_mosaic.version = 11 : i64} {
  func.func @_ln_kernel(%arg0: i32, %arg1: memref<16x64xf32, #tpu.memory_space<vmem>>, %arg2: memref<1x64xf32, #tpu.memory_space<vmem>>, %arg3: memref<1x64xf32, #tpu.memory_space<vmem>>, %arg4: memref<16x64xf32, #tpu.memory_space<vmem>>) attributes {dimension_semantics = [#tpu.dimension_semantics<arbitrary>], iteration_bounds = array<i64: 1>, scalar_prefetch = 0 : i64, scratch_operands = 0 : i64, tpu.core_type = #tpu.core_type<tc>, window_params = [{pipeline_mode = #tpu.pipeline_mode<synchronous>, transform_indices = @transform_0, window_bounds = array<i64: 16, 64>}, {pipeline_mode = #tpu.pipeline_mode<synchronous>, transform_indices = @transform_1, window_bounds = array<i64: 1, 64>}, {pipeline_mode = #tpu.pipeline_mode<synchronous>, transform_indices = @transform_2, window_bounds = array<i64: 1, 64>}, {pipeline_mode = #tpu.pipeline_mode<synchronous>, transform_indices = @transform_3, window_bounds = array<i64: 16, 64>}]} {
    %c0 = arith.constant 0 : index
    %c0_0 = arith.constant 0 : index
    %0 = vector.load %arg1[%c0, %c0_0] : memref<16x64xf32, #tpu.memory_space<vmem>>, vector<16x64xf32>
    %c0_1 = arith.constant 0 : index
    %c0_2 = arith.constant 0 : index
    %1 = vector.load %arg2[%c0_1, %c0_2] : memref<1x64xf32, #tpu.memory_space<vmem>>, vector<1x64xf32>
    %c0_3 = arith.constant 0 : index
    %c0_4 = arith.constant 0 : index
    %2 = vector.load %arg3[%c0_3, %c0_4] : memref<1x64xf32, #tpu.memory_space<vmem>>, vector<1x64xf32>
    %cst = arith.constant dense<0.000000e+00> : vector<16xf32>
    %3 = vector.multi_reduction <add>, %0, %cst [1] : vector<16x64xf32> to vector<16xf32>
    %4 = vector.shape_cast %3 : vector<16xf32> to vector<16x1xf32>
    %cst_5 = arith.constant 6.400000e+01 : f32
    %5 = vector.broadcast %cst_5 : f32 to vector<16x1xf32>
    %6 = arith.divf %4, %5 : vector<16x1xf32>
    %7 = vector.broadcast %6 : vector<16x1xf32> to vector<16x64xf32>
    %8 = arith.subf %0, %7 : vector<16x64xf32>
    %9 = arith.mulf %8, %8 : vector<16x64xf32>
    %cst_6 = arith.constant dense<0.000000e+00> : vector<16xf32>
    %10 = vector.multi_reduction <add>, %9, %cst_6 [1] : vector<16x64xf32> to vector<16xf32>
    %11 = vector.shape_cast %10 : vector<16xf32> to vector<16x1xf32>
    %cst_7 = arith.constant 6.400000e+01 : f32
    %12 = vector.broadcast %cst_7 : f32 to vector<16x1xf32>
    %13 = arith.divf %11, %12 : vector<16x1xf32>
    %14 = vector.broadcast %6 : vector<16x1xf32> to vector<16x64xf32>
    %15 = arith.subf %0, %14 : vector<16x64xf32>
    %cst_8 = arith.constant 9.99999974E-6 : f32
    %16 = vector.broadcast %cst_8 : f32 to vector<16x1xf32>
    %17 = arith.addf %13, %16 : vector<16x1xf32>
    %18 = math.rsqrt %17 : vector<16x1xf32>
    %19 = vector.broadcast %18 : vector<16x1xf32> to vector<16x64xf32>
    %20 = arith.mulf %15, %19 : vector<16x64xf32>
    %21 = vector.broadcast %1 : vector<1x64xf32> to vector<16x64xf32>
    %22 = arith.mulf %20, %21 : vector<16x64xf32>
    %23 = vector.broadcast %2 : vector<1x64xf32> to vector<16x64xf32>
    %24 = arith.addf %22, %23 : vector<16x64xf32>
    %c0_9 = arith.constant 0 : index
    %c0_10 = arith.constant 0 : index
    %25 = vector.load %arg4[%c0_9, %c0_10] : memref<16x64xf32, #tpu.memory_space<vmem>>, vector<16x64xf32>
    tpu.vector_store %arg4[%c0_9, %c0_10], %24 {strides = array<i32>} : memref<16x64xf32, #tpu.memory_space<vmem>>, vector<16x64xf32>,
    return
  }
  func.func @transform_0(%arg0: i32) -> (i32, i32) {
    %c0_i32 = arith.constant 0 : i32
    %c0_i32_0 = arith.constant 0 : i32
    %c0_i32_1 = arith.constant 0 : i32
    return %c0_i32, %c0_i32_0 : i32, i32
  }
  func.func @transform_1(%arg0: i32) -> (i32, i32) {
    %c0_i32 = arith.constant 0 : i32
    %c0_i32_0 = arith.constant 0 : i32
    %c0_i32_1 = arith.constant 0 : i32
    return %c0_i32, %c0_i32_0 : i32, i32
  }
  func.func @transform_2(%arg0: i32) -> (i32, i32) {
    %c0_i32 = arith.constant 0 : i32
    %c0_i32_0 = arith.constant 0 : i32
    %c0_i32_1 = arith.constant 0 : i32
    return %c0_i32, %c0_i32_0 : i32, i32
  }
  func.func @transform_3(%arg0: i32) -> (i32, i32) {
    %c0_i32 = arith.constant 0 : i32
    %c0_i32_0 = arith.constant 0 : i32
    %c0_i32_1 = arith.constant 0 : i32
    return %c0_i32, %c0_i32_0 : i32, i32
  }
}

module attributes {stable_mosaic.version = 11 : i64} {
  func.func @_enc_layer_kernel(%arg0: i32, %arg1: memref<1x8x64xf32, #tpu.memory_space<vmem>>, %arg2: memref<1x8x8xf32, #tpu.memory_space<vmem>>, %arg3: memref<64x192xf32, #tpu.memory_space<vmem>>, %arg4: memref<1x192xf32, #tpu.memory_space<vmem>>, %arg5: memref<64x64xf32, #tpu.memory_space<vmem>>, %arg6: memref<1x64xf32, #tpu.memory_space<vmem>>, %arg7: memref<1x64xf32, #tpu.memory_space<vmem>>, %arg8: memref<1x64xf32, #tpu.memory_space<vmem>>, %arg9: memref<64x128xf32, #tpu.memory_space<vmem>>, %arg10: memref<1x128xf32, #tpu.memory_space<vmem>>, %arg11: memref<128x64xf32, #tpu.memory_space<vmem>>, %arg12: memref<1x64xf32, #tpu.memory_space<vmem>>, %arg13: memref<1x64xf32, #tpu.memory_space<vmem>>, %arg14: memref<1x64xf32, #tpu.memory_space<vmem>>, %arg15: memref<1x8x64xf32, #tpu.memory_space<vmem>>) attributes {dimension_semantics = [#tpu.dimension_semantics<parallel>], iteration_bounds = array<i64: 2>, scalar_prefetch = 0 : i64, scratch_operands = 0 : i64, tpu.core_type = #tpu.core_type<tc>, window_params = [{transform_indices = @transform_0, window_bounds = array<i64: 1, 8, 64>}, {transform_indices = @transform_1, window_bounds = array<i64: 1, 8, 8>}, {pipeline_mode = #tpu.pipeline_mode<synchronous>, transform_indices = @transform_2, window_bounds = array<i64: 64, 192>}, {pipeline_mode = #tpu.pipeline_mode<synchronous>, transform_indices = @transform_3, window_bounds = array<i64: 1, 192>}, {pipeline_mode = #tpu.pipeline_mode<synchronous>, transform_indices = @transform_4, window_bounds = array<i64: 64, 64>}, {pipeline_mode = #tpu.pipeline_mode<synchronous>, transform_indices = @transform_5, window_bounds = array<i64: 1, 64>}, {pipeline_mode = #tpu.pipeline_mode<synchronous>, transform_indices = @transform_6, window_bounds = array<i64: 1, 64>}, {pipeline_mode = #tpu.pipeline_mode<synchronous>, transform_indices = @transform_7, window_bounds = array<i64: 1, 64>}, {pipeline_mode = #tpu.pipeline_mode<synchronous>, transform_indices = @transform_8, window_bounds = array<i64: 64, 128>}, {pipeline_mode = #tpu.pipeline_mode<synchronous>, transform_indices = @transform_9, window_bounds = array<i64: 1, 128>}, {pipeline_mode = #tpu.pipeline_mode<synchronous>, transform_indices = @transform_10, window_bounds = array<i64: 128, 64>}, {pipeline_mode = #tpu.pipeline_mode<synchronous>, transform_indices = @transform_11, window_bounds = array<i64: 1, 64>}, {pipeline_mode = #tpu.pipeline_mode<synchronous>, transform_indices = @transform_12, window_bounds = array<i64: 1, 64>}, {pipeline_mode = #tpu.pipeline_mode<synchronous>, transform_indices = @transform_13, window_bounds = array<i64: 1, 64>}, {transform_indices = @transform_14, window_bounds = array<i64: 1, 8, 64>}]} {
    %c0 = arith.constant 0 : index
    %c0_0 = arith.constant 0 : index
    %c0_1 = arith.constant 0 : index
    %0 = vector.load %arg1[%c0, %c0_0, %c0_1] : memref<1x8x64xf32, #tpu.memory_space<vmem>>, vector<1x8x64xf32>
    %1 = vector.shape_cast %0 : vector<1x8x64xf32> to vector<8x64xf32>
    %c0_2 = arith.constant 0 : index
    %c0_3 = arith.constant 0 : index
    %c0_4 = arith.constant 0 : index
    %2 = vector.load %arg2[%c0_2, %c0_3, %c0_4] : memref<1x8x8xf32, #tpu.memory_space<vmem>>, vector<1x8x8xf32>
    %3 = vector.shape_cast %2 : vector<1x8x8xf32> to vector<8x8xf32>
    %c0_5 = arith.constant 0 : index
    %c0_6 = arith.constant 0 : index
    %4 = vector.load %arg3[%c0_5, %c0_6] : memref<64x192xf32, #tpu.memory_space<vmem>>, vector<64x192xf32>
    %5 = arith.truncf %1 : vector<8x64xf32> to vector<8x64xbf16>
    %6 = arith.truncf %4 : vector<64x192xf32> to vector<64x192xbf16>
    %cst = arith.constant dense<0.000000e+00> : vector<8x192xf32>
    %7 = tpu.matmul %5, %6, %cst {dimension_numbers = #tpu.dot_dimension_numbers<[1], [0], [0], [1], [0, 0, 1, 1], [], []>} : vector<8x64xbf16>, vector<64x192xbf16>, vector<8x192xf32> -> vector<8x192xf32>
    %c0_7 = arith.constant 0 : index
    %c0_8 = arith.constant 0 : index
    %8 = vector.load %arg4[%c0_7, %c0_8] : memref<1x192xf32, #tpu.memory_space<vmem>>, vector<1x192xf32>
    %9 = vector.broadcast %8 : vector<1x192xf32> to vector<8x192xf32>
    %10 = arith.addf %7, %9 : vector<8x192xf32>
    %11 = vector.extract_strided_slice %10 {offsets = [0, 0], sizes = [8, 64], strides = [1, 1]} : vector<8x192xf32> to vector<8x64xf32>
    %12 = vector.extract_strided_slice %10 {offsets = [0, 64], sizes = [8, 64], strides = [1, 1]} : vector<8x192xf32> to vector<8x64xf32>
    %13 = vector.extract_strided_slice %10 {offsets = [0, 128], sizes = [8, 64], strides = [1, 1]} : vector<8x192xf32> to vector<8x64xf32>
    %c0_9 = arith.constant 0 : index
    %c0_10 = arith.constant 0 : index
    %14 = vector.load %arg5[%c0_9, %c0_10] : memref<64x64xf32, #tpu.memory_space<vmem>>, vector<64x64xf32>
    %c0_11 = arith.constant 0 : index
    %c0_12 = arith.constant 0 : index
    %15 = vector.load %arg6[%c0_11, %c0_12] : memref<1x64xf32, #tpu.memory_space<vmem>>, vector<1x64xf32>
    %16 = vector.extract_strided_slice %11 {offsets = [0, 0], sizes = [8, 32], strides = [1, 1]} : vector<8x64xf32> to vector<8x32xf32>
    %cst_13 = arith.constant 0.176776692 : f32
    %17 = vector.broadcast %cst_13 : f32 to vector<8x32xf32>
    %18 = arith.mulf %16, %17 : vector<8x32xf32>
    %19 = vector.extract_strided_slice %12 {offsets = [0, 0], sizes = [8, 32], strides = [1, 1]} : vector<8x64xf32> to vector<8x32xf32>
    %20 = vector.extract_strided_slice %13 {offsets = [0, 0], sizes = [8, 32], strides = [1, 1]} : vector<8x64xf32> to vector<8x32xf32>
    %21 = arith.truncf %18 : vector<8x32xf32> to vector<8x32xbf16>
    %22 = arith.truncf %19 : vector<8x32xf32> to vector<8x32xbf16>
    %cst_14 = arith.constant dense<0.000000e+00> : vector<8x8xf32>
    %23 = tpu.matmul %21, %22, %cst_14 {dimension_numbers = #tpu.dot_dimension_numbers<[1], [1], [0], [0], [0, 0, 1, 0], [], []>} : vector<8x32xbf16>, vector<8x32xbf16>, vector<8x8xf32> -> vector<8x8xf32>
    %24 = arith.addf %23, %3 : vector<8x8xf32>
    %cst_15 = arith.constant dense<0xFF800000> : vector<8xf32>
    %25 = vector.multi_reduction <maximumf>, %24, %cst_15 [1] : vector<8x8xf32> to vector<8xf32>
    %26 = vector.shape_cast %25 : vector<8xf32> to vector<8x1xf32>
    %27 = vector.broadcast %26 : vector<8x1xf32> to vector<8x8xf32>
    %28 = arith.subf %24, %27 : vector<8x8xf32>
    %29 = math.exp %28 : vector<8x8xf32>
    %cst_16 = arith.constant dense<0.000000e+00> : vector<8xf32>
    %30 = vector.multi_reduction <add>, %29, %cst_16 [1] : vector<8x8xf32> to vector<8xf32>
    %31 = vector.shape_cast %30 : vector<8xf32> to vector<8x1xf32>
    %32 = tpu.reciprocal %31 {approx = true} : vector<8x1xf32> -> vector<8x1xf32>
    %33 = vector.broadcast %32 : vector<8x1xf32> to vector<8x8xf32>
    %34 = arith.mulf %29, %33 : vector<8x8xf32>
    %35 = arith.truncf %34 : vector<8x8xf32> to vector<8x8xbf16>
    %36 = arith.truncf %20 : vector<8x32xf32> to vector<8x32xbf16>
    %cst_17 = arith.constant dense<0.000000e+00> : vector<8x32xf32>
    %37 = tpu.matmul %35, %36, %cst_17 {dimension_numbers = #tpu.dot_dimension_numbers<[1], [0], [0], [1], [0, 0, 1, 1], [], []>} : vector<8x8xbf16>, vector<8x32xbf16>, vector<8x32xf32> -> vector<8x32xf32>
    %38 = vector.extract_strided_slice %14 {offsets = [0, 0], sizes = [32, 64], strides = [1, 1]} : vector<64x64xf32> to vector<32x64xf32>
    %39 = arith.truncf %37 : vector<8x32xf32> to vector<8x32xbf16>
    %40 = arith.truncf %38 : vector<32x64xf32> to vector<32x64xbf16>
    %cst_18 = arith.constant dense<0.000000e+00> : vector<8x64xf32>
    %41 = tpu.matmul %39, %40, %cst_18 {dimension_numbers = #tpu.dot_dimension_numbers<[1], [0], [0], [1], [0, 0, 1, 1], [], []>} : vector<8x32xbf16>, vector<32x64xbf16>, vector<8x64xf32> -> vector<8x64xf32>
    %42 = vector.extract_strided_slice %11 {offsets = [0, 32], sizes = [8, 32], strides = [1, 1]} : vector<8x64xf32> to vector<8x32xf32>
    %cst_19 = arith.constant 0.176776692 : f32
    %43 = vector.broadcast %cst_19 : f32 to vector<8x32xf32>
    %44 = arith.mulf %42, %43 : vector<8x32xf32>
    %45 = vector.extract_strided_slice %12 {offsets = [0, 32], sizes = [8, 32], strides = [1, 1]} : vector<8x64xf32> to vector<8x32xf32>
    %46 = vector.extract_strided_slice %13 {offsets = [0, 32], sizes = [8, 32], strides = [1, 1]} : vector<8x64xf32> to vector<8x32xf32>
    %47 = arith.truncf %44 : vector<8x32xf32> to vector<8x32xbf16>
    %48 = arith.truncf %45 : vector<8x32xf32> to vector<8x32xbf16>
    %cst_20 = arith.constant dense<0.000000e+00> : vector<8x8xf32>
    %49 = tpu.matmul %47, %48, %cst_20 {dimension_numbers = #tpu.dot_dimension_numbers<[1], [1], [0], [0], [0, 0, 1, 0], [], []>} : vector<8x32xbf16>, vector<8x32xbf16>, vector<8x8xf32> -> vector<8x8xf32>
    %50 = arith.addf %49, %3 : vector<8x8xf32>
    %cst_21 = arith.constant dense<0xFF800000> : vector<8xf32>
    %51 = vector.multi_reduction <maximumf>, %50, %cst_21 [1] : vector<8x8xf32> to vector<8xf32>
    %52 = vector.shape_cast %51 : vector<8xf32> to vector<8x1xf32>
    %53 = vector.broadcast %52 : vector<8x1xf32> to vector<8x8xf32>
    %54 = arith.subf %50, %53 : vector<8x8xf32>
    %55 = math.exp %54 : vector<8x8xf32>
    %cst_22 = arith.constant dense<0.000000e+00> : vector<8xf32>
    %56 = vector.multi_reduction <add>, %55, %cst_22 [1] : vector<8x8xf32> to vector<8xf32>
    %57 = vector.shape_cast %56 : vector<8xf32> to vector<8x1xf32>
    %58 = tpu.reciprocal %57 {approx = true} : vector<8x1xf32> -> vector<8x1xf32>
    %59 = vector.broadcast %58 : vector<8x1xf32> to vector<8x8xf32>
    %60 = arith.mulf %55, %59 : vector<8x8xf32>
    %61 = arith.truncf %60 : vector<8x8xf32> to vector<8x8xbf16>
    %62 = arith.truncf %46 : vector<8x32xf32> to vector<8x32xbf16>
    %cst_23 = arith.constant dense<0.000000e+00> : vector<8x32xf32>
    %63 = tpu.matmul %61, %62, %cst_23 {dimension_numbers = #tpu.dot_dimension_numbers<[1], [0], [0], [1], [0, 0, 1, 1], [], []>} : vector<8x8xbf16>, vector<8x32xbf16>, vector<8x32xf32> -> vector<8x32xf32>
    %64 = vector.extract_strided_slice %14 {offsets = [32, 0], sizes = [32, 64], strides = [1, 1]} : vector<64x64xf32> to vector<32x64xf32>
    %65 = arith.truncf %63 : vector<8x32xf32> to vector<8x32xbf16>
    %66 = arith.truncf %64 : vector<32x64xf32> to vector<32x64xbf16>
    %cst_24 = arith.constant dense<0.000000e+00> : vector<8x64xf32>
    %67 = tpu.matmul %65, %66, %cst_24 {dimension_numbers = #tpu.dot_dimension_numbers<[1], [0], [0], [1], [0, 0, 1, 1], [], []>} : vector<8x32xbf16>, vector<32x64xbf16>, vector<8x64xf32> -> vector<8x64xf32>
    %68 = arith.addf %41, %67 : vector<8x64xf32>
    %69 = vector.broadcast %15 : vector<1x64xf32> to vector<8x64xf32>
    %70 = arith.addf %68, %69 : vector<8x64xf32>
    %71 = arith.addf %1, %70 : vector<8x64xf32>
    %c0_25 = arith.constant 0 : index
    %c0_26 = arith.constant 0 : index
    %72 = vector.load %arg7[%c0_25, %c0_26] : memref<1x64xf32, #tpu.memory_space<vmem>>, vector<1x64xf32>
    %c0_27 = arith.constant 0 : index
    %c0_28 = arith.constant 0 : index
    %73 = vector.load %arg8[%c0_27, %c0_28] : memref<1x64xf32, #tpu.memory_space<vmem>>, vector<1x64xf32>
    %cst_29 = arith.constant dense<0.000000e+00> : vector<8xf32>
    %74 = vector.multi_reduction <add>, %71, %cst_29 [1] : vector<8x64xf32> to vector<8xf32>
    %75 = vector.shape_cast %74 : vector<8xf32> to vector<8x1xf32>
    %cst_30 = arith.constant 6.400000e+01 : f32
    %76 = vector.broadcast %cst_30 : f32 to vector<8x1xf32>
    %77 = arith.divf %75, %76 : vector<8x1xf32>
    %78 = vector.broadcast %77 : vector<8x1xf32> to vector<8x64xf32>
    %79 = arith.subf %71, %78 : vector<8x64xf32>
    %80 = arith.mulf %79, %79 : vector<8x64xf32>
    %cst_31 = arith.constant dense<0.000000e+00> : vector<8xf32>
    %81 = vector.multi_reduction <add>, %80, %cst_31 [1] : vector<8x64xf32> to vector<8xf32>
    %82 = vector.shape_cast %81 : vector<8xf32> to vector<8x1xf32>
    %cst_32 = arith.constant 6.400000e+01 : f32
    %83 = vector.broadcast %cst_32 : f32 to vector<8x1xf32>
    %84 = arith.divf %82, %83 : vector<8x1xf32>
    %85 = vector.broadcast %77 : vector<8x1xf32> to vector<8x64xf32>
    %86 = arith.subf %71, %85 : vector<8x64xf32>
    %cst_33 = arith.constant 9.99999974E-6 : f32
    %87 = vector.broadcast %cst_33 : f32 to vector<8x1xf32>
    %88 = arith.addf %84, %87 : vector<8x1xf32>
    %89 = math.rsqrt %88 : vector<8x1xf32>
    %90 = vector.broadcast %89 : vector<8x1xf32> to vector<8x64xf32>
    %91 = arith.mulf %86, %90 : vector<8x64xf32>
    %92 = vector.broadcast %72 : vector<1x64xf32> to vector<8x64xf32>
    %93 = arith.mulf %91, %92 : vector<8x64xf32>
    %94 = vector.broadcast %73 : vector<1x64xf32> to vector<8x64xf32>
    %95 = arith.addf %93, %94 : vector<8x64xf32>
    %c0_34 = arith.constant 0 : index
    %c0_35 = arith.constant 0 : index
    %96 = vector.load %arg9[%c0_34, %c0_35] : memref<64x128xf32, #tpu.memory_space<vmem>>, vector<64x128xf32>
    %97 = arith.truncf %95 : vector<8x64xf32> to vector<8x64xbf16>
    %98 = arith.truncf %96 : vector<64x128xf32> to vector<64x128xbf16>
    %cst_36 = arith.constant dense<0.000000e+00> : vector<8x128xf32>
    %99 = tpu.matmul %97, %98, %cst_36 {dimension_numbers = #tpu.dot_dimension_numbers<[1], [0], [0], [1], [0, 0, 1, 1], [], []>} : vector<8x64xbf16>, vector<64x128xbf16>, vector<8x128xf32> -> vector<8x128xf32>
    %c0_37 = arith.constant 0 : index
    %c0_38 = arith.constant 0 : index
    %100 = vector.load %arg10[%c0_37, %c0_38] : memref<1x128xf32, #tpu.memory_space<vmem>>, vector<1x128xf32>
    %101 = vector.broadcast %100 : vector<1x128xf32> to vector<8x128xf32>
    %102 = arith.addf %99, %101 : vector<8x128xf32>
    %103 = arith.mulf %102, %102 : vector<8x128xf32>
    %104 = arith.mulf %102, %103 : vector<8x128xf32>
    %cst_39 = arith.constant 4.471500e-02 : f32
    %105 = vector.broadcast %cst_39 : f32 to vector<8x128xf32>
    %106 = arith.mulf %105, %104 : vector<8x128xf32>
    %107 = arith.addf %102, %106 : vector<8x128xf32>
    %cst_40 = arith.constant 0.797884583 : f32
    %108 = vector.broadcast %cst_40 : f32 to vector<8x128xf32>
    %109 = arith.mulf %108, %107 : vector<8x128xf32>
    %110 = math.tanh %109 : vector<8x128xf32>
    %cst_41 = arith.constant 1.000000e+00 : f32
    %111 = vector.broadcast %cst_41 : f32 to vector<8x128xf32>
    %112 = arith.addf %111, %110 : vector<8x128xf32>
    %cst_42 = arith.constant 5.000000e-01 : f32
    %113 = vector.broadcast %cst_42 : f32 to vector<8x128xf32>
    %114 = arith.mulf %113, %112 : vector<8x128xf32>
    %115 = arith.mulf %102, %114 : vector<8x128xf32>
    %c0_43 = arith.constant 0 : index
    %c0_44 = arith.constant 0 : index
    %116 = vector.load %arg11[%c0_43, %c0_44] : memref<128x64xf32, #tpu.memory_space<vmem>>, vector<128x64xf32>
    %117 = arith.truncf %115 : vector<8x128xf32> to vector<8x128xbf16>
    %118 = arith.truncf %116 : vector<128x64xf32> to vector<128x64xbf16>
    %cst_45 = arith.constant dense<0.000000e+00> : vector<8x64xf32>
    %119 = tpu.matmul %117, %118, %cst_45 {dimension_numbers = #tpu.dot_dimension_numbers<[1], [0], [0], [1], [0, 0, 1, 1], [], []>} : vector<8x128xbf16>, vector<128x64xbf16>, vector<8x64xf32> -> vector<8x64xf32>
    %c0_46 = arith.constant 0 : index
    %c0_47 = arith.constant 0 : index
    %120 = vector.load %arg12[%c0_46, %c0_47] : memref<1x64xf32, #tpu.memory_space<vmem>>, vector<1x64xf32>
    %121 = vector.broadcast %120 : vector<1x64xf32> to vector<8x64xf32>
    %122 = arith.addf %119, %121 : vector<8x64xf32>
    %123 = arith.addf %95, %122 : vector<8x64xf32>
    %c0_48 = arith.constant 0 : index
    %c0_49 = arith.constant 0 : index
    %124 = vector.load %arg13[%c0_48, %c0_49] : memref<1x64xf32, #tpu.memory_space<vmem>>, vector<1x64xf32>
    %c0_50 = arith.constant 0 : index
    %c0_51 = arith.constant 0 : index
    %125 = vector.load %arg14[%c0_50, %c0_51] : memref<1x64xf32, #tpu.memory_space<vmem>>, vector<1x64xf32>
    %cst_52 = arith.constant dense<0.000000e+00> : vector<8xf32>
    %126 = vector.multi_reduction <add>, %123, %cst_52 [1] : vector<8x64xf32> to vector<8xf32>
    %127 = vector.shape_cast %126 : vector<8xf32> to vector<8x1xf32>
    %cst_53 = arith.constant 6.400000e+01 : f32
    %128 = vector.broadcast %cst_53 : f32 to vector<8x1xf32>
    %129 = arith.divf %127, %128 : vector<8x1xf32>
    %130 = vector.broadcast %129 : vector<8x1xf32> to vector<8x64xf32>
    %131 = arith.subf %123, %130 : vector<8x64xf32>
    %132 = arith.mulf %131, %131 : vector<8x64xf32>
    %cst_54 = arith.constant dense<0.000000e+00> : vector<8xf32>
    %133 = vector.multi_reduction <add>, %132, %cst_54 [1] : vector<8x64xf32> to vector<8xf32>
    %134 = vector.shape_cast %133 : vector<8xf32> to vector<8x1xf32>
    %cst_55 = arith.constant 6.400000e+01 : f32
    %135 = vector.broadcast %cst_55 : f32 to vector<8x1xf32>
    %136 = arith.divf %134, %135 : vector<8x1xf32>
    %137 = vector.broadcast %129 : vector<8x1xf32> to vector<8x64xf32>
    %138 = arith.subf %123, %137 : vector<8x64xf32>
    %cst_56 = arith.constant 9.99999974E-6 : f32
    %139 = vector.broadcast %cst_56 : f32 to vector<8x1xf32>
    %140 = arith.addf %136, %139 : vector<8x1xf32>
    %141 = math.rsqrt %140 : vector<8x1xf32>
    %142 = vector.broadcast %141 : vector<8x1xf32> to vector<8x64xf32>
    %143 = arith.mulf %138, %142 : vector<8x64xf32>
    %144 = vector.broadcast %124 : vector<1x64xf32> to vector<8x64xf32>
    %145 = arith.mulf %143, %144 : vector<8x64xf32>
    %146 = vector.broadcast %125 : vector<1x64xf32> to vector<8x64xf32>
    %147 = arith.addf %145, %146 : vector<8x64xf32>
    %c0_57 = arith.constant 0 : index
    %c0_58 = arith.constant 0 : index
    %c0_59 = arith.constant 0 : index
    %148 = vector.load %arg15[%c0_57, %c0_58, %c0_59] : memref<1x8x64xf32, #tpu.memory_space<vmem>>, vector<1x8x64xf32>
    %149 = vector.shape_cast %148 : vector<1x8x64xf32> to vector<8x64xf32>
    %150 = vector.shape_cast %147 : vector<8x64xf32> to vector<1x8x64xf32>
    tpu.vector_store %arg15[%c0_57, %c0_58, %c0_59], %150 {strides = array<i32>} : memref<1x8x64xf32, #tpu.memory_space<vmem>>, vector<1x8x64xf32>,
    return
  }
  func.func @transform_0(%arg0: i32) -> (i32, i32, i32) {
    %c0_i32 = arith.constant 0 : i32
    %c0_i32_0 = arith.constant 0 : i32
    %c0_i32_1 = arith.constant 0 : i32
    return %arg0, %c0_i32, %c0_i32_0 : i32, i32, i32
  }
  func.func @transform_1(%arg0: i32) -> (i32, i32, i32) {
    %c0_i32 = arith.constant 0 : i32
    %c0_i32_0 = arith.constant 0 : i32
    %c0_i32_1 = arith.constant 0 : i32
    return %arg0, %c0_i32, %c0_i32_0 : i32, i32, i32
  }
  func.func @transform_2(%arg0: i32) -> (i32, i32) {
    %c0_i32 = arith.constant 0 : i32
    %c0_i32_0 = arith.constant 0 : i32
    %c0_i32_1 = arith.constant 0 : i32
    return %c0_i32, %c0_i32_0 : i32, i32
  }
  func.func @transform_3(%arg0: i32) -> (i32, i32) {
    %c0_i32 = arith.constant 0 : i32
    %c0_i32_0 = arith.constant 0 : i32
    %c0_i32_1 = arith.constant 0 : i32
    return %c0_i32, %c0_i32_0 : i32, i32
  }
  func.func @transform_4(%arg0: i32) -> (i32, i32) {
    %c0_i32 = arith.constant 0 : i32
    %c0_i32_0 = arith.constant 0 : i32
    %c0_i32_1 = arith.constant 0 : i32
    return %c0_i32, %c0_i32_0 : i32, i32
  }
  func.func @transform_5(%arg0: i32) -> (i32, i32) {
    %c0_i32 = arith.constant 0 : i32
    %c0_i32_0 = arith.constant 0 : i32
    %c0_i32_1 = arith.constant 0 : i32
    return %c0_i32, %c0_i32_0 : i32, i32
  }
  func.func @transform_6(%arg0: i32) -> (i32, i32) {
    %c0_i32 = arith.constant 0 : i32
    %c0_i32_0 = arith.constant 0 : i32
    %c0_i32_1 = arith.constant 0 : i32
    return %c0_i32, %c0_i32_0 : i32, i32
  }
  func.func @transform_7(%arg0: i32) -> (i32, i32) {
    %c0_i32 = arith.constant 0 : i32
    %c0_i32_0 = arith.constant 0 : i32
    %c0_i32_1 = arith.constant 0 : i32
    return %c0_i32, %c0_i32_0 : i32, i32
  }
  func.func @transform_8(%arg0: i32) -> (i32, i32) {
    %c0_i32 = arith.constant 0 : i32
    %c0_i32_0 = arith.constant 0 : i32
    %c0_i32_1 = arith.constant 0 : i32
    return %c0_i32, %c0_i32_0 : i32, i32
  }
  func.func @transform_9(%arg0: i32) -> (i32, i32) {
    %c0_i32 = arith.constant 0 : i32
    %c0_i32_0 = arith.constant 0 : i32
    %c0_i32_1 = arith.constant 0 : i32
    return %c0_i32, %c0_i32_0 : i32, i32
  }
  func.func @transform_10(%arg0: i32) -> (i32, i32) {
    %c0_i32 = arith.constant 0 : i32
    %c0_i32_0 = arith.constant 0 : i32
    %c0_i32_1 = arith.constant 0 : i32
    return %c0_i32, %c0_i32_0 : i32, i32
  }
  func.func @transform_11(%arg0: i32) -> (i32, i32) {
    %c0_i32 = arith.constant 0 : i32
    %c0_i32_0 = arith.constant 0 : i32
    %c0_i32_1 = arith.constant 0 : i32
    return %c0_i32, %c0_i32_0 : i32, i32
  }
  func.func @transform_12(%arg0: i32) -> (i32, i32) {
    %c0_i32 = arith.constant 0 : i32
    %c0_i32_0 = arith.constant 0 : i32
    %c0_i32_1 = arith.constant 0 : i32
    return %c0_i32, %c0_i32_0 : i32, i32
  }
  func.func @transform_13(%arg0: i32) -> (i32, i32) {
    %c0_i32 = arith.constant 0 : i32
    %c0_i32_0 = arith.constant 0 : i32
    %c0_i32_1 = arith.constant 0 : i32
    return %c0_i32, %c0_i32_0 : i32, i32
  }
  func.func @transform_14(%arg0: i32) -> (i32, i32, i32) {
    %c0_i32 = arith.constant 0 : i32
    %c0_i32_0 = arith.constant 0 : i32
    %c0_i32_1 = arith.constant 0 : i32
    return %arg0, %c0_i32, %c0_i32_0 : i32, i32, i32
  }
}

module attributes {stable_mosaic.version = 11 : i64} {
  func.func @_dec_layer_kernel(%arg0: i32, %arg1: memref<1x2x64xf32, #tpu.memory_space<vmem>>, %arg2: memref<1x8x64xf32, #tpu.memory_space<vmem>>, %arg3: memref<1x2x2xf32, #tpu.memory_space<vmem>>, %arg4: memref<1x2x8xf32, #tpu.memory_space<vmem>>, %arg5: memref<64x192xf32, #tpu.memory_space<vmem>>, %arg6: memref<1x192xf32, #tpu.memory_space<vmem>>, %arg7: memref<64x64xf32, #tpu.memory_space<vmem>>, %arg8: memref<1x64xf32, #tpu.memory_space<vmem>>, %arg9: memref<1x64xf32, #tpu.memory_space<vmem>>, %arg10: memref<1x64xf32, #tpu.memory_space<vmem>>, %arg11: memref<64x64xf32, #tpu.memory_space<vmem>>, %arg12: memref<1x64xf32, #tpu.memory_space<vmem>>, %arg13: memref<64x128xf32, #tpu.memory_space<vmem>>, %arg14: memref<1x128xf32, #tpu.memory_space<vmem>>, %arg15: memref<64x64xf32, #tpu.memory_space<vmem>>, %arg16: memref<1x64xf32, #tpu.memory_space<vmem>>, %arg17: memref<1x64xf32, #tpu.memory_space<vmem>>, %arg18: memref<1x64xf32, #tpu.memory_space<vmem>>, %arg19: memref<64x128xf32, #tpu.memory_space<vmem>>, %arg20: memref<1x128xf32, #tpu.memory_space<vmem>>, %arg21: memref<128x64xf32, #tpu.memory_space<vmem>>, %arg22: memref<1x64xf32, #tpu.memory_space<vmem>>, %arg23: memref<1x64xf32, #tpu.memory_space<vmem>>, %arg24: memref<1x64xf32, #tpu.memory_space<vmem>>, %arg25: memref<1x2x64xf32, #tpu.memory_space<vmem>>) attributes {dimension_semantics = [#tpu.dimension_semantics<parallel>], iteration_bounds = array<i64: 2>, scalar_prefetch = 0 : i64, scratch_operands = 0 : i64, tpu.core_type = #tpu.core_type<tc>, window_params = [{transform_indices = @transform_0, window_bounds = array<i64: 1, 2, 64>}, {transform_indices = @transform_1, window_bounds = array<i64: 1, 8, 64>}, {transform_indices = @transform_2, window_bounds = array<i64: 1, 2, 2>}, {transform_indices = @transform_3, window_bounds = array<i64: 1, 2, 8>}, {pipeline_mode = #tpu.pipeline_mode<synchronous>, transform_indices = @transform_4, window_bounds = array<i64: 64, 192>}, {pipeline_mode = #tpu.pipeline_mode<synchronous>, transform_indices = @transform_5, window_bounds = array<i64: 1, 192>}, {pipeline_mode = #tpu.pipeline_mode<synchronous>, transform_indices = @transform_6, window_bounds = array<i64: 64, 64>}, {pipeline_mode = #tpu.pipeline_mode<synchronous>, transform_indices = @transform_7, window_bounds = array<i64: 1, 64>}, {pipeline_mode = #tpu.pipeline_mode<synchronous>, transform_indices = @transform_8, window_bounds = array<i64: 1, 64>}, {pipeline_mode = #tpu.pipeline_mode<synchronous>, transform_indices = @transform_9, window_bounds = array<i64: 1, 64>}, {pipeline_mode = #tpu.pipeline_mode<synchronous>, transform_indices = @transform_10, window_bounds = array<i64: 64, 64>}, {pipeline_mode = #tpu.pipeline_mode<synchronous>, transform_indices = @transform_11, window_bounds = array<i64: 1, 64>}, {pipeline_mode = #tpu.pipeline_mode<synchronous>, transform_indices = @transform_12, window_bounds = array<i64: 64, 128>}, {pipeline_mode = #tpu.pipeline_mode<synchronous>, transform_indices = @transform_13, window_bounds = array<i64: 1, 128>}, {pipeline_mode = #tpu.pipeline_mode<synchronous>, transform_indices = @transform_14, window_bounds = array<i64: 64, 64>}, {pipeline_mode = #tpu.pipeline_mode<synchronous>, transform_indices = @transform_15, window_bounds = array<i64: 1, 64>}, {pipeline_mode = #tpu.pipeline_mode<synchronous>, transform_indices = @transform_16, window_bounds = array<i64: 1, 64>}, {pipeline_mode = #tpu.pipeline_mode<synchronous>, transform_indices = @transform_17, window_bounds = array<i64: 1, 64>}, {pipeline_mode = #tpu.pipeline_mode<synchronous>, transform_indices = @transform_18, window_bounds = array<i64: 64, 128>}, {pipeline_mode = #tpu.pipeline_mode<synchronous>, transform_indices = @transform_19, window_bounds = array<i64: 1, 128>}, {pipeline_mode = #tpu.pipeline_mode<synchronous>, transform_indices = @transform_20, window_bounds = array<i64: 128, 64>}, {pipeline_mode = #tpu.pipeline_mode<synchronous>, transform_indices = @transform_21, window_bounds = array<i64: 1, 64>}, {pipeline_mode = #tpu.pipeline_mode<synchronous>, transform_indices = @transform_22, window_bounds = array<i64: 1, 64>}, {pipeline_mode = #tpu.pipeline_mode<synchronous>, transform_indices = @transform_23, window_bounds = array<i64: 1, 64>}, {transform_indices = @transform_24, window_bounds = array<i64: 1, 2, 64>}]} {
    %c0 = arith.constant 0 : index
    %c0_0 = arith.constant 0 : index
    %c0_1 = arith.constant 0 : index
    %0 = vector.load %arg1[%c0, %c0_0, %c0_1] : memref<1x2x64xf32, #tpu.memory_space<vmem>>, vector<1x2x64xf32>
    %1 = vector.shape_cast %0 : vector<1x2x64xf32> to vector<2x64xf32>
    %c0_2 = arith.constant 0 : index
    %c0_3 = arith.constant 0 : index
    %c0_4 = arith.constant 0 : index
    %2 = vector.load %arg2[%c0_2, %c0_3, %c0_4] : memref<1x8x64xf32, #tpu.memory_space<vmem>>, vector<1x8x64xf32>
    %3 = vector.shape_cast %2 : vector<1x8x64xf32> to vector<8x64xf32>
    %c0_5 = arith.constant 0 : index
    %c0_6 = arith.constant 0 : index
    %c0_7 = arith.constant 0 : index
    %4 = vector.load %arg3[%c0_5, %c0_6, %c0_7] : memref<1x2x2xf32, #tpu.memory_space<vmem>>, vector<1x2x2xf32>
    %5 = vector.shape_cast %4 : vector<1x2x2xf32> to vector<2x2xf32>
    %c0_8 = arith.constant 0 : index
    %c0_9 = arith.constant 0 : index
    %c0_10 = arith.constant 0 : index
    %6 = vector.load %arg4[%c0_8, %c0_9, %c0_10] : memref<1x2x8xf32, #tpu.memory_space<vmem>>, vector<1x2x8xf32>
    %7 = vector.shape_cast %6 : vector<1x2x8xf32> to vector<2x8xf32>
    %c0_11 = arith.constant 0 : index
    %c0_12 = arith.constant 0 : index
    %8 = vector.load %arg5[%c0_11, %c0_12] : memref<64x192xf32, #tpu.memory_space<vmem>>, vector<64x192xf32>
    %9 = arith.truncf %1 : vector<2x64xf32> to vector<2x64xbf16>
    %10 = arith.truncf %8 : vector<64x192xf32> to vector<64x192xbf16>
    %cst = arith.constant dense<0.000000e+00> : vector<2x192xf32>
    %11 = tpu.matmul %9, %10, %cst {dimension_numbers = #tpu.dot_dimension_numbers<[1], [0], [0], [1], [0, 0, 1, 1], [], []>} : vector<2x64xbf16>, vector<64x192xbf16>, vector<2x192xf32> -> vector<2x192xf32>
    %c0_13 = arith.constant 0 : index
    %c0_14 = arith.constant 0 : index
    %12 = vector.load %arg6[%c0_13, %c0_14] : memref<1x192xf32, #tpu.memory_space<vmem>>, vector<1x192xf32>
    %13 = vector.broadcast %12 : vector<1x192xf32> to vector<2x192xf32>
    %14 = arith.addf %11, %13 : vector<2x192xf32>
    %15 = vector.extract_strided_slice %14 {offsets = [0, 0], sizes = [2, 64], strides = [1, 1]} : vector<2x192xf32> to vector<2x64xf32>
    %16 = vector.extract_strided_slice %14 {offsets = [0, 64], sizes = [2, 64], strides = [1, 1]} : vector<2x192xf32> to vector<2x64xf32>
    %17 = vector.extract_strided_slice %14 {offsets = [0, 128], sizes = [2, 64], strides = [1, 1]} : vector<2x192xf32> to vector<2x64xf32>
    %c0_15 = arith.constant 0 : index
    %c0_16 = arith.constant 0 : index
    %18 = vector.load %arg7[%c0_15, %c0_16] : memref<64x64xf32, #tpu.memory_space<vmem>>, vector<64x64xf32>
    %c0_17 = arith.constant 0 : index
    %c0_18 = arith.constant 0 : index
    %19 = vector.load %arg8[%c0_17, %c0_18] : memref<1x64xf32, #tpu.memory_space<vmem>>, vector<1x64xf32>
    %20 = vector.extract_strided_slice %15 {offsets = [0, 0], sizes = [2, 32], strides = [1, 1]} : vector<2x64xf32> to vector<2x32xf32>
    %cst_19 = arith.constant 0.176776692 : f32
    %21 = vector.broadcast %cst_19 : f32 to vector<2x32xf32>
    %22 = arith.mulf %20, %21 : vector<2x32xf32>
    %23 = vector.extract_strided_slice %16 {offsets = [0, 0], sizes = [2, 32], strides = [1, 1]} : vector<2x64xf32> to vector<2x32xf32>
    %24 = vector.extract_strided_slice %17 {offsets = [0, 0], sizes = [2, 32], strides = [1, 1]} : vector<2x64xf32> to vector<2x32xf32>
    %25 = arith.truncf %22 : vector<2x32xf32> to vector<2x32xbf16>
    %26 = arith.truncf %23 : vector<2x32xf32> to vector<2x32xbf16>
    %cst_20 = arith.constant dense<0.000000e+00> : vector<2x2xf32>
    %27 = tpu.matmul %25, %26, %cst_20 {dimension_numbers = #tpu.dot_dimension_numbers<[1], [1], [0], [0], [0, 0, 1, 0], [], []>} : vector<2x32xbf16>, vector<2x32xbf16>, vector<2x2xf32> -> vector<2x2xf32>
    %28 = arith.addf %27, %5 : vector<2x2xf32>
    %cst_21 = arith.constant dense<0xFF800000> : vector<2xf32>
    %29 = vector.multi_reduction <maximumf>, %28, %cst_21 [1] : vector<2x2xf32> to vector<2xf32>
    %30 = vector.shape_cast %29 : vector<2xf32> to vector<2x1xf32>
    %31 = vector.broadcast %30 : vector<2x1xf32> to vector<2x2xf32>
    %32 = arith.subf %28, %31 : vector<2x2xf32>
    %33 = math.exp %32 : vector<2x2xf32>
    %cst_22 = arith.constant dense<0.000000e+00> : vector<2xf32>
    %34 = vector.multi_reduction <add>, %33, %cst_22 [1] : vector<2x2xf32> to vector<2xf32>
    %35 = vector.shape_cast %34 : vector<2xf32> to vector<2x1xf32>
    %36 = tpu.reciprocal %35 {approx = true} : vector<2x1xf32> -> vector<2x1xf32>
    %37 = vector.broadcast %36 : vector<2x1xf32> to vector<2x2xf32>
    %38 = arith.mulf %33, %37 : vector<2x2xf32>
    %39 = arith.truncf %38 : vector<2x2xf32> to vector<2x2xbf16>
    %40 = arith.truncf %24 : vector<2x32xf32> to vector<2x32xbf16>
    %cst_23 = arith.constant dense<0.000000e+00> : vector<2x32xf32>
    %41 = tpu.matmul %39, %40, %cst_23 {dimension_numbers = #tpu.dot_dimension_numbers<[1], [0], [0], [1], [0, 0, 1, 1], [], []>} : vector<2x2xbf16>, vector<2x32xbf16>, vector<2x32xf32> -> vector<2x32xf32>
    %42 = vector.extract_strided_slice %18 {offsets = [0, 0], sizes = [32, 64], strides = [1, 1]} : vector<64x64xf32> to vector<32x64xf32>
    %43 = arith.truncf %41 : vector<2x32xf32> to vector<2x32xbf16>
    %44 = arith.truncf %42 : vector<32x64xf32> to vector<32x64xbf16>
    %cst_24 = arith.constant dense<0.000000e+00> : vector<2x64xf32>
    %45 = tpu.matmul %43, %44, %cst_24 {dimension_numbers = #tpu.dot_dimension_numbers<[1], [0], [0], [1], [0, 0, 1, 1], [], []>} : vector<2x32xbf16>, vector<32x64xbf16>, vector<2x64xf32> -> vector<2x64xf32>
    %46 = vector.extract_strided_slice %15 {offsets = [0, 32], sizes = [2, 32], strides = [1, 1]} : vector<2x64xf32> to vector<2x32xf32>
    %cst_25 = arith.constant 0.176776692 : f32
    %47 = vector.broadcast %cst_25 : f32 to vector<2x32xf32>
    %48 = arith.mulf %46, %47 : vector<2x32xf32>
    %49 = vector.extract_strided_slice %16 {offsets = [0, 32], sizes = [2, 32], strides = [1, 1]} : vector<2x64xf32> to vector<2x32xf32>
    %50 = vector.extract_strided_slice %17 {offsets = [0, 32], sizes = [2, 32], strides = [1, 1]} : vector<2x64xf32> to vector<2x32xf32>
    %51 = arith.truncf %48 : vector<2x32xf32> to vector<2x32xbf16>
    %52 = arith.truncf %49 : vector<2x32xf32> to vector<2x32xbf16>
    %cst_26 = arith.constant dense<0.000000e+00> : vector<2x2xf32>
    %53 = tpu.matmul %51, %52, %cst_26 {dimension_numbers = #tpu.dot_dimension_numbers<[1], [1], [0], [0], [0, 0, 1, 0], [], []>} : vector<2x32xbf16>, vector<2x32xbf16>, vector<2x2xf32> -> vector<2x2xf32>
    %54 = arith.addf %53, %5 : vector<2x2xf32>
    %cst_27 = arith.constant dense<0xFF800000> : vector<2xf32>
    %55 = vector.multi_reduction <maximumf>, %54, %cst_27 [1] : vector<2x2xf32> to vector<2xf32>
    %56 = vector.shape_cast %55 : vector<2xf32> to vector<2x1xf32>
    %57 = vector.broadcast %56 : vector<2x1xf32> to vector<2x2xf32>
    %58 = arith.subf %54, %57 : vector<2x2xf32>
    %59 = math.exp %58 : vector<2x2xf32>
    %cst_28 = arith.constant dense<0.000000e+00> : vector<2xf32>
    %60 = vector.multi_reduction <add>, %59, %cst_28 [1] : vector<2x2xf32> to vector<2xf32>
    %61 = vector.shape_cast %60 : vector<2xf32> to vector<2x1xf32>
    %62 = tpu.reciprocal %61 {approx = true} : vector<2x1xf32> -> vector<2x1xf32>
    %63 = vector.broadcast %62 : vector<2x1xf32> to vector<2x2xf32>
    %64 = arith.mulf %59, %63 : vector<2x2xf32>
    %65 = arith.truncf %64 : vector<2x2xf32> to vector<2x2xbf16>
    %66 = arith.truncf %50 : vector<2x32xf32> to vector<2x32xbf16>
    %cst_29 = arith.constant dense<0.000000e+00> : vector<2x32xf32>
    %67 = tpu.matmul %65, %66, %cst_29 {dimension_numbers = #tpu.dot_dimension_numbers<[1], [0], [0], [1], [0, 0, 1, 1], [], []>} : vector<2x2xbf16>, vector<2x32xbf16>, vector<2x32xf32> -> vector<2x32xf32>
    %68 = vector.extract_strided_slice %18 {offsets = [32, 0], sizes = [32, 64], strides = [1, 1]} : vector<64x64xf32> to vector<32x64xf32>
    %69 = arith.truncf %67 : vector<2x32xf32> to vector<2x32xbf16>
    %70 = arith.truncf %68 : vector<32x64xf32> to vector<32x64xbf16>
    %cst_30 = arith.constant dense<0.000000e+00> : vector<2x64xf32>
    %71 = tpu.matmul %69, %70, %cst_30 {dimension_numbers = #tpu.dot_dimension_numbers<[1], [0], [0], [1], [0, 0, 1, 1], [], []>} : vector<2x32xbf16>, vector<32x64xbf16>, vector<2x64xf32> -> vector<2x64xf32>
    %72 = arith.addf %45, %71 : vector<2x64xf32>
    %73 = vector.broadcast %19 : vector<1x64xf32> to vector<2x64xf32>
    %74 = arith.addf %72, %73 : vector<2x64xf32>
    %75 = arith.addf %1, %74 : vector<2x64xf32>
    %c0_31 = arith.constant 0 : index
    %c0_32 = arith.constant 0 : index
    %76 = vector.load %arg9[%c0_31, %c0_32] : memref<1x64xf32, #tpu.memory_space<vmem>>, vector<1x64xf32>
    %c0_33 = arith.constant 0 : index
    %c0_34 = arith.constant 0 : index
    %77 = vector.load %arg10[%c0_33, %c0_34] : memref<1x64xf32, #tpu.memory_space<vmem>>, vector<1x64xf32>
    %cst_35 = arith.constant dense<0.000000e+00> : vector<2xf32>
    %78 = vector.multi_reduction <add>, %75, %cst_35 [1] : vector<2x64xf32> to vector<2xf32>
    %79 = vector.shape_cast %78 : vector<2xf32> to vector<2x1xf32>
    %cst_36 = arith.constant 6.400000e+01 : f32
    %80 = vector.broadcast %cst_36 : f32 to vector<2x1xf32>
    %81 = arith.divf %79, %80 : vector<2x1xf32>
    %82 = vector.broadcast %81 : vector<2x1xf32> to vector<2x64xf32>
    %83 = arith.subf %75, %82 : vector<2x64xf32>
    %84 = arith.mulf %83, %83 : vector<2x64xf32>
    %cst_37 = arith.constant dense<0.000000e+00> : vector<2xf32>
    %85 = vector.multi_reduction <add>, %84, %cst_37 [1] : vector<2x64xf32> to vector<2xf32>
    %86 = vector.shape_cast %85 : vector<2xf32> to vector<2x1xf32>
    %cst_38 = arith.constant 6.400000e+01 : f32
    %87 = vector.broadcast %cst_38 : f32 to vector<2x1xf32>
    %88 = arith.divf %86, %87 : vector<2x1xf32>
    %89 = vector.broadcast %81 : vector<2x1xf32> to vector<2x64xf32>
    %90 = arith.subf %75, %89 : vector<2x64xf32>
    %cst_39 = arith.constant 9.99999974E-6 : f32
    %91 = vector.broadcast %cst_39 : f32 to vector<2x1xf32>
    %92 = arith.addf %88, %91 : vector<2x1xf32>
    %93 = math.rsqrt %92 : vector<2x1xf32>
    %94 = vector.broadcast %93 : vector<2x1xf32> to vector<2x64xf32>
    %95 = arith.mulf %90, %94 : vector<2x64xf32>
    %96 = vector.broadcast %76 : vector<1x64xf32> to vector<2x64xf32>
    %97 = arith.mulf %95, %96 : vector<2x64xf32>
    %98 = vector.broadcast %77 : vector<1x64xf32> to vector<2x64xf32>
    %99 = arith.addf %97, %98 : vector<2x64xf32>
    %c0_40 = arith.constant 0 : index
    %c0_41 = arith.constant 0 : index
    %100 = vector.load %arg11[%c0_40, %c0_41] : memref<64x64xf32, #tpu.memory_space<vmem>>, vector<64x64xf32>
    %101 = arith.truncf %99 : vector<2x64xf32> to vector<2x64xbf16>
    %102 = arith.truncf %100 : vector<64x64xf32> to vector<64x64xbf16>
    %cst_42 = arith.constant dense<0.000000e+00> : vector<2x64xf32>
    %103 = tpu.matmul %101, %102, %cst_42 {dimension_numbers = #tpu.dot_dimension_numbers<[1], [0], [0], [1], [0, 0, 1, 1], [], []>} : vector<2x64xbf16>, vector<64x64xbf16>, vector<2x64xf32> -> vector<2x64xf32>
    %c0_43 = arith.constant 0 : index
    %c0_44 = arith.constant 0 : index
    %104 = vector.load %arg12[%c0_43, %c0_44] : memref<1x64xf32, #tpu.memory_space<vmem>>, vector<1x64xf32>
    %105 = vector.broadcast %104 : vector<1x64xf32> to vector<2x64xf32>
    %106 = arith.addf %103, %105 : vector<2x64xf32>
    %c0_45 = arith.constant 0 : index
    %c0_46 = arith.constant 0 : index
    %107 = vector.load %arg13[%c0_45, %c0_46] : memref<64x128xf32, #tpu.memory_space<vmem>>, vector<64x128xf32>
    %108 = arith.truncf %3 : vector<8x64xf32> to vector<8x64xbf16>
    %109 = arith.truncf %107 : vector<64x128xf32> to vector<64x128xbf16>
    %cst_47 = arith.constant dense<0.000000e+00> : vector<8x128xf32>
    %110 = tpu.matmul %108, %109, %cst_47 {dimension_numbers = #tpu.dot_dimension_numbers<[1], [0], [0], [1], [0, 0, 1, 1], [], []>} : vector<8x64xbf16>, vector<64x128xbf16>, vector<8x128xf32> -> vector<8x128xf32>
    %c0_48 = arith.constant 0 : index
    %c0_49 = arith.constant 0 : index
    %111 = vector.load %arg14[%c0_48, %c0_49] : memref<1x128xf32, #tpu.memory_space<vmem>>, vector<1x128xf32>
    %112 = vector.broadcast %111 : vector<1x128xf32> to vector<8x128xf32>
    %113 = arith.addf %110, %112 : vector<8x128xf32>
    %114 = vector.extract_strided_slice %113 {offsets = [0, 0], sizes = [8, 64], strides = [1, 1]} : vector<8x128xf32> to vector<8x64xf32>
    %115 = vector.extract_strided_slice %113 {offsets = [0, 64], sizes = [8, 64], strides = [1, 1]} : vector<8x128xf32> to vector<8x64xf32>
    %c0_50 = arith.constant 0 : index
    %c0_51 = arith.constant 0 : index
    %116 = vector.load %arg15[%c0_50, %c0_51] : memref<64x64xf32, #tpu.memory_space<vmem>>, vector<64x64xf32>
    %c0_52 = arith.constant 0 : index
    %c0_53 = arith.constant 0 : index
    %117 = vector.load %arg16[%c0_52, %c0_53] : memref<1x64xf32, #tpu.memory_space<vmem>>, vector<1x64xf32>
    %118 = vector.extract_strided_slice %106 {offsets = [0, 0], sizes = [2, 32], strides = [1, 1]} : vector<2x64xf32> to vector<2x32xf32>
    %cst_54 = arith.constant 0.176776692 : f32
    %119 = vector.broadcast %cst_54 : f32 to vector<2x32xf32>
    %120 = arith.mulf %118, %119 : vector<2x32xf32>
    %121 = vector.extract_strided_slice %114 {offsets = [0, 0], sizes = [8, 32], strides = [1, 1]} : vector<8x64xf32> to vector<8x32xf32>
    %122 = vector.extract_strided_slice %115 {offsets = [0, 0], sizes = [8, 32], strides = [1, 1]} : vector<8x64xf32> to vector<8x32xf32>
    %123 = arith.truncf %120 : vector<2x32xf32> to vector<2x32xbf16>
    %124 = arith.truncf %121 : vector<8x32xf32> to vector<8x32xbf16>
    %cst_55 = arith.constant dense<0.000000e+00> : vector<2x8xf32>
    %125 = tpu.matmul %123, %124, %cst_55 {dimension_numbers = #tpu.dot_dimension_numbers<[1], [1], [0], [0], [0, 0, 1, 0], [], []>} : vector<2x32xbf16>, vector<8x32xbf16>, vector<2x8xf32> -> vector<2x8xf32>
    %126 = arith.addf %125, %7 : vector<2x8xf32>
    %cst_56 = arith.constant dense<0xFF800000> : vector<2xf32>
    %127 = vector.multi_reduction <maximumf>, %126, %cst_56 [1] : vector<2x8xf32> to vector<2xf32>
    %128 = vector.shape_cast %127 : vector<2xf32> to vector<2x1xf32>
    %129 = vector.broadcast %128 : vector<2x1xf32> to vector<2x8xf32>
    %130 = arith.subf %126, %129 : vector<2x8xf32>
    %131 = math.exp %130 : vector<2x8xf32>
    %cst_57 = arith.constant dense<0.000000e+00> : vector<2xf32>
    %132 = vector.multi_reduction <add>, %131, %cst_57 [1] : vector<2x8xf32> to vector<2xf32>
    %133 = vector.shape_cast %132 : vector<2xf32> to vector<2x1xf32>
    %134 = tpu.reciprocal %133 {approx = true} : vector<2x1xf32> -> vector<2x1xf32>
    %135 = vector.broadcast %134 : vector<2x1xf32> to vector<2x8xf32>
    %136 = arith.mulf %131, %135 : vector<2x8xf32>
    %137 = arith.truncf %136 : vector<2x8xf32> to vector<2x8xbf16>
    %138 = arith.truncf %122 : vector<8x32xf32> to vector<8x32xbf16>
    %cst_58 = arith.constant dense<0.000000e+00> : vector<2x32xf32>
    %139 = tpu.matmul %137, %138, %cst_58 {dimension_numbers = #tpu.dot_dimension_numbers<[1], [0], [0], [1], [0, 0, 1, 1], [], []>} : vector<2x8xbf16>, vector<8x32xbf16>, vector<2x32xf32> -> vector<2x32xf32>
    %140 = vector.extract_strided_slice %116 {offsets = [0, 0], sizes = [32, 64], strides = [1, 1]} : vector<64x64xf32> to vector<32x64xf32>
    %141 = arith.truncf %139 : vector<2x32xf32> to vector<2x32xbf16>
    %142 = arith.truncf %140 : vector<32x64xf32> to vector<32x64xbf16>
    %cst_59 = arith.constant dense<0.000000e+00> : vector<2x64xf32>
    %143 = tpu.matmul %141, %142, %cst_59 {dimension_numbers = #tpu.dot_dimension_numbers<[1], [0], [0], [1], [0, 0, 1, 1], [], []>} : vector<2x32xbf16>, vector<32x64xbf16>, vector<2x64xf32> -> vector<2x64xf32>
    %144 = vector.extract_strided_slice %106 {offsets = [0, 32], sizes = [2, 32], strides = [1, 1]} : vector<2x64xf32> to vector<2x32xf32>
    %cst_60 = arith.constant 0.176776692 : f32
    %145 = vector.broadcast %cst_60 : f32 to vector<2x32xf32>
    %146 = arith.mulf %144, %145 : vector<2x32xf32>
    %147 = vector.extract_strided_slice %114 {offsets = [0, 32], sizes = [8, 32], strides = [1, 1]} : vector<8x64xf32> to vector<8x32xf32>
    %148 = vector.extract_strided_slice %115 {offsets = [0, 32], sizes = [8, 32], strides = [1, 1]} : vector<8x64xf32> to vector<8x32xf32>
    %149 = arith.truncf %146 : vector<2x32xf32> to vector<2x32xbf16>
    %150 = arith.truncf %147 : vector<8x32xf32> to vector<8x32xbf16>
    %cst_61 = arith.constant dense<0.000000e+00> : vector<2x8xf32>
    %151 = tpu.matmul %149, %150, %cst_61 {dimension_numbers = #tpu.dot_dimension_numbers<[1], [1], [0], [0], [0, 0, 1, 0], [], []>} : vector<2x32xbf16>, vector<8x32xbf16>, vector<2x8xf32> -> vector<2x8xf32>
    %152 = arith.addf %151, %7 : vector<2x8xf32>
    %cst_62 = arith.constant dense<0xFF800000> : vector<2xf32>
    %153 = vector.multi_reduction <maximumf>, %152, %cst_62 [1] : vector<2x8xf32> to vector<2xf32>
    %154 = vector.shape_cast %153 : vector<2xf32> to vector<2x1xf32>
    %155 = vector.broadcast %154 : vector<2x1xf32> to vector<2x8xf32>
    %156 = arith.subf %152, %155 : vector<2x8xf32>
    %157 = math.exp %156 : vector<2x8xf32>
    %cst_63 = arith.constant dense<0.000000e+00> : vector<2xf32>
    %158 = vector.multi_reduction <add>, %157, %cst_63 [1] : vector<2x8xf32> to vector<2xf32>
    %159 = vector.shape_cast %158 : vector<2xf32> to vector<2x1xf32>
    %160 = tpu.reciprocal %159 {approx = true} : vector<2x1xf32> -> vector<2x1xf32>
    %161 = vector.broadcast %160 : vector<2x1xf32> to vector<2x8xf32>
    %162 = arith.mulf %157, %161 : vector<2x8xf32>
    %163 = arith.truncf %162 : vector<2x8xf32> to vector<2x8xbf16>
    %164 = arith.truncf %148 : vector<8x32xf32> to vector<8x32xbf16>
    %cst_64 = arith.constant dense<0.000000e+00> : vector<2x32xf32>
    %165 = tpu.matmul %163, %164, %cst_64 {dimension_numbers = #tpu.dot_dimension_numbers<[1], [0], [0], [1], [0, 0, 1, 1], [], []>} : vector<2x8xbf16>, vector<8x32xbf16>, vector<2x32xf32> -> vector<2x32xf32>
    %166 = vector.extract_strided_slice %116 {offsets = [32, 0], sizes = [32, 64], strides = [1, 1]} : vector<64x64xf32> to vector<32x64xf32>
    %167 = arith.truncf %165 : vector<2x32xf32> to vector<2x32xbf16>
    %168 = arith.truncf %166 : vector<32x64xf32> to vector<32x64xbf16>
    %cst_65 = arith.constant dense<0.000000e+00> : vector<2x64xf32>
    %169 = tpu.matmul %167, %168, %cst_65 {dimension_numbers = #tpu.dot_dimension_numbers<[1], [0], [0], [1], [0, 0, 1, 1], [], []>} : vector<2x32xbf16>, vector<32x64xbf16>, vector<2x64xf32> -> vector<2x64xf32>
    %170 = arith.addf %143, %169 : vector<2x64xf32>
    %171 = vector.broadcast %117 : vector<1x64xf32> to vector<2x64xf32>
    %172 = arith.addf %170, %171 : vector<2x64xf32>
    %173 = arith.addf %99, %172 : vector<2x64xf32>
    %c0_66 = arith.constant 0 : index
    %c0_67 = arith.constant 0 : index
    %174 = vector.load %arg17[%c0_66, %c0_67] : memref<1x64xf32, #tpu.memory_space<vmem>>, vector<1x64xf32>
    %c0_68 = arith.constant 0 : index
    %c0_69 = arith.constant 0 : index
    %175 = vector.load %arg18[%c0_68, %c0_69] : memref<1x64xf32, #tpu.memory_space<vmem>>, vector<1x64xf32>
    %cst_70 = arith.constant dense<0.000000e+00> : vector<2xf32>
    %176 = vector.multi_reduction <add>, %173, %cst_70 [1] : vector<2x64xf32> to vector<2xf32>
    %177 = vector.shape_cast %176 : vector<2xf32> to vector<2x1xf32>
    %cst_71 = arith.constant 6.400000e+01 : f32
    %178 = vector.broadcast %cst_71 : f32 to vector<2x1xf32>
    %179 = arith.divf %177, %178 : vector<2x1xf32>
    %180 = vector.broadcast %179 : vector<2x1xf32> to vector<2x64xf32>
    %181 = arith.subf %173, %180 : vector<2x64xf32>
    %182 = arith.mulf %181, %181 : vector<2x64xf32>
    %cst_72 = arith.constant dense<0.000000e+00> : vector<2xf32>
    %183 = vector.multi_reduction <add>, %182, %cst_72 [1] : vector<2x64xf32> to vector<2xf32>
    %184 = vector.shape_cast %183 : vector<2xf32> to vector<2x1xf32>
    %cst_73 = arith.constant 6.400000e+01 : f32
    %185 = vector.broadcast %cst_73 : f32 to vector<2x1xf32>
    %186 = arith.divf %184, %185 : vector<2x1xf32>
    %187 = vector.broadcast %179 : vector<2x1xf32> to vector<2x64xf32>
    %188 = arith.subf %173, %187 : vector<2x64xf32>
    %cst_74 = arith.constant 9.99999974E-6 : f32
    %189 = vector.broadcast %cst_74 : f32 to vector<2x1xf32>
    %190 = arith.addf %186, %189 : vector<2x1xf32>
    %191 = math.rsqrt %190 : vector<2x1xf32>
    %192 = vector.broadcast %191 : vector<2x1xf32> to vector<2x64xf32>
    %193 = arith.mulf %188, %192 : vector<2x64xf32>
    %194 = vector.broadcast %174 : vector<1x64xf32> to vector<2x64xf32>
    %195 = arith.mulf %193, %194 : vector<2x64xf32>
    %196 = vector.broadcast %175 : vector<1x64xf32> to vector<2x64xf32>
    %197 = arith.addf %195, %196 : vector<2x64xf32>
    %c0_75 = arith.constant 0 : index
    %c0_76 = arith.constant 0 : index
    %198 = vector.load %arg19[%c0_75, %c0_76] : memref<64x128xf32, #tpu.memory_space<vmem>>, vector<64x128xf32>
    %199 = arith.truncf %197 : vector<2x64xf32> to vector<2x64xbf16>
    %200 = arith.truncf %198 : vector<64x128xf32> to vector<64x128xbf16>
    %cst_77 = arith.constant dense<0.000000e+00> : vector<2x128xf32>
    %201 = tpu.matmul %199, %200, %cst_77 {dimension_numbers = #tpu.dot_dimension_numbers<[1], [0], [0], [1], [0, 0, 1, 1], [], []>} : vector<2x64xbf16>, vector<64x128xbf16>, vector<2x128xf32> -> vector<2x128xf32>
    %c0_78 = arith.constant 0 : index
    %c0_79 = arith.constant 0 : index
    %202 = vector.load %arg20[%c0_78, %c0_79] : memref<1x128xf32, #tpu.memory_space<vmem>>, vector<1x128xf32>
    %203 = vector.broadcast %202 : vector<1x128xf32> to vector<2x128xf32>
    %204 = arith.addf %201, %203 : vector<2x128xf32>
    %205 = arith.mulf %204, %204 : vector<2x128xf32>
    %206 = arith.mulf %204, %205 : vector<2x128xf32>
    %cst_80 = arith.constant 4.471500e-02 : f32
    %207 = vector.broadcast %cst_80 : f32 to vector<2x128xf32>
    %208 = arith.mulf %207, %206 : vector<2x128xf32>
    %209 = arith.addf %204, %208 : vector<2x128xf32>
    %cst_81 = arith.constant 0.797884583 : f32
    %210 = vector.broadcast %cst_81 : f32 to vector<2x128xf32>
    %211 = arith.mulf %210, %209 : vector<2x128xf32>
    %212 = math.tanh %211 : vector<2x128xf32>
    %cst_82 = arith.constant 1.000000e+00 : f32
    %213 = vector.broadcast %cst_82 : f32 to vector<2x128xf32>
    %214 = arith.addf %213, %212 : vector<2x128xf32>
    %cst_83 = arith.constant 5.000000e-01 : f32
    %215 = vector.broadcast %cst_83 : f32 to vector<2x128xf32>
    %216 = arith.mulf %215, %214 : vector<2x128xf32>
    %217 = arith.mulf %204, %216 : vector<2x128xf32>
    %c0_84 = arith.constant 0 : index
    %c0_85 = arith.constant 0 : index
    %218 = vector.load %arg21[%c0_84, %c0_85] : memref<128x64xf32, #tpu.memory_space<vmem>>, vector<128x64xf32>
    %219 = arith.truncf %217 : vector<2x128xf32> to vector<2x128xbf16>
    %220 = arith.truncf %218 : vector<128x64xf32> to vector<128x64xbf16>
    %cst_86 = arith.constant dense<0.000000e+00> : vector<2x64xf32>
    %221 = tpu.matmul %219, %220, %cst_86 {dimension_numbers = #tpu.dot_dimension_numbers<[1], [0], [0], [1], [0, 0, 1, 1], [], []>} : vector<2x128xbf16>, vector<128x64xbf16>, vector<2x64xf32> -> vector<2x64xf32>
    %c0_87 = arith.constant 0 : index
    %c0_88 = arith.constant 0 : index
    %222 = vector.load %arg22[%c0_87, %c0_88] : memref<1x64xf32, #tpu.memory_space<vmem>>, vector<1x64xf32>
    %223 = vector.broadcast %222 : vector<1x64xf32> to vector<2x64xf32>
    %224 = arith.addf %221, %223 : vector<2x64xf32>
    %225 = arith.addf %197, %224 : vector<2x64xf32>
    %c0_89 = arith.constant 0 : index
    %c0_90 = arith.constant 0 : index
    %226 = vector.load %arg23[%c0_89, %c0_90] : memref<1x64xf32, #tpu.memory_space<vmem>>, vector<1x64xf32>
    %c0_91 = arith.constant 0 : index
    %c0_92 = arith.constant 0 : index
    %227 = vector.load %arg24[%c0_91, %c0_92] : memref<1x64xf32, #tpu.memory_space<vmem>>, vector<1x64xf32>
    %cst_93 = arith.constant dense<0.000000e+00> : vector<2xf32>
    %228 = vector.multi_reduction <add>, %225, %cst_93 [1] : vector<2x64xf32> to vector<2xf32>
    %229 = vector.shape_cast %228 : vector<2xf32> to vector<2x1xf32>
    %cst_94 = arith.constant 6.400000e+01 : f32
    %230 = vector.broadcast %cst_94 : f32 to vector<2x1xf32>
    %231 = arith.divf %229, %230 : vector<2x1xf32>
    %232 = vector.broadcast %231 : vector<2x1xf32> to vector<2x64xf32>
    %233 = arith.subf %225, %232 : vector<2x64xf32>
    %234 = arith.mulf %233, %233 : vector<2x64xf32>
    %cst_95 = arith.constant dense<0.000000e+00> : vector<2xf32>
    %235 = vector.multi_reduction <add>, %234, %cst_95 [1] : vector<2x64xf32> to vector<2xf32>
    %236 = vector.shape_cast %235 : vector<2xf32> to vector<2x1xf32>
    %cst_96 = arith.constant 6.400000e+01 : f32
    %237 = vector.broadcast %cst_96 : f32 to vector<2x1xf32>
    %238 = arith.divf %236, %237 : vector<2x1xf32>
    %239 = vector.broadcast %231 : vector<2x1xf32> to vector<2x64xf32>
    %240 = arith.subf %225, %239 : vector<2x64xf32>
    %cst_97 = arith.constant 9.99999974E-6 : f32
    %241 = vector.broadcast %cst_97 : f32 to vector<2x1xf32>
    %242 = arith.addf %238, %241 : vector<2x1xf32>
    %243 = math.rsqrt %242 : vector<2x1xf32>
    %244 = vector.broadcast %243 : vector<2x1xf32> to vector<2x64xf32>
    %245 = arith.mulf %240, %244 : vector<2x64xf32>
    %246 = vector.broadcast %226 : vector<1x64xf32> to vector<2x64xf32>
    %247 = arith.mulf %245, %246 : vector<2x64xf32>
    %248 = vector.broadcast %227 : vector<1x64xf32> to vector<2x64xf32>
    %249 = arith.addf %247, %248 : vector<2x64xf32>
    %c0_98 = arith.constant 0 : index
    %c0_99 = arith.constant 0 : index
    %c0_100 = arith.constant 0 : index
    %250 = vector.load %arg25[%c0_98, %c0_99, %c0_100] : memref<1x2x64xf32, #tpu.memory_space<vmem>>, vector<1x2x64xf32>
    %251 = vector.shape_cast %250 : vector<1x2x64xf32> to vector<2x64xf32>
    %252 = vector.shape_cast %249 : vector<2x64xf32> to vector<1x2x64xf32>
    tpu.vector_store %arg25[%c0_98, %c0_99, %c0_100], %252 {strides = array<i32>} : memref<1x2x64xf32, #tpu.memory_space<vmem>>, vector<1x2x64xf32>,
    return
  }
  func.func @transform_0(%arg0: i32) -> (i32, i32, i32) {
    %c0_i32 = arith.constant 0 : i32
    %c0_i32_0 = arith.constant 0 : i32
    %c0_i32_1 = arith.constant 0 : i32
    return %arg0, %c0_i32, %c0_i32_0 : i32, i32, i32
  }
  func.func @transform_1(%arg0: i32) -> (i32, i32, i32) {
    %c0_i32 = arith.constant 0 : i32
    %c0_i32_0 = arith.constant 0 : i32
    %c0_i32_1 = arith.constant 0 : i32
    return %arg0, %c0_i32, %c0_i32_0 : i32, i32, i32
  }
  func.func @transform_2(%arg0: i32) -> (i32, i32, i32) {
    %c0_i32 = arith.constant 0 : i32
    %c0_i32_0 = arith.constant 0 : i32
    %c0_i32_1 = arith.constant 0 : i32
    return %arg0, %c0_i32, %c0_i32_0 : i32, i32, i32
  }
  func.func @transform_3(%arg0: i32) -> (i32, i32, i32) {
    %c0_i32 = arith.constant 0 : i32
    %c0_i32_0 = arith.constant 0 : i32
    %c0_i32_1 = arith.constant 0 : i32
    return %arg0, %c0_i32, %c0_i32_0 : i32, i32, i32
  }
  func.func @transform_4(%arg0: i32) -> (i32, i32) {
    %c0_i32 = arith.constant 0 : i32
    %c0_i32_0 = arith.constant 0 : i32
    %c0_i32_1 = arith.constant 0 : i32
    return %c0_i32, %c0_i32_0 : i32, i32
  }
  func.func @transform_5(%arg0: i32) -> (i32, i32) {
    %c0_i32 = arith.constant 0 : i32
    %c0_i32_0 = arith.constant 0 : i32
    %c0_i32_1 = arith.constant 0 : i32
    return %c0_i32, %c0_i32_0 : i32, i32
  }
  func.func @transform_6(%arg0: i32) -> (i32, i32) {
    %c0_i32 = arith.constant 0 : i32
    %c0_i32_0 = arith.constant 0 : i32
    %c0_i32_1 = arith.constant 0 : i32
    return %c0_i32, %c0_i32_0 : i32, i32
  }
  func.func @transform_7(%arg0: i32) -> (i32, i32) {
    %c0_i32 = arith.constant 0 : i32
    %c0_i32_0 = arith.constant 0 : i32
    %c0_i32_1 = arith.constant 0 : i32
    return %c0_i32, %c0_i32_0 : i32, i32
  }
  func.func @transform_8(%arg0: i32) -> (i32, i32) {
    %c0_i32 = arith.constant 0 : i32
    %c0_i32_0 = arith.constant 0 : i32
    %c0_i32_1 = arith.constant 0 : i32
    return %c0_i32, %c0_i32_0 : i32, i32
  }
  func.func @transform_9(%arg0: i32) -> (i32, i32) {
    %c0_i32 = arith.constant 0 : i32
    %c0_i32_0 = arith.constant 0 : i32
    %c0_i32_1 = arith.constant 0 : i32
    return %c0_i32, %c0_i32_0 : i32, i32
  }
  func.func @transform_10(%arg0: i32) -> (i32, i32) {
    %c0_i32 = arith.constant 0 : i32
    %c0_i32_0 = arith.constant 0 : i32
    %c0_i32_1 = arith.constant 0 : i32
    return %c0_i32, %c0_i32_0 : i32, i32
  }
  func.func @transform_11(%arg0: i32) -> (i32, i32) {
    %c0_i32 = arith.constant 0 : i32
    %c0_i32_0 = arith.constant 0 : i32
    %c0_i32_1 = arith.constant 0 : i32
    return %c0_i32, %c0_i32_0 : i32, i32
  }
  func.func @transform_12(%arg0: i32) -> (i32, i32) {
    %c0_i32 = arith.constant 0 : i32
    %c0_i32_0 = arith.constant 0 : i32
    %c0_i32_1 = arith.constant 0 : i32
    return %c0_i32, %c0_i32_0 : i32, i32
  }
  func.func @transform_13(%arg0: i32) -> (i32, i32) {
    %c0_i32 = arith.constant 0 : i32
    %c0_i32_0 = arith.constant 0 : i32
    %c0_i32_1 = arith.constant 0 : i32
    return %c0_i32, %c0_i32_0 : i32, i32
  }
  func.func @transform_14(%arg0: i32) -> (i32, i32) {
    %c0_i32 = arith.constant 0 : i32
    %c0_i32_0 = arith.constant 0 : i32
    %c0_i32_1 = arith.constant 0 : i32
    return %c0_i32, %c0_i32_0 : i32, i32
  }
  func.func @transform_15(%arg0: i32) -> (i32, i32) {
    %c0_i32 = arith.constant 0 : i32
    %c0_i32_0 = arith.constant 0 : i32
    %c0_i32_1 = arith.constant 0 : i32
    return %c0_i32, %c0_i32_0 : i32, i32
  }
  func.func @transform_16(%arg0: i32) -> (i32, i32) {
    %c0_i32 = arith.constant 0 : i32
    %c0_i32_0 = arith.constant 0 : i32
    %c0_i32_1 = arith.constant 0 : i32
    return %c0_i32, %c0_i32_0 : i32, i32
  }
  func.func @transform_17(%arg0: i32) -> (i32, i32) {
    %c0_i32 = arith.constant 0 : i32
    %c0_i32_0 = arith.constant 0 : i32
    %c0_i32_1 = arith.constant 0 : i32
    return %c0_i32, %c0_i32_0 : i32, i32
  }
  func.func @transform_18(%arg0: i32) -> (i32, i32) {
    %c0_i32 = arith.constant 0 : i32
    %c0_i32_0 = arith.constant 0 : i32
    %c0_i32_1 = arith.constant 0 : i32
    return %c0_i32, %c0_i32_0 : i32, i32
  }
  func.func @transform_19(%arg0: i32) -> (i32, i32) {
    %c0_i32 = arith.constant 0 : i32
    %c0_i32_0 = arith.constant 0 : i32
    %c0_i32_1 = arith.constant 0 : i32
    return %c0_i32, %c0_i32_0 : i32, i32
  }
  func.func @transform_20(%arg0: i32) -> (i32, i32) {
    %c0_i32 = arith.constant 0 : i32
    %c0_i32_0 = arith.constant 0 : i32
    %c0_i32_1 = arith.constant 0 : i32
    return %c0_i32, %c0_i32_0 : i32, i32
  }
  func.func @transform_21(%arg0: i32) -> (i32, i32) {
    %c0_i32 = arith.constant 0 : i32
    %c0_i32_0 = arith.constant 0 : i32
    %c0_i32_1 = arith.constant 0 : i32
    return %c0_i32, %c0_i32_0 : i32, i32
  }
  func.func @transform_22(%arg0: i32) -> (i32, i32) {
    %c0_i32 = arith.constant 0 : i32
    %c0_i32_0 = arith.constant 0 : i32
    %c0_i32_1 = arith.constant 0 : i32
    return %c0_i32, %c0_i32_0 : i32, i32
  }
  func.func @transform_23(%arg0: i32) -> (i32, i32) {
    %c0_i32 = arith.constant 0 : i32
    %c0_i32_0 = arith.constant 0 : i32
    %c0_i32_1 = arith.constant 0 : i32
    return %c0_i32, %c0_i32_0 : i32, i32
  }
  func.func @transform_24(%arg0: i32) -> (i32, i32, i32) {
    %c0_i32 = arith.constant 0 : i32
    %c0_i32_0 = arith.constant 0 : i32
    %c0_i32_1 = arith.constant 0 : i32
    return %arg0, %c0_i32, %c0_i32_0 : i32, i32, i32
  }
}

module attributes {stable_mosaic.version = 11 : i64} {
  func.func @_lm_head_ce_kernel(%arg0: i32, %arg1: memref<4x64xf32, #tpu.memory_space<vmem>>, %arg2: memref<128x64xf32, #tpu.memory_space<vmem>>, %arg3: memref<1x128xf32, #tpu.memory_space<vmem>>, %arg4: memref<4x1xi32, #tpu.memory_space<vmem>>, %arg5: memref<4x128xf32, #tpu.memory_space<vmem>>, %arg6: memref<4x1xf32, #tpu.memory_space<vmem>>) attributes {dimension_semantics = [#tpu.dimension_semantics<arbitrary>], iteration_bounds = array<i64: 1>, scalar_prefetch = 0 : i64, scratch_operands = 0 : i64, tpu.core_type = #tpu.core_type<tc>, window_params = [{pipeline_mode = #tpu.pipeline_mode<synchronous>, transform_indices = @transform_0, window_bounds = array<i64: 4, 64>}, {pipeline_mode = #tpu.pipeline_mode<synchronous>, transform_indices = @transform_1, window_bounds = array<i64: 128, 64>}, {pipeline_mode = #tpu.pipeline_mode<synchronous>, transform_indices = @transform_2, window_bounds = array<i64: 1, 128>}, {pipeline_mode = #tpu.pipeline_mode<synchronous>, transform_indices = @transform_3, window_bounds = array<i64: 4, 1>}, {pipeline_mode = #tpu.pipeline_mode<synchronous>, transform_indices = @transform_4, window_bounds = array<i64: 4, 128>}, {pipeline_mode = #tpu.pipeline_mode<synchronous>, transform_indices = @transform_5, window_bounds = array<i64: 4, 1>}]} {
    %c0 = arith.constant 0 : index
    %c0_0 = arith.constant 0 : index
    %0 = vector.load %arg1[%c0, %c0_0] : memref<4x64xf32, #tpu.memory_space<vmem>>, vector<4x64xf32>
    %c0_1 = arith.constant 0 : index
    %c0_2 = arith.constant 0 : index
    %1 = vector.load %arg2[%c0_1, %c0_2] : memref<128x64xf32, #tpu.memory_space<vmem>>, vector<128x64xf32>
    %2 = arith.truncf %0 : vector<4x64xf32> to vector<4x64xbf16>
    %3 = arith.truncf %1 : vector<128x64xf32> to vector<128x64xbf16>
    %cst = arith.constant dense<0.000000e+00> : vector<4x128xf32>
    %4 = tpu.matmul %2, %3, %cst {dimension_numbers = #tpu.dot_dimension_numbers<[1], [1], [0], [0], [0, 0, 1, 0], [], []>} : vector<4x64xbf16>, vector<128x64xbf16>, vector<4x128xf32> -> vector<4x128xf32>
    %c0_3 = arith.constant 0 : index
    %c0_4 = arith.constant 0 : index
    %5 = vector.load %arg3[%c0_3, %c0_4] : memref<1x128xf32, #tpu.memory_space<vmem>>, vector<1x128xf32>
    %6 = vector.broadcast %5 : vector<1x128xf32> to vector<4x128xf32>
    %7 = arith.addf %4, %6 : vector<4x128xf32>
    %c0_5 = arith.constant 0 : index
    %c0_6 = arith.constant 0 : index
    %8 = vector.load %arg5[%c0_5, %c0_6] : memref<4x128xf32, #tpu.memory_space<vmem>>, vector<4x128xf32>
    tpu.vector_store %arg5[%c0_5, %c0_6], %7 {strides = array<i32>} : memref<4x128xf32, #tpu.memory_space<vmem>>, vector<4x128xf32>,
    %c0_7 = arith.constant 0 : index
    %c0_8 = arith.constant 0 : index
    %9 = vector.load %arg4[%c0_7, %c0_8] : memref<4x1xi32, #tpu.memory_space<vmem>>, vector<4x1xi32>
    %cst_9 = arith.constant dense<0xFF800000> : vector<4xf32>
    %10 = vector.multi_reduction <maximumf>, %7, %cst_9 [1] : vector<4x128xf32> to vector<4xf32>
    %11 = vector.shape_cast %10 : vector<4xf32> to vector<4x1xf32>
    %12 = vector.broadcast %11 : vector<4x1xf32> to vector<4x128xf32>
    %13 = arith.subf %7, %12 : vector<4x128xf32>
    %14 = math.exp %13 : vector<4x128xf32>
    %cst_10 = arith.constant dense<0.000000e+00> : vector<4xf32>
    %15 = vector.multi_reduction <add>, %14, %cst_10 [1] : vector<4x128xf32> to vector<4xf32>
    %16 = vector.shape_cast %15 : vector<4xf32> to vector<4x1xf32>
    %17 = math.log %16 : vector<4x1xf32>
    %18 = arith.addf %17, %11 : vector<4x1xf32>
    %19 = tpu.iota {dimensions = array<i32: 1>} : vector<4x128xi32>
    %20 = vector.broadcast %9 : vector<4x1xi32> to vector<4x128xi32>
    %21 = arith.cmpi eq, %19, %20 : vector<4x128xi32>
    %cst_11 = arith.constant 0.000000e+00 : f32
    %22 = vector.broadcast %cst_11 : f32 to vector<4x128xf32>
    %23 = arith.select %21, %7, %22 : vector<4x128xi1>, vector<4x128xf32>
    %cst_12 = arith.constant dense<0.000000e+00> : vector<4xf32>
    %24 = vector.multi_reduction <add>, %23, %cst_12 [1] : vector<4x128xf32> to vector<4xf32>
    %25 = vector.shape_cast %24 : vector<4xf32> to vector<4x1xf32>
    %c-100_i32 = arith.constant -100 : i32
    %26 = vector.broadcast %c-100_i32 : i32 to vector<4x1xi32>
    %27 = arith.cmpi ne, %9, %26 : vector<4x1xi32>
    %28 = arith.extui %27 : vector<4x1xi1> to vector<4x1xi32>
    %29 = arith.sitofp %28 : vector<4x1xi32> to vector<4x1xf32>
    %30 = arith.subf %18, %25 : vector<4x1xf32>
    %31 = arith.mulf %30, %29 : vector<4x1xf32>
    %c0_13 = arith.constant 0 : index
    %c0_14 = arith.constant 0 : index
    %32 = vector.load %arg6[%c0_13, %c0_14] : memref<4x1xf32, #tpu.memory_space<vmem>>, vector<4x1xf32>
    tpu.vector_store %arg6[%c0_13, %c0_14], %31 {strides = array<i32>} : memref<4x1xf32, #tpu.memory_space<vmem>>, vector<4x1xf32>,
    return
  }
  func.func @transform_0(%arg0: i32) -> (i32, i32) {
    %c0_i32 = arith.constant 0 : i32
    %c0_i32_0 = arith.constant 0 : i32
    %c0_i32_1 = arith.constant 0 : i32
    return %c0_i32, %c0_i32_0 : i32, i32
  }
  func.func @transform_1(%arg0: i32) -> (i32, i32) {
    %c0_i32 = arith.constant 0 : i32
    %c0_i32_0 = arith.constant 0 : i32
    %c0_i32_1 = arith.constant 0 : i32
    return %c0_i32, %c0_i32_0 : i32, i32
  }
  func.func @transform_2(%arg0: i32) -> (i32, i32) {
    %c0_i32 = arith.constant 0 : i32
    %c0_i32_0 = arith.constant 0 : i32
    %c0_i32_1 = arith.constant 0 : i32
    return %c0_i32, %c0_i32_0 : i32, i32
  }
  func.func @transform_3(%arg0: i32) -> (i32, i32) {
    %c0_i32 = arith.constant 0 : i32
    %c0_i32_0 = arith.constant 0 : i32
    %c0_i32_1 = arith.constant 0 : i32
    return %c0_i32, %c0_i32_0 : i32, i32
  }
  func.func @transform_4(%arg0: i32) -> (i32, i32) {
    %c0_i32 = arith.constant 0 : i32
    %c0_i32_0 = arith.constant 0 : i32
    %c0_i32_1 = arith.constant 0 : i32
    return %c0_i32, %c0_i32_0 : i32, i32
  }
  func.func @transform_5(%arg0: i32) -> (i32, i32) {
    %c0_i32 = arith.constant 0 : i32
    %c0_i32_0 = arith.constant 0 : i32
    %c0_i32_1 = arith.constant 0 : i32
    return %c0_i32, %c0_i32_0 : i32, i32
  }
}

</mosaic_0001>

<bundles_post_ra>
// kernel: rag_verifier_forward.7
= control target key start
LH: loop header
LB: loop body
LE: loop exit
PB: predicated region body
PF: predicated region fallthrough
CT: control target
= control target key end

     0   :  { %vm17_vm0 = vcmask 519168   ;;  %v67_v2 = vmov 64.0   ;;  %s103_s0 = inlined_call_operand.vmem [shape: f32[4,64], index: 0, kind: input, shape index: {}]   ;;  %s104_s1 = inlined_call_operand.vmem [shape: f32[1,64], index: 1, kind: input, shape index: {}]   ;;  %s105_s2 = inlined_call_operand.vmem [shape: f32[1,64], index: 2, kind: input, shape index: {}]   ;;  %s106_s3 = inlined_call_operand.vmem [shape: f32[4,64], index: 3, kind: output, shape index: {}]  }
   0x1   :  { %v14_v0 = vld [vmem:[%s103_s0] sm:$0xf]  ;;  %63 = vrcp.f32 %v67_v2 }
   0x2   :  { %v18_v1 = vsel %vm17_vm0, %v14_v0, 0.0  ;;  %v61_v23 = vld [vmem:[%s104_s1] ss:$0 sm:$0xff] }
   0x3   :  { %19 = vadd.xlane.f32.xlu0 %v18_v1  ;;  %v62_v25 = vld [vmem:[%s105_s2] ss:$0 sm:$0xff] }
   0x7   :  { %v64_v3 = vpop.eup %63 }
   0x8   :  { %v22_v4 = vmul.f32 64.0, %v64_v3  ;;  %vm26_vm1 = vweird.f32 %v64_v3 }
   0xa   :  { %v23_v5 = vsub.f32 1.0, %v22_v4 }
   0xc   :  { %v24_v6 = vmul.f32 %v64_v3, %v23_v5 }
   0xe   :  { %v25_v7 = vadd.f32 %v64_v3, %v24_v6 }
  0x10   :  { %v27_v8 = vsel %vm26_vm1, %v64_v3, %v25_v7 }
  0x76   :  { %v20_v9 = vpop.xlane.xlu0 %19 }
  0x77   :  { %v28_v10 = vmul.f32 %v27_v8, %v20_v9 }
  0x79   :  { %v29_v11 = vsub.f32 %v14_v0, %v28_v10 }
  0x7b   :  { %v30_v12 = vmul.f32 %v29_v11, %v29_v11 }
  0x7d   :  { %v31_v13 = vsel %vm17_vm0, %v30_v12, 0.0 }
  0x7e   :  { %32 = vadd.xlane.f32.xlu0 %v31_v13 }
  0xf1   :  { %v33_v14 = vpop.xlane.xlu0 %32 }
  0xf2   :  { %v34_v15 = vmul.f32 %v33_v14, %v27_v8 }
  0xf4   :  { %v35_v16 = vadd.f32 1e-05, %v34_v15 }
  0xf6   :  { %65 = vrsqrt.f32 %v35_v16  ;;  %vm42_vm3 = vweird.f32 %v35_v16 }
  0xfc   :  { %v66_v17 = vpop.eup %65 }
  0xfd   :  { %v37_v18 = vmul.f32 %v66_v17, %v35_v16  ;;  %vm43_vm2 = vweird.f32 %v66_v17 }
  0xfe   :  { %vm44_vm4 = vmor %vm42_vm3, %vm43_vm2 }
  0xff   :  { %v38_v19 = vmul.f32 %v66_v17, %v37_v18 }
 0x101   :  { %v39_v20 = vmul.f32 0.5, %v38_v19 }
 0x103   :  { %v40_v21 = vsub.f32 1.5, %v39_v20 }
 0x105   :  { %v41_v22 = vmul.f32 %v66_v17, %v40_v21 }
 0x107   :  { %v45_v24 = vsel %vm44_vm4, %v66_v17, %v41_v22 }
 0x108   :  { %v46_v26 = vmul.f32 %v45_v24, %v29_v11 }
 0x10a   :  { %v50_v27 = vmul.f32 %v61_v23, %v46_v26 }
 0x10c   :  { %v54_v28 = vadd.f32 %v62_v25, %v50_v27 }
 0x10e   :  { %55 = vst.msk [vmem:[%s106_s3] sm:$0xf] %vm17_vm0, %v54_v28 }

// kernel: rag_verifier_forward.5
= control target key start
LH: loop header
LB: loop body
LE: loop exit
PB: predicated region body
PF: predicated region fallthrough
CT: control target
= control target key end

     0   :  { %vm18_vm0 = vcmask 523264   ;;  %v95_v4 = vmov 64.0   ;;  %s140_s0 = inlined_call_operand.vmem [shape: f32[16,64], index: 0, kind: input, shape index: {}]   ;;  %s141_s1 = inlined_call_operand.vmem [shape: f32[1,64], index: 1, kind: input, shape index: {}]   ;;  %s142_s2 = inlined_call_operand.vmem [shape: f32[1,64], index: 2, kind: input, shape index: {}]   ;;  %s143_s3 = inlined_call_operand.vmem [shape: f32[16,64], index: 3, kind: output, shape index: {}]  }
   0x1   :  { %v14_v0 = vld [vmem:[%s140_s0] sm:$0xff]  ;;  %v15_v2 = vld [vmem:[%s140_s0 + $0x8] sm:$0xff]  ;;  %89 = vrcp.f32 %v95_v4 }
   0x2   :  { %v19_v1 = vsel %vm18_vm0, %v14_v0, 0.0  ;;  %v22_v3 = vsel %vm18_vm0, %v15_v2, 0.0  ;;  %v87_v35 = vld [vmem:[%s141_s1] ss:$0 sm:$0xff] }
   0x3   :  { %20 = vadd.xlane.f32.xlu0 %v19_v1  ;;  %v88_v38 = vld [vmem:[%s142_s2] ss:$0 sm:$0xff] }
   0x7   :  { %v90_v5 = vpop.eup %89 }
   0x8   :  { %v26_v6 = vmul.f32 64.0, %v90_v5  ;;  %vm30_vm1 = vweird.f32 %v90_v5 }
   0xa   :  { %v27_v7 = vsub.f32 1.0, %v26_v6 }
   0xb   :  { %23 = vadd.xlane.f32.xlu0 %v22_v3 }
   0xc   :  { %v28_v8 = vmul.f32 %v90_v5, %v27_v7 }
   0xe   :  { %v29_v9 = vadd.f32 %v90_v5, %v28_v8 }
  0x10   :  { %v31_v10 = vsel %vm30_vm1, %v90_v5, %v29_v9 }
  0x76   :  { %v21_v11 = vpop.xlane.xlu0 %20 }
  0x77   :  { %v32_v12 = vmul.f32 %v31_v10, %v21_v11 }
  0x79   :  { %v34_v13 = vsub.f32 %v14_v0, %v32_v12 }
  0x7b   :  { %v36_v14 = vmul.f32 %v34_v13, %v34_v13 }
  0x7d   :  { %v38_v15 = vsel %vm18_vm0, %v36_v14, 0.0 }
  0x7e   :  { %39 = vadd.xlane.f32.xlu1 %v38_v15  ;;  %v24_v16 = vpop.xlane.xlu0 %23 }
  0x7f   :  { %v33_v17 = vmul.f32 %v31_v10, %v24_v16 }
  0x81   :  { %v35_v18 = vsub.f32 %v15_v2, %v33_v17 }
  0x83   :  { %v37_v19 = vmul.f32 %v35_v18, %v35_v18 }
  0x85   :  { %v41_v20 = vsel %vm18_vm0, %v37_v19, 0.0 }
  0x86   :  { %42 = vadd.xlane.f32.xlu1 %v41_v20 }
  0xf1   :  { %v40_v21 = vpop.xlane.xlu1 %39 }
  0xf2   :  { %v44_v22 = vmul.f32 %v40_v21, %v31_v10 }
  0xf4   :  { %v46_v23 = vadd.f32 1e-05, %v44_v22 }
  0xf6   :  { %91 = vrsqrt.f32 %v46_v23  ;;  %vm54_vm3 = vweird.f32 %v46_v23 }
  0xf9   :  { %v43_v24 = vpop.xlane.xlu1 %42 }
  0xfa   :  { %v45_v25 = vmul.f32 %v43_v24, %v31_v10 }
  0xfc   :  { %v92_v26 = vpop.eup %91  ;;  %v47_v27 = vadd.f32 1e-05, %v45_v25 }
  0xfd   :  { %v49_v28 = vmul.f32 %v92_v26, %v46_v23  ;;  %vm55_vm2 = vweird.f32 %v92_v26 }
  0xfe   :  { %93 = vrsqrt.f32 %v47_v27  ;;  %vm56_vm4 = vmor %vm54_vm3, %vm55_vm2  ;;  %vm64_vm6 = vweird.f32 %v47_v27 }
  0xff   :  { %v50_v29 = vmul.f32 %v92_v26, %v49_v28 }
 0x101   :  { %v51_v30 = vmul.f32 0.5, %v50_v29 }
 0x103   :  { %v52_v31 = vsub.f32 1.5, %v51_v30 }
 0x104   :  { %v94_v32 = vpop.eup %93 }
 0x105   :  { %v53_v33 = vmul.f32 %v92_v26, %v52_v31  ;;  %v59_v34 = vmul.f32 %v94_v32, %v47_v27  ;;  %vm65_vm5 = vweird.f32 %v94_v32 }
 0x106   :  { %vm66_vm7 = vmor %vm64_vm6, %vm65_vm5 }
 0x107   :  { %v57_v36 = vsel %vm56_vm4, %v92_v26, %v53_v33  ;;  %v60_v37 = vmul.f32 %v94_v32, %v59_v34 }
 0x108   :  { %v68_v39 = vmul.f32 %v57_v36, %v34_v13 }
 0x109   :  { %v61_v40 = vmul.f32 0.5, %v60_v37 }
 0x10a   :  { %v73_v41 = vmul.f32 %v87_v35, %v68_v39 }
 0x10b   :  { %v62_v42 = vsub.f32 1.5, %v61_v40 }
 0x10c   :  { %v78_v43 = vadd.f32 %v88_v38, %v73_v41 }
 0x10d   :  { %v63_v44 = vmul.f32 %v94_v32, %v62_v42 }
 0x10e   :  { %80 = vst.msk [vmem:[%s143_s3] sm:$0xff] %vm18_vm0, %v78_v43 }
 0x10f   :  { %v67_v45 = vsel %vm66_vm7, %v94_v32, %v63_v44 }
 0x110   :  { %v69_v46 = vmul.f32 %v67_v45, %v35_v18 }
 0x112   :  { %v74_v47 = vmul.f32 %v87_v35, %v69_v46 }
 0x114   :  { %v79_v48 = vadd.f32 %v88_v38, %v74_v47 }
 0x116   :  { %81 = vst.msk [vmem:[%s143_s3 + $0x8] sm:$0xff] %vm18_vm0, %v79_v48 }

// kernel: rag_verifier_forward.6
= control target key start
LH: loop header
LB: loop body
LE: loop exit
PB: predicated region body
PF: predicated region fallthrough
CT: control target
= control target key end

     0   :  { %s1077_s29 = smov 0   ;;  %s1305_s0 = inlined_call_operand.vmem [shape: f32[2,8,64], index: 0, kind: input, shape index: {}]   ;;  %s1306_s1 = inlined_call_operand.vmem [shape: f32[2,8,8], index: 1, kind: input, shape index: {}]   ;;  %s1307_s2 = inlined_call_operand.vmem [shape: f32[64,192], index: 2, kind: input, shape index: {}]   ;;  %s1308_s3 = inlined_call_operand.vmem [shape: f32[1,192], index: 3, kind: input, shape index: {}]   ;;  %s1309_s4 = inlined_call_operand.vmem [shape: f32[64,64], index: 4, kind: input, shape index: {}]   ;;  %s1310_s5 = inlined_call_operand.vmem [shape: f32[1,64], index: 5, kind: input, shape index: {}]   ;;  %s1311_s6 = inlined_call_operand.vmem [shape: f32[1,64], index: 6, kind: input, shape index: {}]   ;;  %s1312_s7 = inlined_call_operand.vmem [shape: f32[1,64], index: 7, kind: input, shape index: {}]   ;;  %s1313_s8 = inlined_call_operand.vmem [shape: f32[64,128], index: 8, kind: input, shape index: {}]   ;;  %s1314_s9 = inlined_call_operand.vmem [shape: f32[1,128], index: 9, kind: input, shape index: {}]   ;;  %s1315_s10 = inlined_call_operand.vmem [shape: f32[128,64], index: 10, kind: input, shape index: {}]   ;;  %s1316_s11 = inlined_call_operand.vmem [shape: f32[1,64], index: 11, kind: input, shape index: {}]   ;;  %s1317_s12 = inlined_call_operand.vmem [shape: f32[1,64], index: 12, kind: input, shape index: {}]   ;;  %s1318_s13 = inlined_call_operand.vmem [shape: f32[1,64], index: 13, kind: input, shape index: {}]   ;;  %s1319_s14 = inlined_call_operand.vmem [shape: f32[2,8,64], index: 14, kind: output, shape index: {}]  }
   0x1 LB: > { %s936_s30 = sadd.s32 4294967295, %s996_s29   ;;  %p940_p0 = scmp.ge.s32.totalorder %s996_s29, 1  ;;  %s996_s29 = sphi %s1077_s29, %s24_s29  }
   0x2   : > { %p420_p1 = scmp.lt.s32.totalorder %s996_s29, 3 }
   0x4   : > { %p421_p2 = pnand %p940_p0, %p420_p1 }
   0x5   : > { %p468_p3 = scmp.lt.s32.totalorder (!%p421_p2), %s936_s30, 1  ;;  %s998_s22 = smov (!%p421_p2), 64  }
   0x6   : > { %424 = sbr.rel (%p421_p2) target bundleno = 2177 (0x881), region = 76  ;;  %s999_s23 = smov (!%p421_p2), 96  }
   0x7   : > { %s1000_s17 = smov (!%p421_p2), 32  }
   0xb   : > { %v495_v0 = vld [vmem:[%s1307_s2 + $0x60] sm:$0xff]  ;;  %v497_v1 = vld [vmem:[%s1307_s2 + $0x70] sm:$0xff]  ;;  %s1321_s30 = smov (!%p468_p3, %s936_s30), 1  ;;  %vm514_vm0 = vcmask 523264   ;;  %vm559_vm1 = vcmask 261120   ;;  %v496_v24 = vld [vmem:[%s1307_s2 + $0x68] sm:$0xff] }
   0xc   : > { %v491_v2 = vld [vmem:[%s1307_s2 + $0x40] sm:$0xff]  ;;  %v506_v3 = vpack.c.bf16 %v497_v1, %v495_v0  ;;  %v493_v4 = vld [vmem:[%s1307_s2 + $0x50] sm:$0xff]  ;;  %s1103_s27 = sshll.u32 %s1321_s30, 3  ;;  %v498_v25 = vld [vmem:[%s1307_s2 + $0x78] sm:$0xff]  ;;  %vm579_vm2 = vcmask 64512   ;;  %vm596_vm3 = vcmask 1043456  }
   0xd   : > { %v504_v5 = vpack.c.bf16 %v493_v4, %v491_v2  ;;  %v487_v6 = vld [vmem:[%s1307_s2 + $0x20] sm:$0xff]  ;;  %v489_v7 = vld [vmem:[%s1307_s2 + $0x30] sm:$0xff]  ;;  %s471_s20 = scalar_lea.vmem %s1305_s0, %s1103_s27  ;;  %v492_v26 = vld [vmem:[%s1307_s2 + $0x48] sm:$0xff]  ;;  %v507_v27 = vpack.c.bf16 %v498_v25, %v496_v24  ;;  %s475_s25 = scalar_lea.vmem %s1306_s1, %s1103_s27 }
   0xe   : > { %522 = vmatpush.bf16.msra.mxu0 %v506_v3  ;;  %v502_v8 = vpack.c.bf16 %v489_v7, %v487_v6  ;;  %v483_v9 = vld [vmem:[%s1307_s2] sm:$0xff]  ;;  %v485_v10 = vld [vmem:[%s1307_s2 + $0x10] sm:$0xff]  ;;  %v494_v28 = vld [vmem:[%s1307_s2 + $0x58] sm:$0xff]  ;;  %s479_s15 = scalar_lea.vmem %s1319_s14, %s1103_s27 }
   0xf   : > { %v500_v11 = vpack.c.bf16 %v485_v10, %v483_v9  ;;  %v1115_v12 = vld [vmem:[%s471_s20] sm:$0xff]  ;;  %535 = vmatpush.bf16.msra.mxu1 %v507_v27  ;;  %v505_v29 = vpack.c.bf16 %v494_v28, %v492_v26  ;;  %v488_v30 = vld [vmem:[%s1307_s2 + $0x28] sm:$0xff]  ;;  %v490_v31 = vld [vmem:[%s1307_s2 + $0x38] sm:$0xff] }
  0x10   : > { %v499_v13 = vpack.c.bf16 %v1115_v12, %v1115_v12  ;;  %v508_v14 = vld [vmem:[%s1308_s3] sm:$0x3]  ;;  %v503_v32 = vpack.c.bf16 %v490_v31, %v488_v30  ;;  %v484_v38 = vld [vmem:[%s1307_s2 + $0x8] sm:$0xff]  ;;  %v486_v39 = vld [vmem:[%s1307_s2 + $0x18] sm:$0xff] }
  0x11   : > { %v510_v15 = vperm.slane %v508_v14, 0  ;;  %v482_v33 = vld [vmem:[%s475_s25] sm:$0xff]  ;;  %v501_v40 = vpack.c.bf16 %v486_v39, %v484_v38  ;;  %v511_v47 = vperm.slane %v508_v14, 1  ;;  %v546_v53 = vld [vmem:[%s1309_s4 + $0x10] sm:$0xff]  ;;  %v547_v54 = vld [vmem:[%s1309_s4 + $0x18] sm:$0xff]  ;;  %v1001_v38 = vmov 64.0  }
  0x12   : > { %523 = vmatpush.bf16.msra.mxu0 %v504_v5  ;;  %v615_v55 = vpack.c.bf16 %v547_v54, %v546_v53  ;;  %v544_v62 = vld [vmem:[%s1309_s4] sm:$0xff]  ;;  %v545_v63 = vld [vmem:[%s1309_s4 + $0x8] sm:$0xff] }
  0x13   : > { %536 = vmatpush.bf16.msra.mxu1 %v505_v29  ;;  %v614_v0 = vpack.c.bf16 %v545_v63, %v544_v62  ;;  %v548_v25 = vld [vmem:[%s1309_s4 + $0x20] sm:$0xff]  ;;  %v549_v26 = vld [vmem:[%s1309_s4 + $0x28] sm:$0xff]  ;;  %v810_v62 = vld [vmem:[%s1315_s10 + $0x78] sm:$0xff] }
  0x14   : > { %v675_v27 = vpack.c.bf16 %v549_v26, %v548_v25  ;;  %v967_v31 = vld [vmem:[%s1310_s5] ss:$0 sm:$0xff]  ;;  %v758_v53 = vld [vmem:[%s1313_s8 + $0x28] sm:$0xff]  ;;  %v801_v26 = vld [vmem:[%s1315_s10 + $0x30] sm:$0xff] }
  0x16   : > { %524 = vmatpush.bf16.msra.mxu0 %v502_v8 }
  0x17   : > { %537 = vmatpush.bf16.msra.mxu1 %v503_v32 }
  0x1a   : > { %525 = vmatpush.bf16.msra.mxu0 %v500_v11 }
  0x1b   : > { %538 = vmatpush.bf16.msra.mxu1 %v501_v40 }
  0x1d   : > { %944 = vmatmul.msk.bf16.vlgmr.msra.gmra.mxu0 %vm514_vm0, %v499_v13 }
  0x1e   : > { %945 = vmatmul.msk.bf16.vlgmr.msra.gmra.mxu1 %vm514_vm0, %v499_v13 }
  0x1f   : > { %702 = vmatpush.bf16.msrb.mxu1 %v615_v55  ;;  %v755_v55 = vld [vmem:[%s1313_s8 + $0x10] sm:$0xff] }
  0x23   : > { %703 = vmatpush.bf16.msrb.mxu1 %v614_v0 }
  0x9a   : > { %v527_v16 = vpop.f32.mrf.mxu0 }
  0x9b   : > { %v528_v17 = vadd.f32 %v527_v16, %v510_v15  ;;  %v540_v46 = vpop.f32.mrf.mxu1 }
  0x9c   : > { %v541_v48 = vadd.f32 %v540_v46, %v511_v47 }
  0x9d   : > { %v555_v18 = vpack.c.bf16 %v528_v17, %v528_v17  ;;  %v553_v19 = vmul.f32 0.17677669, %v528_v17 }
  0x9e   : > { %v592_v49 = vpack.c.bf16 %v541_v48, %v541_v48 }
  0x9f   : > { %557 = vrot.lane.b32.xlu0 %v555_v18, %s998_s22  ;;  %v554_v20 = vpack.c.bf16 %v553_v19, %v553_v19  ;;  %v551_v19 = vld [vmem:[%s1309_s4 + $0x38] sm:$0xff] }
  0xa0   : > { %v598_v50 = vsel %vm596_vm3, %v592_v49, 0 }
  0xa1   : > { %617 = vrot.lane.b32.xlu2 %v554_v20, %s999_s23  ;;  %607 = vmatpush.bf16.msra.mxu3 %v598_v50  ;;  %v760_v50 = vld [vmem:[%s1313_s8 + $0x38] sm:$0xff] }
  0xa2   : > { %v529_v21 = vpop.f32.mrf.mxu0 }
  0xa3   : > { %v542_v51 = vpop.f32.mrf.mxu1 }
  0xfb   : > { %v618_v61 = vpop.permute.xlu2 %617 }
 0x111   : > { %v558_v22 = vpop.permute.xlu0 %557 }
 0x112   : > { %v564_v23 = vsel %vm559_vm1, %v558_v22, 0 }
 0x113   : > { %573 = vmatpush.bf16.xpose.msrb.mxu0 %v564_v23 }
 0x11a   : > { %946 = vmatmul.msk.bf16.vlgmr.msrb.gmra.mxu0 %vm559_vm1, %v554_v20 }
 0x197   : > { %v575_v34 = vpop.f32.mrf.mxu0 }
 0x198   : > { %v576_v35 = vadd.f32 %v575_v34, %v482_v33 }
 0x19a   : > { %v580_v36 = vsel %vm579_vm2, %v576_v35, -inf }
 0x19b   : > { %581 = vmax.xlane.f32.xlu0 %v580_v36 }
 0x19f   : > { %v577_v37 = vpop.f32.mrf.mxu0 }
 0x20e   : > { %v582_v41 = vpop.xlane.xlu0 %581 }
 0x20f   : > { %v583_v42 = vsub.f32 %v576_v35, %v582_v41 }
 0x211   : > { %v584_v43 = vmul.f32 1.442695, %v583_v42 }
 0x213   : > { %974 = vpow2.f32 %v584_v43 }
 0x219   : > { %v975_v44 = vpop.eup %974 }
 0x21a   : > { %v586_v45 = vsel %vm579_vm2, %v975_v44, 0.0 }
 0x21b   : > { %587 = vadd.xlane.f32.xlu1 %v586_v45 }
 0x234   : > { %619 = vrot.lane.b32.xlu1 %v555_v18, %s1000_s17  ;;  %v550_v18 = vld [vmem:[%s1309_s4 + $0x30] sm:$0xff] }
 0x235   : > { %v676_v20 = vpack.c.bf16 %v551_v19, %v550_v18  ;;  %v808_v18 = vld [vmem:[%s1315_s10 + $0x68] sm:$0xff] }
 0x237   : > { %686 = vmatpush.bf16.msra.mxu0 %v676_v20  ;;  %v805_v20 = vld [vmem:[%s1315_s10 + $0x50] sm:$0xff] }
 0x23b   : > { %687 = vmatpush.bf16.msra.mxu0 %v675_v27  ;;  %v802_v27 = vld [vmem:[%s1315_s10 + $0x38] sm:$0xff] }
 0x28e   : > { %v588_v52 = vpop.xlane.xlu1 %587 }
 0x28f   : > { %976 = vrcp.f32 %v588_v52  ;;  %v757_v52 = vld [vmem:[%s1313_s8 + $0x20] sm:$0xff] }
 0x290   : > { %v764_v54 = vpack.c.bf16 %v758_v53, %v757_v52  ;;  %v971_v52 = vld [vmem:[%s1316_s11] ss:$0 sm:$0xff] }
 0x295   : > { %v977_v56 = vpop.eup %976 }
 0x296   : > { %v590_v57 = vmul.f32 %v977_v56, %v975_v44  ;;  %v756_v56 = vld [vmem:[%s1313_s8 + $0x18] sm:$0xff] }
 0x298   : > { %v591_v58 = vpack.c.bf16 %v590_v57, %v590_v57  ;;  %v763_v57 = vpack.c.bf16 %v756_v56, %v755_v55 }
 0x29a   : > { %947 = vmatmul.msk.bf16.vlgmr.msra.gmra.mxu3 %vm579_vm2, %v591_v58  ;;  %v753_v58 = vld [vmem:[%s1313_s8] sm:$0xff] }
 0x2a6   : > { %v620_v59 = vpop.permute.xlu1 %619 }
 0x2a7   : > { %v625_v60 = vsel %vm559_vm1, %v620_v59, 0  ;;  %v754_v59 = vld [vmem:[%s1313_s8 + $0x8] sm:$0xff] }
 0x2a8   : > { %634 = vmatpush.bf16.xpose.msrb.mxu3 %v625_v60  ;;  %v762_v60 = vpack.c.bf16 %v754_v59, %v753_v58 }
 0x2af   : > { %948 = vmatmul.msk.bf16.vlgmr.msrb.gmra.mxu3 %vm559_vm1, %v618_v61  ;;  %v809_v61 = vld [vmem:[%s1315_s10 + $0x70] sm:$0xff] }
 0x2b0   : > { %v819_v0 = vpack.c.bf16 %v810_v62, %v809_v61 }
 0x31d   : > { %v609_v1 = vpop.f32.mrf.mxu3 }
 0x31e   : > { %v613_v2 = vpack.c.bf16 %v609_v1, %v609_v1 }
 0x320   : > { %951 = vmatmul.msk.bf16.vlgmr.msrb.gmra.mxu1 %vm559_vm1, %v613_v2 }
 0x325   : > { %v611_v3 = vpop.f32.mrf.mxu3 }
 0x332   : > { %v636_v4 = vpop.f32.mrf.mxu3 }
 0x333   : > { %v637_v5 = vadd.f32 %v636_v4, %v482_v33 }
 0x335   : > { %v640_v6 = vsel %vm579_vm2, %v637_v5, -inf }
 0x336   : > { %641 = vmax.xlane.f32.xlu2 %v640_v6 }
 0x33a   : > { %v638_v7 = vpop.f32.mrf.mxu3 }
 0x34e   : > { %653 = vrot.lane.b32.xlu2 %v592_v49, %s999_s23  ;;  %v759_v49 = vld [vmem:[%s1313_s8 + $0x30] sm:$0xff] }
 0x34f   : > { %v765_v51 = vpack.c.bf16 %v760_v50, %v759_v49 }
 0x351   : > { %777 = vmatpush.bf16.msra.mxu3 %v765_v51 }
 0x355   : > { %778 = vmatpush.bf16.msra.mxu3 %v764_v54 }
 0x359   : > { %779 = vmatpush.bf16.msra.mxu3 %v763_v57 }
 0x35d   : > { %780 = vmatpush.bf16.msra.mxu3 %v762_v60 }
 0x39d   : > { %v705_v8 = vpop.f32.mrf.mxu1 }
 0x3a5   : > { %v707_v9 = vpop.f32.mrf.mxu1 }
 0x3a6   : > { %v968_v9 = vld [vmem:[%s1311_s6] ss:$0 sm:$0xff] }
 0x3a9   : > { %v642_v10 = vpop.xlane.xlu2 %641 }
 0x3aa   : > { %v643_v11 = vsub.f32 %v637_v5, %v642_v10 }
 0x3ac   : > { %v644_v13 = vmul.f32 1.442695, %v643_v11  ;;  %v969_v11 = vld [vmem:[%s1312_s7] ss:$0 sm:$0xff] }
 0x3ae   : > { %978 = vpow2.f32 %v644_v13 }
 0x3b1   : > { %v654_v14 = vpop.permute.xlu2 %653 }
 0x3b2   : > { %v659_v15 = vsel %vm596_vm3, %v654_v14, 0 }
 0x3b3   : > { %668 = vmatpush.bf16.msra.mxu2 %v659_v15 }
 0x3b4   : > { %v979_v16 = vpop.eup %978 }
 0x3b5   : > { %v646_v17 = vsel %vm579_vm2, %v979_v16, 0.0 }
 0x3b6   : > { %647 = vadd.xlane.f32.xlu1 %v646_v17  ;;  %v807_v17 = vld [vmem:[%s1315_s10 + $0x60] sm:$0xff] }
 0x3b7   : > { %824 = vmatpush.bf16.msrb.mxu2 %v819_v0  ;;  %v818_v19 = vpack.c.bf16 %v808_v18, %v807_v17 }
 0x3bb   : > { %825 = vmatpush.bf16.msrb.mxu2 %v818_v19 }
 0x429   : > { %v648_v21 = vpop.xlane.xlu1 %647 }
 0x42a   : > { %980 = vrcp.f32 %v648_v21  ;;  %v806_v21 = vld [vmem:[%s1315_s10 + $0x58] sm:$0xff] }
 0x42b   : > { %982 = vrcp.f32 %v1001_v38  ;;  %v970_v38 = vld [vmem:[%s1314_s9] ss:$0 sm:$0xff] }
 0x430   : > { %v981_v22 = vpop.eup %980 }
 0x431   : > { %v650_v23 = vmul.f32 %v981_v22, %v979_v16  ;;  %v983_v39 = vpop.eup %982  ;;  %v817_v22 = vpack.c.bf16 %v806_v21, %v805_v20 }
 0x432   : > { %v720_v40 = vmul.f32 64.0, %v983_v39  ;;  %vm724_vm4 = vweird.f32 %v983_v39 }
 0x433   : > { %v651_v24 = vpack.c.bf16 %v650_v23, %v650_v23  ;;  %826 = vmatpush.bf16.msrb.mxu2 %v817_v22  ;;  %v803_v23 = vld [vmem:[%s1315_s10 + $0x40] sm:$0xff] }
 0x434   : > { %v721_v41 = vsub.f32 1.0, %v720_v40 }
 0x435   : > { %949 = vmatmul.msk.bf16.vlgmr.msra.gmra.mxu2 %vm579_vm2, %v651_v24  ;;  %v804_v24 = vld [vmem:[%s1315_s10 + $0x48] sm:$0xff] }
 0x436   : > { %v722_v42 = vmul.f32 %v983_v39, %v721_v41  ;;  %v816_v25 = vpack.c.bf16 %v804_v24, %v803_v23 }
 0x438   : > { %v723_v43 = vadd.f32 %v983_v39, %v722_v42  ;;  %827 = vmatpush.bf16.msrb.mxu2 %v816_v25 }
 0x43a   : > { %v1197_v44 = vsel %vm724_vm4, %v983_v39, %v723_v43 }
 0x4b8   : > { %v670_v28 = vpop.f32.mrf.mxu2 }
 0x4b9   : > { %v674_v29 = vpack.c.bf16 %v670_v28, %v670_v28  ;;  %v815_v28 = vpack.c.bf16 %v802_v27, %v801_v26 }
 0x4bb   : > { %950 = vmatmul.msk.bf16.vlgmr.msra.gmra.mxu0 %vm559_vm1, %v674_v29  ;;  %v799_v29 = vld [vmem:[%s1315_s10 + $0x20] sm:$0xff]  ;;  %828 = vmatpush.bf16.msrb.mxu2 %v815_v28 }
 0x4c0   : > { %v672_v30 = vpop.f32.mrf.mxu2 }
 0x4c1   : > { %v800_v30 = vld [vmem:[%s1315_s10 + $0x28] sm:$0xff] }
 0x538   : > { %v689_v32 = vpop.f32.mrf.mxu0 }
 0x539   : > { %v706_v33 = vadd.f32 %v705_v8, %v689_v32  ;;  %v797_v32 = vld [vmem:[%s1315_s10 + $0x10] sm:$0xff] }
 0x53b   : > { %v712_v34 = vadd.f32 %v967_v31, %v706_v33  ;;  %v814_v31 = vpack.c.bf16 %v800_v30, %v799_v29  ;;  %v798_v33 = vld [vmem:[%s1315_s10 + $0x18] sm:$0xff] }
 0x53d   : > { %v713_v35 = vadd.f32 %v712_v34, %v1115_v12  ;;  %829 = vmatpush.bf16.msrb.mxu2 %v814_v31  ;;  %v813_v34 = vpack.c.bf16 %v798_v33, %v797_v32 }
 0x53f   : > { %v716_v36 = vsel %vm514_vm0, %v713_v35, 0.0 }
 0x540   : > { %717 = vadd.xlane.f32.xlu0 %v716_v36  ;;  %v691_v37 = vpop.f32.mrf.mxu0  ;;  %v796_v36 = vld [vmem:[%s1315_s10 + $0x8] sm:$0xff] }
 0x541   : > { %830 = vmatpush.bf16.msrb.mxu2 %v813_v34 }
 0x5b3   : > { %v718_v45 = vpop.xlane.xlu0 %717 }
 0x5b4   : > { %v726_v46 = vmul.f32 %v1197_v44, %v718_v45 }
 0x5b6   : > { %v727_v47 = vsub.f32 %v713_v35, %v726_v46  ;;  %v795_v35 = vld [vmem:[%s1315_s10] sm:$0xff] }
 0x5b7   : > { %v812_v37 = vpack.c.bf16 %v796_v36, %v795_v35 }
 0x5b8   : > { %v728_v48 = vmul.f32 %v727_v47, %v727_v47 }
 0x5b9   : > { %831 = vmatpush.bf16.msrb.mxu2 %v812_v37 }
 0x5ba   : > { %v729_v12 = vsel %vm514_vm0, %v728_v48, 0.0 }
 0x5bb   : > { %730 = vadd.xlane.f32.xlu0 %v729_v12 }
 0x62e   : > { %v731_v63 = vpop.xlane.xlu0 %730 }
 0x62f   : > { %v732_v1 = vmul.f32 %v731_v63, %v1197_v44 }
 0x631   : > { %v733_v2 = vadd.f32 1e-05, %v732_v1 }
 0x633   : > { %984 = vrsqrt.f32 %v733_v2  ;;  %vm740_vm6 = vweird.f32 %v733_v2 }
 0x639   : > { %v985_v3 = vpop.eup %984 }
 0x63a   : > { %v735_v4 = vmul.f32 %v985_v3, %v733_v2  ;;  %vm741_vm5 = vweird.f32 %v985_v3 }
 0x63b   : > { %vm742_vm7 = vmor %vm740_vm6, %vm741_vm5 }
 0x63c   : > { %v736_v5 = vmul.f32 %v985_v3, %v735_v4 }
 0x63e   : > { %v737_v6 = vmul.f32 0.5, %v736_v5 }
 0x640   : > { %v738_v7 = vsub.f32 1.5, %v737_v6 }
 0x642   : > { %v739_v8 = vmul.f32 %v985_v3, %v738_v7 }
 0x644   : > { %v743_v10 = vsel %vm742_vm7, %v985_v3, %v739_v8  ;;  %v972_v8 = vld [vmem:[%s1317_s12] ss:$0 sm:$0xff] }
 0x645   : > { %v744_v13 = vmul.f32 %v743_v10, %v727_v47 }
 0x647   : > { %v748_v14 = vmul.f32 %v968_v9, %v744_v13 }
 0x649   : > { %v752_v15 = vadd.f32 %v969_v11, %v748_v14 }
 0x64b   : > { %v761_v16 = vpack.c.bf16 %v752_v15, %v752_v15 }
 0x64d   : > { %952 = vmatmul.msk.bf16.vlgmr.msra.gmra.mxu3 %vm514_vm0, %v761_v16 }
 0x6d0   : > { %v782_v39 = vpop.f32.mrf.mxu3 }
 0x6d1   : > { %v783_v40 = vadd.f32 %v970_v38, %v782_v39 }
 0x6d3   : > { %v786_v41 = vmul.f32 %v783_v40, %v783_v40 }
 0x6d5   : > { %v787_v42 = vmul.f32 %v786_v41, %v783_v40 }
 0x6d7   : > { %v788_v43 = vmul.f32 0.044715, %v787_v42 }
 0x6d8   : > { %v784_v45 = vpop.f32.mrf.mxu3 }
 0x6d9   : > { %v789_v46 = vadd.f32 %v788_v43, %v783_v40 }
 0x6db   : > { %v790_v47 = vmul.f32 0.7978846, %v789_v46 }
 0x6dd   : > { %986 = vtanh.f32 %v790_v47 }
 0x6e3   : > { %v987_v48 = vpop.eup %986 }
 0x6e4   : > { %v792_v12 = vadd.f32 1.0, %v987_v48 }
 0x6e6   : > { %v793_v49 = vmul.f32 0.5, %v792_v12 }
 0x6e8   : > { %v794_v50 = vmul.f32 %v793_v49, %v783_v40 }
 0x6ea   : > { %v811_v51 = vpack.c.bf16 %v794_v50, %v794_v50 }
 0x6ec   : > { %832 = vmatmul.bf16.vlgmr.msrb.gmra.mxu2 %v811_v51 }
 0x76f   : > { %v833_v53 = vpop.f32.mrf.mxu2 }
 0x770   : > { %v834_v54 = vadd.f32 %v971_v52, %v833_v53 }
 0x772   : > { %v837_v55 = vadd.f32 %v834_v54, %v752_v15 }
 0x774   : > { %v840_v56 = vsel %vm514_vm0, %v837_v55, 0.0 }
 0x775   : > { %841 = vadd.xlane.f32.xlu0 %v840_v56 }
 0x777   : > { %v835_v57 = vpop.f32.mrf.mxu2 }
 0x7e8   : > { %v842_v58 = vpop.xlane.xlu0 %841 }
 0x7e9   : > { %v843_v59 = vmul.f32 %v842_v58, %v1197_v44 }
 0x7eb   : > { %v844_v60 = vsub.f32 %v837_v55, %v843_v59 }
 0x7ed   : > { %v845_v61 = vmul.f32 %v844_v60, %v844_v60 }
 0x7ef   : > { %v846_v62 = vsel %vm514_vm0, %v845_v61, 0.0 }
 0x7f0   : > { %847 = vadd.xlane.f32.xlu2 %v846_v62 }
 0x863   : > { %v848_v63 = vpop.xlane.xlu2 %847 }
 0x864   : > { %v849_v0 = vmul.f32 %v848_v63, %v1197_v44  ;;  %v973_v44 = vld [vmem:[%s1318_s13] ss:$0 sm:$0xff] }
 0x866   : > { %v850_v1 = vadd.f32 1e-05, %v849_v0 }
 0x868   : > { %988 = vrsqrt.f32 %v850_v1  ;;  %vm857_vm9 = vweird.f32 %v850_v1 }
 0x86e   : > { %v989_v2 = vpop.eup %988 }
 0x86f   : > { %v852_v3 = vmul.f32 %v989_v2, %v850_v1  ;;  %vm858_vm8 = vweird.f32 %v989_v2 }
 0x870   : > { %vm859_vm10 = vmor %vm857_vm9, %vm858_vm8 }
 0x871   : > { %v853_v4 = vmul.f32 %v989_v2, %v852_v3 }
 0x873   : > { %v854_v5 = vmul.f32 0.5, %v853_v4 }
 0x875   : > { %v855_v6 = vsub.f32 1.5, %v854_v5 }
 0x877   : > { %v856_v7 = vmul.f32 %v989_v2, %v855_v6 }
 0x879   : > { %v860_v9 = vsel %vm859_vm10, %v989_v2, %v856_v7 }
 0x87a   : > { %v861_v10 = vmul.f32 %v860_v9, %v844_v60 }
 0x87c   : > { %v865_v11 = vmul.f32 %v972_v8, %v861_v10 }
 0x87e   : > { %v869_v13 = vadd.f32 %v973_v44, %v865_v11 }
 0x880   : > { %870 = vst.msk [vmem:[%s479_s15] sm:$0xff] %vm514_vm0, %v869_v13 }
 0x881 PF: > { %s24_s29 = sadd.s32 1, %s996_s29  }
 0x882   : > { %p21_p4 = scmp.ge.s32.totalorder %s24_s29, 4  }
 0x884   :  { %23 = sbr.rel (!%p21_p4) target bundleno = 1 (0x1), region = 109 }

// kernel: rag_verifier_forward.9
= control target key start
LH: loop header
LB: loop body
LE: loop exit
PB: predicated region body
PF: predicated region fallthrough
CT: control target
= control target key end

     0   :  { %vm50_vm0 = vcmask 523264   ;;  %s288_s0 = inlined_call_operand.vmem [shape: f32[4,64], index: 0, kind: input, shape index: {}]   ;;  %s289_s1 = inlined_call_operand.vmem [shape: f32[128,64], index: 1, kind: input, shape index: {}]   ;;  %s290_s2 = inlined_call_operand.vmem [shape: f32[1,128], index: 2, kind: input, shape index: {}]   ;;  %s291_s3 = inlined_call_operand.vmem [shape: s32[4,1], index: 3, kind: input, shape index: {}]   ;;  %s292_s4 = inlined_call_operand.hbm [shape: f32[4,128], index: 4, kind: output, shape index: {0}]   ;;  %s293_s5 = inlined_call_operand.vmem [shape: f32[4,1], index: 5, kind: output, shape index: {1}]  }
   0x1   :  { %v35_v0 = vld [vmem:[%s289_s1 + $0x70] sm:$0xff]  ;;  %v36_v1 = vld [vmem:[%s289_s1 + $0x78] sm:$0xff]  ;;  %v33_v3 = vld [vmem:[%s289_s1 + $0x60] sm:$0xff] }
   0x2   :  { %v45_v2 = vpack.c.bf16 %v36_v1, %v35_v0  ;;  %v34_v4 = vld [vmem:[%s289_s1 + $0x68] sm:$0xff] }
   0x4   :  { %v76_v5 = vsel %vm50_vm0, %v45_v2, 0 }
   0x5   :  { %11 = vsyncpa [#allocation3], 0  ;;  %78 = vmatpush.bf16.xpose.msra.mxu0 %v76_v5  ;;  %v44_v6 = vpack.c.bf16 %v34_v4, %v33_v3  ;;  %v31_v8 = vld [vmem:[%s289_s1 + $0x50] sm:$0xff]  ;;  %v32_v9 = vld [vmem:[%s289_s1 + $0x58] sm:$0xff]  ;;  %v180_v34 = vmov 0   ;;  %vm93_vm1 = vcmask 1043456   ;;  %v106_v46 = vlaneseq }
   0x6   :  { %v43_v10 = vpack.c.bf16 %v32_v9, %v31_v8  ;;  %v29_v12 = vld [vmem:[%s289_s1 + $0x40] sm:$0xff]  ;;  %v30_v13 = vld [vmem:[%s289_s1 + $0x48] sm:$0xff]  ;;  %v27_v16 = vld [vmem:[%s289_s1 + $0x30] sm:$0xff]  ;;  %148 = vset.pattern.permute.xlu0 %v180_v34  ;;  %s130_s7 = sshll.u32 %s292_s4, 4  ;;  %v182_v56 = vmov 0.0   ;;  %vm121_vm4 = vcmask 3072   ;;  %s131_s7 = int_to_ptr.hbm [resolvable:$true] %s130_s7 }
   0x7   :  { %v73_v7 = vsel %vm50_vm0, %v44_v6, 0  ;;  %v42_v14 = vpack.c.bf16 %v30_v13, %v29_v12  ;;  %v28_v17 = vld [vmem:[%s289_s1 + $0x38] sm:$0xff]  ;;  %v25_v20 = vld [vmem:[%s289_s1 + $0x20] sm:$0xff]  ;;  %v26_v21 = vld [vmem:[%s289_s1 + $0x28] sm:$0xff]  ;;  %v107_v47 = vand.u32 127, %v106_v46 }
   0x8   :  { %v70_v11 = vsel %vm50_vm0, %v43_v10, 0  ;;  %v41_v18 = vpack.c.bf16 %v28_v17, %v27_v16  ;;  %v40_v22 = vpack.c.bf16 %v26_v21, %v25_v20  ;;  %v23_v24 = vld [vmem:[%s289_s1 + $0x10] sm:$0xff]  ;;  %v24_v25 = vld [vmem:[%s289_s1 + $0x18] sm:$0xff]  ;;  %v21_v28 = vld [vmem:[%s289_s1] sm:$0xff] }
   0x9   :  { %v67_v15 = vsel %vm50_vm0, %v42_v14, 0  ;;  %v39_v26 = vpack.c.bf16 %v24_v25, %v23_v24  ;;  %v22_v29 = vld [vmem:[%s289_s1 + $0x8] sm:$0xff]  ;;  %v20_v32 = vld [vmem:[%s288_s0] sm:$0xf]  ;;  %s181_s0 = smov [#allocation2]  }
   0xa   :  { %v64_v19 = vsel %vm50_vm0, %v41_v18, 0  ;;  %v61_v23 = vsel %vm50_vm0, %v40_v22, 0  ;;  %v38_v30 = vpack.c.bf16 %v22_v29, %v21_v28  ;;  %v37_v33 = vpack.c.bf16 %v20_v32, %v20_v32  ;;  %v149_v35 = vld [vmem:[%s290_s2] ss:$0 sm:$0xff]  ;;  %s128_s2 = sshll.u32 %s181_s0, 4  ;;  %s129_s2 = int_to_ptr.vmem [resolvable:$true] %s128_s2 }
   0xb   :  { %v58_v27 = vsel %vm50_vm0, %v39_v26, 0  ;;  %v92_v40 = vld [vmem:[%s291_s3] sm:$0xf] }
   0xc   :  { %v55_v31 = vsel %vm50_vm0, %v38_v30, 0  ;;  %vm116_vm3 = vcmp.ne.s32.totalorder %v92_v40, 4294967196 }
   0xd   :  { %79 = vmatpush.bf16.xpose.msra.mxu0 %v73_v7  ;;  %v144_v57 = vsel %vm116_vm3, 1.0, %v182_v56 }
  0x15   :  { %80 = vmatpush.bf16.xpose.msra.mxu0 %v70_v11 }
  0x1d   :  { %81 = vmatpush.bf16.xpose.msra.mxu0 %v67_v15 }
  0x25   :  { %82 = vmatpush.bf16.xpose.msra.mxu0 %v64_v19 }
  0x2d   :  { %83 = vmatpush.bf16.xpose.msra.mxu0 %v61_v23 }
  0x35   :  { %84 = vmatpush.bf16.xpose.msra.mxu0 %v58_v27 }
  0x3d   :  { %85 = vmatpush.bf16.xpose.msra.mxu0 %v55_v31 }
  0x44   :  { %143 = vmatmul.msk.bf16.vlgmr.msra.gmra.mxu0 %vm50_vm0, %v37_v33 }
  0xc1   :  { %v87_v36 = vpop.f32.mrf.mxu0 }
  0xc2   :  { %v88_v37 = vadd.f32 %v149_v35, %v87_v36 }
  0xc4   :  { %91 = vst [vmem:[#allocation2] sm:$0xf] %v88_v37  ;;  %v94_v38 = vsel %vm93_vm1, %v88_v37, -inf }
  0xc5   :  { %95 = vmax.xlane.f32.xlu0 %v94_v38  ;;  %133 = dma.vmem_to_hbm [thread:$0]  %s129_s2, 64, %s131_s7, [#allocation3]  }
  0xc9   :  { %v89_v39 = vpop.f32.mrf.mxu0 }
  0xd9   :  { %109 = vperm.xlu0 %148, %v92_v40  }
 0x138   :  { %v96_v41 = vpop.xlane.xlu0 %95 }
 0x139   :  { %v97_v42 = vsub.f32 %v88_v37, %v96_v41 }
 0x13b   :  { %v98_v43 = vmul.f32 1.442695, %v97_v42 }
 0x13d   :  { %150 = vpow2.f32 %v98_v43 }
 0x143   :  { %v151_v44 = vpop.eup %150 }
 0x144   :  { %v100_v45 = vsel %vm93_vm1, %v151_v44, 0.0 }
 0x145   :  { %101 = vadd.xlane.f32.xlu1 %v100_v45 }
 0x14b   :  { %v110_v48 = vpop.permute.xlu0 %109 }
 0x14c   :  { %vm111_vm2 = vcmp.eq.s32.totalorder %v107_v47, %v110_v48 }
 0x14d   :  { %v112_v49 = vsel %vm111_vm2, %v88_v37, 0.0 }
 0x14e   :  { %v113_v50 = vsel %vm93_vm1, %v112_v49, 0.0 }
 0x14f   :  { %114 = vadd.xlane.f32.xlu1 %v113_v50 }
 0x1b8   :  { %v102_v51 = vpop.xlane.xlu1 %101 }
 0x1b9   :  { %152 = vlog2.f32 %v102_v51 }
 0x1bf   :  { %v153_v52 = vpop.eup %152 }
 0x1c0   :  { %v104_v53 = vmul.f32 0.6931472, %v153_v52 }
 0x1c2   :  { %v105_v54 = vadd.f32 %v104_v53, %v96_v41  ;;  %v115_v55 = vpop.xlane.xlu1 %114 }
 0x1c4   :  { %v119_v58 = vsub.f32 %v105_v54, %v115_v55 }
 0x1c6   :  { %v120_v59 = vmul.f32 %v144_v57, %v119_v58 }
 0x1c8   :  { %122 = vst.msk [vmem:[%s293_s5] sm:$0xf] %vm121_vm4, %v120_v59 }
 0x1c9   :  { %178 = dma.done.wait [#allocation3], 64  }
 0x1ca   :  { %179 = vsyncadd [#allocation3], 4294967232 }
 0x1cb   :  { %142 = vsyncpa [#allocation3], 1 }

// kernel: rag_verifier_forward.8
= control target key start
LH: loop header
LB: loop body
LE: loop exit
PB: predicated region body
PF: predicated region fallthrough
CT: control target
= control target key end

     0   :  { %s2111_s0 = inlined_call_operand.vmem [shape: f32[2,2,64], index: 0, kind: input, shape index: {}]   ;;  %s2112_s1 = inlined_call_operand.vmem [shape: f32[2,8,64], index: 1, kind: input, shape index: {}]   ;;  %s2113_s2 = inlined_call_operand.vmem [shape: f32[2,2,2], index: 2, kind: input, shape index: {}]   ;;  %s2114_s3 = inlined_call_operand.vmem [shape: f32[2,2,8], index: 3, kind: input, shape index: {}]   ;;  %s2115_s4 = inlined_call_operand.vmem [shape: f32[64,192], index: 4, kind: input, shape index: {}]   ;;  %s2116_s5 = inlined_call_operand.vmem [shape: f32[1,192], index: 5, kind: input, shape index: {}]   ;;  %s2117_s6 = inlined_call_operand.vmem [shape: f32[64,64], index: 6, kind: input, shape index: {}]   ;;  %s2118_s7 = inlined_call_operand.vmem [shape: f32[1,64], index: 7, kind: input, shape index: {}]   ;;  %s2119_s8 = inlined_call_operand.vmem [shape: f32[1,64], index: 8, kind: input, shape index: {}]   ;;  %s2120_s9 = inlined_call_operand.vmem [shape: f32[1,64], index: 9, kind: input, shape index: {}]   ;;  %s2121_s10 = inlined_call_operand.vmem [shape: f32[64,64], index: 10, kind: input, shape index: {}]   ;;  %s2122_s11 = inlined_call_operand.vmem [shape: f32[1,64], index: 11, kind: input, shape index: {}]   ;;  %s2123_s12 = inlined_call_operand.vmem [shape: f32[64,128], index: 12, kind: input, shape index: {}]   ;;  %s2124_s13 = inlined_call_operand.vmem [shape: f32[1,128], index: 13, kind: input, shape index: {}]   ;;  %s2125_s14 = inlined_call_operand.vmem [shape: f32[64,64], index: 14, kind: input, shape index: {}]   ;;  %s2126_s15 = inlined_call_operand.vmem [shape: f32[1,64], index: 15, kind: input, shape index: {}]   ;;  %s2127_s16 = inlined_call_operand.vmem [shape: f32[1,64], index: 16, kind: input, shape index: {}]   ;;  %s2128_s17 = inlined_call_operand.vmem [shape: f32[1,64], index: 17, kind: input, shape index: {}]   ;;  %s2129_s18 = inlined_call_operand.vmem [shape: f32[64,128], index: 18, kind: input, shape index: {}]   ;;  %s2130_s19 = inlined_call_operand.vmem [shape: f32[1,128], index: 19, kind: input, shape index: {}]   ;;  %s2131_s20 = inlined_call_operand.vmem [shape: f32[128,64], index: 20, kind: input, shape index: {}]   ;;  %s2132_s21 = inlined_call_operand.vmem [shape: f32[1,64], index: 21, kind: input, shape index: {}]   ;;  %s2133_s22 = inlined_call_operand.vmem [shape: f32[1,64], index: 22, kind: input, shape index: {}]   ;;  %s2134_s23 = inlined_call_operand.vmem [shape: f32[1,64], index: 23, kind: input, shape index: {}]   ;;  %s2135_s24 = inlined_call_operand.vmem [shape: f32[2,2,64], index: 24, kind: output, shape index: {}]  }
   0x1   :  { %2143 = sst [smem:[#allocation2_spill]] %s2111_s0 }
   0x2   :  { %2144 = sst [smem:[#allocation3_spill]] %s2112_s1 }
   0x3   :  { %2145 = sst [smem:[#allocation4_spill]] %s2113_s2 }
   0x4   :  { %2146 = sst [smem:[#allocation5_spill]] %s2114_s3 }
   0x5   :  { %2147 = sst [smem:[#allocation6_spill]] %s2115_s4 }
   0x6   :  { %2148 = sst [smem:[#allocation7_spill]] %s2116_s5  ;;  %s1750_s5 = smov 0  }
   0x7   :  { %2149 = sst [smem:[#allocation8_spill]] %s2117_s6 }
   0x8   :  { %2150 = sst [smem:[#allocation9_spill]] %s2118_s7 }
   0x9   :  { %2151 = sst [smem:[#allocation10_spill]] %s2119_s8 }
   0xa LB: > { %s1534_s26 = sadd.s32 4294967295, %s1619_s5   ;;  %p1538_p0 = scmp.ge.s32.totalorder %s1619_s5, 1  ;;  %s1619_s5 = sphi %s1750_s5, %s34_s5  }
   0xb   : > { %p688_p1 = scmp.lt.s32.totalorder %s1619_s5, 3 }
   0xd   : > { %p689_p2 = pnand %p1538_p0, %p688_p1 }
   0xe   : > { %s2152_s6 = sld [smem:[#allocation6_spill]] (!%p689_p2)  ;;  %p764_p3 = scmp.lt.s32.totalorder (!%p689_p2), %s1534_s26, 1 }
   0xf   : > { %692 = sbr.rel (%p689_p2) target bundleno = 3352 (0xd18), region = 116  ;;  %s2153_s3 = sld [smem:[#allocation2_spill]] (!%p689_p2) }
  0x10   : > { %s2154_s1 = sld [smem:[#allocation7_spill]] (!%p689_p2)  ;;  %s2138_s28 = smov (!%p689_p2), 64  }
  0x11   : > { %s2140_s2 = smov (!%p689_p2), 96   ;;  %s2155_s4 = sld [smem:[#allocation4_spill]] (!%p689_p2) }
  0x12   : > { %s2139_s29 = smov (!%p689_p2), 32   ;;  %s2156_s30 = sld [smem:[#allocation8_spill]] (!%p689_p2) }
  0x13   : > { %s2163_s0 = smov (!%p689_p2), 64  }
  0x14   : > { %v801_v0 = vld [vmem:[%s2152_s6 + $0x60] sm:$0xff]  ;;  %v803_v1 = vld [vmem:[%s2152_s6 + $0x70] sm:$0xff]  ;;  %s2165_s26 = smov (!%p764_p3, %s1534_s26), 1  ;;  %vm820_vm0 = vcmask 523264   ;;  %vm865_vm1 = vcmask 261120   ;;  %v802_v24 = vld [vmem:[%s2152_s6 + $0x68] sm:$0xff] }
  0x15   : > { %v797_v2 = vld [vmem:[%s2152_s6 + $0x40] sm:$0xff]  ;;  %v812_v3 = vpack.c.bf16 %v803_v1, %v801_v0  ;;  %v799_v4 = vld [vmem:[%s2152_s6 + $0x50] sm:$0xff]  ;;  %s1779_s27 = sshll.u32 %s2165_s26, 1  ;;  %v804_v25 = vld [vmem:[%s2152_s6 + $0x78] sm:$0xff]  ;;  %vm885_vm2 = vcmask 9216   ;;  %vm903_vm3 = vcmask 1040384  }
  0x16   : > { %v810_v5 = vpack.c.bf16 %v799_v4, %v797_v2  ;;  %v793_v6 = vld [vmem:[%s2152_s6 + $0x20] sm:$0xff]  ;;  %v795_v7 = vld [vmem:[%s2152_s6 + $0x30] sm:$0xff]  ;;  %s767_s25 = scalar_lea.vmem %s2153_s3, %s1779_s27  ;;  %v798_v26 = vld [vmem:[%s2152_s6 + $0x48] sm:$0xff]  ;;  %v813_v27 = vpack.c.bf16 %v804_v25, %v802_v24  ;;  %vm899_vm4 = vcmask 15360   ;;  %s2157_s3 = sld [smem:[#allocation9_spill]]  ;;  %vm1023_vm5 = vcmask 517120  }
  0x17   : > { %828 = vmatpush.bf16.msra.mxu0 %v812_v3  ;;  %v808_v8 = vpack.c.bf16 %v795_v7, %v793_v6  ;;  %v789_v9 = vld [vmem:[%s2152_s6] sm:$0xff]  ;;  %v791_v10 = vld [vmem:[%s2152_s6 + $0x10] sm:$0xff]  ;;  %v800_v28 = vld [vmem:[%s2152_s6 + $0x58] sm:$0xff]  ;;  %s1540_s8 = sshll.u32 %s2165_s26, 3  ;;  %vm1158_vm10 = vcmask 58368   ;;  %vm1178_vm11 = vcmask 1043456  }
  0x18   : > { %v806_v11 = vpack.c.bf16 %v791_v10, %v789_v9  ;;  %v1791_v12 = vld [vmem:[%s767_s25] sm:$0x3]  ;;  %841 = vmatpush.bf16.msra.mxu1 %v813_v27  ;;  %v811_v29 = vpack.c.bf16 %v800_v28, %v798_v26  ;;  %v794_v30 = vld [vmem:[%s2152_s6 + $0x28] sm:$0xff]  ;;  %v796_v31 = vld [vmem:[%s2152_s6 + $0x38] sm:$0xff]  ;;  %vm1174_vm12 = vcmask 64512  }
  0x19   : > { %v805_v13 = vpack.c.bf16 %v1791_v12, %v1791_v12  ;;  %v814_v14 = vld [vmem:[%s2154_s1] sm:$0x3]  ;;  %v809_v32 = vpack.c.bf16 %v796_v31, %v794_v30  ;;  %v790_v33 = vld [vmem:[%s2152_s6 + $0x8] sm:$0xff]  ;;  %v792_v34 = vld [vmem:[%s2152_s6 + $0x18] sm:$0xff]  ;;  %s775_s1 = scalar_lea.vmem %s2155_s4, %s1779_s27 }
  0x1a   : > { %v816_v15 = vperm.slane %v814_v14, 0  ;;  %v807_v35 = vpack.c.bf16 %v792_v34, %v790_v33  ;;  %v787_v36 = vld [vmem:[%s775_s1] sm:$0x3]  ;;  %v817_v48 = vperm.slane %v814_v14, 1  ;;  %v852_v53 = vld [vmem:[%s2156_s30 + $0x10] sm:$0xff]  ;;  %v853_v54 = vld [vmem:[%s2156_s30 + $0x18] sm:$0xff] }
  0x1b   : > { %829 = vmatpush.bf16.msra.mxu0 %v810_v5  ;;  %v922_v55 = vpack.c.bf16 %v853_v54, %v852_v53  ;;  %v850_v62 = vld [vmem:[%s2156_s30] sm:$0xff]  ;;  %v851_v63 = vld [vmem:[%s2156_s30 + $0x8] sm:$0xff]  ;;  %s2159_s1 = smov 96  }
  0x1c   : > { %842 = vmatpush.bf16.msra.mxu1 %v811_v29  ;;  %v921_v0 = vpack.c.bf16 %v851_v63, %v850_v62  ;;  %v854_v25 = vld [vmem:[%s2156_s30 + $0x20] sm:$0xff]  ;;  %v855_v26 = vld [vmem:[%s2156_s30 + $0x28] sm:$0xff]  ;;  %v1067_v63 = vld [vmem:[%s2121_s10 + $0x30] sm:$0xff] }
  0x1d   : > { %v982_v27 = vpack.c.bf16 %v855_v26, %v854_v25  ;;  %v1575_v31 = vld [vmem:[%s2157_s3] ss:$0 sm:$0xff]  ;;  %s2160_s3 = sld [smem:[#allocation10_spill]] }
  0x1f   : > { %830 = vmatpush.bf16.msra.mxu0 %v808_v8 }
  0x20   : > { %843 = vmatpush.bf16.msra.mxu1 %v809_v32 }
  0x23   : > { %831 = vmatpush.bf16.msra.mxu0 %v806_v11 }
  0x24   : > { %844 = vmatpush.bf16.msra.mxu1 %v807_v35 }
  0x26   : > { %1544 = vmatmul.msk.bf16.vlgmr.msra.gmra.mxu0 %vm820_vm0, %v805_v13 }
  0x27   : > { %1545 = vmatmul.msk.bf16.vlgmr.msra.gmra.mxu1 %vm820_vm0, %v805_v13 }
  0x28   : > { %1009 = vmatpush.bf16.msrb.mxu1 %v922_v55 }
  0x2c   : > { %1010 = vmatpush.bf16.msrb.mxu1 %v921_v0  ;;  %v1068_v0 = vld [vmem:[%s2121_s10 + $0x38] sm:$0xff] }
  0xa3   : > { %v833_v16 = vpop.f32.mrf.mxu0 }
  0xa4   : > { %v834_v17 = vadd.f32 %v833_v16, %v816_v15  ;;  %v846_v44 = vpop.f32.mrf.mxu1 }
  0xa5   : > { %v847_v49 = vadd.f32 %v846_v44, %v817_v48 }
  0xa6   : > { %v861_v18 = vpack.c.bf16 %v834_v17, %v834_v17  ;;  %v859_v19 = vmul.f32 0.17677669, %v834_v17 }
  0xa7   : > { %v898_v50 = vpack.c.bf16 %v847_v49, %v847_v49  ;;  %v1094_v49 = vld [vmem:[%s2123_s12] sm:$0xff] }
  0xa8   : > { %863 = vrot.lane.b32.xlu0 %v861_v18, %s2138_s28  ;;  %v860_v20 = vpack.c.bf16 %v859_v19, %v859_v19  ;;  %v857_v19 = vld [vmem:[%s2156_s30 + $0x38] sm:$0xff] }
  0xa9   : > { %v905_v51 = vsel %vm903_vm3, %v898_v50, 0 }
  0xaa   : > { %924 = vrot.lane.b32.xlu2 %v860_v20, %s2140_s2  ;;  %914 = vmatpush.bf16.msra.mxu3 %v905_v51 }
  0xab   : > { %v835_v21 = vpop.f32.mrf.mxu0 }
  0xac   : > { %v848_v47 = vpop.f32.mrf.mxu1 }
 0x104   : > { %v925_v61 = vpop.permute.xlu2 %924 }
 0x11a   : > { %v864_v22 = vpop.permute.xlu0 %863 }
 0x11b   : > { %v870_v23 = vsel %vm865_vm1, %v864_v22, 0 }
 0x11c   : > { %879 = vmatpush.bf16.xpose.msrb.mxu0 %v870_v23 }
 0x123   : > { %1546 = vmatmul.msk.bf16.vlgmr.msrb.gmra.mxu0 %vm865_vm1, %v860_v20 }
 0x1a0   : > { %v881_v37 = vpop.f32.mrf.mxu0 }
 0x1a1   : > { %v882_v38 = vadd.f32 %v881_v37, %v787_v36 }
 0x1a3   : > { %v886_v39 = vsel %vm885_vm2, %v882_v38, -inf }
 0x1a4   : > { %887 = vmax.xlane.f32.xlu0 %v886_v39  ;;  %v1100_v39 = vld [vmem:[%s2123_s12 + $0x30] sm:$0xff] }
 0x1a8   : > { %v883_v40 = vpop.f32.mrf.mxu0 }
 0x1a9   : > { %v1101_v40 = vld [vmem:[%s2123_s12 + $0x38] sm:$0xff] }
 0x217   : > { %v888_v41 = vpop.xlane.xlu0 %887 }
 0x218   : > { %v889_v42 = vsub.f32 %v882_v38, %v888_v41  ;;  %v1624_v38 = vmov 64.0   ;;  %v1098_v41 = vld [vmem:[%s2123_s12 + $0x20] sm:$0xff] }
 0x21a   : > { %v890_v43 = vmul.f32 1.442695, %v889_v42  ;;  %v1099_v42 = vld [vmem:[%s2123_s12 + $0x28] sm:$0xff] }
 0x21b   : > { %v1105_v44 = vpack.c.bf16 %v1099_v42, %v1098_v41 }
 0x21c   : > { %1587 = vpow2.f32 %v890_v43 }
 0x222   : > { %v1588_v45 = vpop.eup %1587 }
 0x223   : > { %v892_v46 = vsel %vm885_vm2, %v1588_v45, 0.0 }
 0x224   : > { %893 = vadd.xlane.f32.xlu1 %v892_v46  ;;  %v1097_v46 = vld [vmem:[%s2123_s12 + $0x18] sm:$0xff] }
 0x23d   : > { %926 = vrot.lane.b32.xlu1 %v861_v18, %s2139_s29  ;;  %v856_v18 = vld [vmem:[%s2156_s30 + $0x30] sm:$0xff] }
 0x23e   : > { %v983_v20 = vpack.c.bf16 %v857_v19, %v856_v18 }
 0x240   : > { %993 = vmatpush.bf16.msra.mxu0 %v983_v20 }
 0x244   : > { %994 = vmatpush.bf16.msra.mxu0 %v982_v27  ;;  %v1576_v27 = vld [vmem:[%s2160_s3] ss:$0 sm:$0xff] }
 0x297   : > { %v894_v52 = vpop.xlane.xlu1 %893 }
 0x298   : > { %1589 = vrcp.f32 %v894_v52 }
 0x29e   : > { %v1590_v56 = vpop.eup %1589 }
 0x29f   : > { %v896_v57 = vmul.f32 %v1590_v56, %v1588_v45  ;;  %v1096_v45 = vld [vmem:[%s2123_s12 + $0x10] sm:$0xff] }
 0x2a0   : > { %v1104_v48 = vpack.c.bf16 %v1097_v46, %v1096_v45 }
 0x2a1   : > { %v897_v58 = vpack.c.bf16 %v896_v57, %v896_v57 }
 0x2a3   : > { %1547 = vmatmul.msk.bf16.vlgmr.msra.gmra.mxu3 %vm899_vm4, %v897_v58 }
 0x2af   : > { %v927_v59 = vpop.permute.xlu1 %926 }
 0x2b0   : > { %v932_v60 = vsel %vm865_vm1, %v927_v59, 0 }
 0x2b1   : > { %941 = vmatpush.bf16.xpose.msrb.mxu3 %v932_v60 }
 0x2b8   : > { %1548 = vmatmul.msk.bf16.vlgmr.msrb.gmra.mxu3 %vm865_vm1, %v925_v61 }
 0x326   : > { %v916_v1 = vpop.f32.mrf.mxu3 }
 0x327   : > { %v920_v2 = vpack.c.bf16 %v916_v1, %v916_v1  ;;  %v1073_v1 = vpack.c.bf16 %v1068_v0, %v1067_v63  ;;  %v1133_v0 = vld [vmem:[%s2125_s14 + $0x30] sm:$0xff] }
 0x329   : > { %1551 = vmatmul.msk.bf16.vlgmr.msrb.gmra.mxu1 %vm865_vm1, %v920_v2  ;;  %1085 = vmatpush.bf16.msra.mxu3 %v1073_v1  ;;  %v1065_v2 = vld [vmem:[%s2121_s10 + $0x20] sm:$0xff]  ;;  %v1134_v1 = vld [vmem:[%s2125_s14 + $0x38] sm:$0xff] }
 0x32e   : > { %v918_v3 = vpop.f32.mrf.mxu3 }
 0x32f   : > { %v1066_v3 = vld [vmem:[%s2121_s10 + $0x28] sm:$0xff] }
 0x33b   : > { %v943_v4 = vpop.f32.mrf.mxu3 }
 0x33c   : > { %v944_v5 = vadd.f32 %v943_v4, %v787_v36  ;;  %v1072_v4 = vpack.c.bf16 %v1066_v3, %v1065_v2  ;;  %v1257_v2 = vpack.c.bf16 %v1134_v1, %v1133_v0 }
 0x33e   : > { %v947_v6 = vsel %vm885_vm2, %v944_v5, -inf  ;;  %1086 = vmatpush.bf16.msra.mxu3 %v1072_v4 }
 0x33f   : > { %948 = vmax.xlane.f32.xlu2 %v947_v6  ;;  %v1064_v6 = vld [vmem:[%s2121_s10 + $0x18] sm:$0xff] }
 0x343   : > { %v945_v7 = vpop.f32.mrf.mxu3 }
 0x357   : > { %960 = vrot.lane.b32.xlu2 %v898_v50, %s2140_s2  ;;  %v1095_v50 = vld [vmem:[%s2123_s12 + $0x8] sm:$0xff]  ;;  %s2158_s2 = sld [smem:[#allocation3_spill]] }
 0x358   : > { %v1103_v52 = vpack.c.bf16 %v1095_v50, %v1094_v49 }
 0x35d   : > { %s771_s29 = scalar_lea.vmem %s2158_s2, %s1540_s8  ;;  %s2161_s8 = sld [smem:[#allocation5_spill]] }
 0x35e   : > { %v786_v53 = vld [vmem:[%s771_s29] sm:$0xff] }
 0x35f   : > { %v1102_v55 = vpack.c.bf16 %v786_v53, %v786_v53 }
 0x363   : > { %s779_s4 = scalar_lea.vmem %s2161_s8, %s1779_s27  ;;  %s783_s8 = scalar_lea.vmem %s2135_s24, %s1779_s27 }
 0x364   : > { %v788_v42 = vld [vmem:[%s779_s4] sm:$0x3] }
 0x3a6   : > { %v1012_v8 = vpop.f32.mrf.mxu1 }
 0x3ae   : > { %v1014_v9 = vpop.f32.mrf.mxu1 }
 0x3af   : > { %v1062_v9 = vld [vmem:[%s2121_s10 + $0x8] sm:$0xff] }
 0x3b2   : > { %v949_v10 = vpop.xlane.xlu2 %948 }
 0x3b3   : > { %v950_v11 = vsub.f32 %v944_v5, %v949_v10  ;;  %v1063_v5 = vld [vmem:[%s2121_s10 + $0x10] sm:$0xff] }
 0x3b4   : > { %v1071_v7 = vpack.c.bf16 %v1064_v6, %v1063_v5 }
 0x3b5   : > { %v951_v13 = vmul.f32 1.442695, %v950_v11  ;;  %v1578_v11 = vld [vmem:[%s2124_s13] ss:$0 sm:$0xff] }
 0x3b6   : > { %1087 = vmatpush.bf16.msra.mxu3 %v1071_v7 }
 0x3b7   : > { %1591 = vpow2.f32 %v951_v13 }
 0x3ba   : > { %v961_v14 = vpop.permute.xlu2 %960 }
 0x3bb   : > { %v966_v15 = vsel %vm903_vm3, %v961_v14, 0 }
 0x3bc   : > { %975 = vmatpush.bf16.msra.mxu2 %v966_v15 }
 0x3bd   : > { %v1592_v16 = vpop.eup %1591 }
 0x3be   : > { %v953_v17 = vsel %vm885_vm2, %v1592_v16, 0.0 }
 0x3bf   : > { %954 = vadd.xlane.f32.xlu1 %v953_v17 }
 0x432   : > { %v955_v21 = vpop.xlane.xlu1 %954 }
 0x433   : > { %1593 = vrcp.f32 %v955_v21 }
 0x434   : > { %1595 = vrcp.f32 %v1624_v38 }
 0x439   : > { %v1594_v22 = vpop.eup %1593 }
 0x43a   : > { %v957_v23 = vmul.f32 %v1594_v22, %v1592_v16  ;;  %v1596_v43 = vpop.eup %1595 }
 0x43b   : > { %v1028_v47 = vmul.f32 64.0, %v1596_v43  ;;  %vm1032_vm6 = vweird.f32 %v1596_v43 }
 0x43c   : > { %v958_v24 = vpack.c.bf16 %v957_v23, %v957_v23 }
 0x43d   : > { %v1029_v51 = vsub.f32 1.0, %v1028_v47 }
 0x43e   : > { %1549 = vmatmul.msk.bf16.vlgmr.msra.gmra.mxu2 %vm899_vm4, %v958_v24 }
 0x43f   : > { %v1030_v54 = vmul.f32 %v1596_v43, %v1029_v51 }
 0x441   : > { %v1031_v56 = vadd.f32 %v1596_v43, %v1030_v54 }
 0x443   : > { %v1904_v57 = vsel %vm1032_vm6, %v1596_v43, %v1031_v56 }
 0x4c1   : > { %v977_v28 = vpop.f32.mrf.mxu2 }
 0x4c2   : > { %v981_v29 = vpack.c.bf16 %v977_v28, %v977_v28 }
 0x4c4   : > { %1550 = vmatmul.msk.bf16.vlgmr.msra.gmra.mxu0 %vm865_vm1, %v981_v29  ;;  %v1577_v29 = vld [vmem:[%s2120_s9] ss:$0 sm:$0xff] }
 0x4c9   : > { %v979_v30 = vpop.f32.mrf.mxu2 }
 0x541   : > { %v996_v32 = vpop.f32.mrf.mxu0 }
 0x542   : > { %v1013_v33 = vadd.f32 %v1012_v8, %v996_v32  ;;  %v1061_v8 = vld [vmem:[%s2121_s10] sm:$0xff] }
 0x543   : > { %v1070_v10 = vpack.c.bf16 %v1062_v9, %v1061_v8 }
 0x544   : > { %v1019_v34 = vadd.f32 %v1575_v31, %v1013_v33 }
 0x545   : > { %1088 = vmatpush.bf16.msra.mxu3 %v1070_v10 }
 0x546   : > { %v1020_v35 = vadd.f32 %v1019_v34, %v1791_v12  ;;  %v1106_v12 = vpack.c.bf16 %v1101_v40, %v1100_v39 }
 0x548   : > { %v1024_v36 = vsel %vm1023_vm5, %v1020_v35, 0.0  ;;  %1118 = vmatpush.bf16.msrb.mxu2 %v1106_v12 }
 0x549   : > { %1025 = vadd.xlane.f32.xlu0 %v1024_v36  ;;  %v998_v37 = vpop.f32.mrf.mxu0  ;;  %v1579_v36 = vld [vmem:[%s2122_s11] ss:$0 sm:$0xff] }
 0x54c   : > { %1119 = vmatpush.bf16.msrb.mxu2 %v1105_v44 }
 0x550   : > { %1120 = vmatpush.bf16.msrb.mxu2 %v1104_v48 }
 0x554   : > { %1121 = vmatpush.bf16.msrb.mxu2 %v1103_v52 }
 0x557   : > { %1553 = vmatmul.msk.bf16.vlgmr.msrb.gmra.mxu2 %vm820_vm0, %v1102_v55 }
 0x5bc   : > { %v1026_v58 = vpop.xlane.xlu0 %1025 }
 0x5bd   : > { %v1034_v59 = vmul.f32 %v1904_v57, %v1026_v58 }
 0x5bf   : > { %v1035_v60 = vsub.f32 %v1020_v35, %v1034_v59 }
 0x5c1   : > { %v1036_v61 = vmul.f32 %v1035_v60, %v1035_v60 }
 0x5c3   : > { %v1037_v62 = vsel %vm1023_vm5, %v1036_v61, 0.0 }
 0x5c4   : > { %1038 = vadd.xlane.f32.xlu0 %v1037_v62 }
 0x5da   : > { %v1123_v15 = vpop.f32.mrf.mxu2 }
 0x5db   : > { %v1124_v17 = vadd.f32 %v1578_v11, %v1123_v15  ;;  %v1132_v15 = vld [vmem:[%s2125_s14 + $0x28] sm:$0xff] }
 0x5dd   : > { %v1936_v18 = vpack.c.bf16 %v1124_v17, %v1124_v17  ;;  %v1129_v17 = vld [vmem:[%s2125_s14 + $0x10] sm:$0xff] }
 0x5df   : > { %1201 = vrot.lane.b32.xlu0 %v1936_v18, %s2159_s1  ;;  %v1143_v19 = vsel %vm865_vm1, %v1936_v18, 0 }
 0x5e0   : > { %1152 = vmatpush.bf16.xpose.msrb.mxu0 %v1143_v19 }
 0x5e2   : > { %v1125_v20 = vpop.f32.mrf.mxu2 }
 0x5e3   : > { %v1127_v20 = vld [vmem:[%s2125_s14] sm:$0xff] }
 0x5e8   : > { %1267 = vmatpush.bf16.msra.mxu0 %v1257_v2 }
 0x637   : > { %v1039_v13 = vpop.xlane.xlu0 %1038 }
 0x638   : > { %v1040_v14 = vmul.f32 %v1039_v13, %v1904_v57 }
 0x63a   : > { %v1041_v16 = vadd.f32 1e-05, %v1040_v14  ;;  %v1131_v14 = vld [vmem:[%s2125_s14 + $0x20] sm:$0xff] }
 0x63c   : > { %1597 = vrsqrt.f32 %v1041_v16  ;;  %vm1048_vm8 = vweird.f32 %v1041_v16 }
 0x642   : > { %v1598_v21 = vpop.eup %1597 }
 0x643   : > { %v1043_v22 = vmul.f32 %v1598_v21, %v1041_v16  ;;  %vm1049_vm7 = vweird.f32 %v1598_v21  ;;  %v1256_v16 = vpack.c.bf16 %v1132_v15, %v1131_v14  ;;  %v1379_v14 = vld [vmem:[%s2131_s20 + $0x50] sm:$0xff]  ;;  %v1380_v15 = vld [vmem:[%s2131_s20 + $0x58] sm:$0xff] }
 0x644   : > { %vm1050_vm9 = vmor %vm1048_vm8, %vm1049_vm7 }
 0x645   : > { %v1044_v23 = vmul.f32 %v1598_v21, %v1043_v22  ;;  %1268 = vmatpush.bf16.msra.mxu0 %v1256_v16  ;;  %v1391_v16 = vpack.c.bf16 %v1380_v15, %v1379_v14 }
 0x647   : > { %v1045_v24 = vmul.f32 0.5, %v1044_v23 }
 0x649   : > { %v1046_v25 = vsub.f32 1.5, %v1045_v24 }
 0x64b   : > { %v1047_v26 = vmul.f32 %v1598_v21, %v1046_v25 }
 0x64d   : > { %v1051_v28 = vsel %vm1050_vm9, %v1598_v21, %v1047_v26  ;;  %v1128_v21 = vld [vmem:[%s2125_s14 + $0x8] sm:$0xff] }
 0x64e   : > { %v1052_v30 = vmul.f32 %v1051_v28, %v1035_v60  ;;  %v1196_v22 = vpack.c.bf16 %v1128_v21, %v1127_v20  ;;  %v1375_v20 = vld [vmem:[%s2131_s20 + $0x30] sm:$0xff]  ;;  %v1376_v21 = vld [vmem:[%s2131_s20 + $0x38] sm:$0xff] }
 0x650   : > { %v1056_v31 = vmul.f32 %v1576_v27, %v1052_v30 }
 0x651   : > { %v1202_v34 = vpop.permute.xlu0 %1201 }
 0x652   : > { %v1948_v32 = vadd.f32 %v1577_v29, %v1056_v31  ;;  %v1207_v35 = vsel %vm865_vm1, %v1202_v34, 0  ;;  %v1580_v31 = vld [vmem:[%s2126_s15] ss:$0 sm:$0xff] }
 0x653   : > { %1216 = vmatpush.bf16.xpose.msrb.mxu3 %v1207_v35 }
 0x654   : > { %v1069_v33 = vpack.c.bf16 %v1948_v32, %v1948_v32 }
 0x656   : > { %1552 = vmatmul.msk.bf16.vlgmr.msra.gmra.mxu3 %vm820_vm0, %v1069_v33 }
 0x6d9   : > { %v1090_v37 = vpop.f32.mrf.mxu3 }
 0x6da   : > { %v1091_v38 = vadd.f32 %v1579_v36, %v1090_v37 }
 0x6dc   : > { %v1136_v39 = vmul.f32 0.17677669, %v1091_v38 }
 0x6de   : > { %v1137_v40 = vpack.c.bf16 %v1136_v39, %v1136_v39 }
 0x6e0   : > { %1199 = vrot.lane.b32.xlu2 %v1137_v40, %s2159_s1  ;;  %1554 = vmatmul.msk.bf16.vlgmr.msrb.gmra.mxu0 %vm865_vm1, %v1137_v40  ;;  %s2162_s1 = smov 32  }
 0x6e1   : > { %v1092_v41 = vpop.f32.mrf.mxu3 }
 0x73a   : > { %v1200_v12 = vpop.permute.xlu2 %1199 }
 0x73b   : > { %1556 = vmatmul.msk.bf16.vlgmr.msrb.gmra.mxu3 %vm865_vm1, %v1200_v12 }
 0x75d   : > { %v1154_v43 = vpop.f32.mrf.mxu0 }
 0x75e   : > { %v1155_v44 = vadd.f32 %v1154_v43, %v788_v42  ;;  %v1333_v43 = vld [vmem:[%s2129_s18 + $0x30] sm:$0xff] }
 0x760   : > { %v1159_v45 = vsel %vm1158_vm10, %v1155_v44, -inf }
 0x761   : > { %1160 = vmax.xlane.f32.xlu2 %v1159_v45  ;;  %v1331_v45 = vld [vmem:[%s2129_s18 + $0x20] sm:$0xff] }
 0x765   : > { %v1156_v46 = vpop.f32.mrf.mxu0 }
 0x766   : > { %v1332_v46 = vld [vmem:[%s2129_s18 + $0x28] sm:$0xff] }
 0x7be   : > { %v1218_v47 = vpop.f32.mrf.mxu3 }
 0x7bf   : > { %v1219_v48 = vadd.f32 %v1218_v47, %v788_v42  ;;  %v1338_v47 = vpack.c.bf16 %v1332_v46, %v1331_v45  ;;  %v1584_v45 = vld [vmem:[%s2132_s21] ss:$0 sm:$0xff] }
 0x7c1   : > { %v1222_v49 = vsel %vm1158_vm10, %v1219_v48, -inf }
 0x7c2   : > { %1223 = vmax.xlane.f32.xlu1 %v1222_v49  ;;  %v1330_v49 = vld [vmem:[%s2129_s18 + $0x18] sm:$0xff] }
 0x7c6   : > { %v1220_v50 = vpop.f32.mrf.mxu3 }
 0x7d4   : > { %v1161_v51 = vpop.xlane.xlu2 %1160 }
 0x7d5   : > { %v1162_v52 = vsub.f32 %v1155_v44, %v1161_v51  ;;  %v1327_v51 = vld [vmem:[%s2129_s18] sm:$0xff] }
 0x7d7   : > { %v1163_v53 = vmul.f32 1.442695, %v1162_v52  ;;  %v1328_v52 = vld [vmem:[%s2129_s18 + $0x8] sm:$0xff] }
 0x7d9   : > { %1599 = vpow2.f32 %v1163_v53  ;;  %v1336_v53 = vpack.c.bf16 %v1328_v52, %v1327_v51 }
 0x7db   : > { %1234 = vrot.lane.b32.xlu1 %v1936_v18, %s2162_s1 }
 0x7df   : > { %v1600_v54 = vpop.eup %1599 }
 0x7e0   : > { %v1165_v55 = vsel %vm1158_vm10, %v1600_v54, 0.0 }
 0x7e1   : > { %1166 = vadd.xlane.f32.xlu0 %v1165_v55  ;;  %v1384_v55 = vld [vmem:[%s2131_s20 + $0x78] sm:$0xff] }
 0x835   : > { %v1224_v56 = vpop.xlane.xlu1 %1223 }
 0x836   : > { %v1225_v58 = vsub.f32 %v1219_v48, %v1224_v56  ;;  %v1329_v48 = vld [vmem:[%s2129_s18 + $0x10] sm:$0xff] }
 0x837   : > { %v1337_v50 = vpack.c.bf16 %v1330_v49, %v1329_v48 }
 0x838   : > { %v1226_v59 = vmul.f32 1.442695, %v1225_v58 }
 0x83a   : > { %1601 = vpow2.f32 %v1226_v59 }
 0x840   : > { %v1602_v60 = vpop.eup %1601 }
 0x841   : > { %v1228_v61 = vsel %vm1158_vm10, %v1602_v60, 0.0 }
 0x842   : > { %1229 = vadd.xlane.f32.xlu1 %v1228_v61 }
 0x84d   : > { %v1235_v62 = vpop.permute.xlu1 %1234 }
 0x84e   : > { %v1240_v63 = vsel %vm1178_vm11, %v1235_v62, 0 }
 0x84f   : > { %1249 = vmatpush.bf16.msra.mxu2 %v1240_v63 }
 0x854   : > { %v1167_v7 = vpop.xlane.xlu0 %1166 }
 0x85b   : > { %1172 = vrot.lane.b32.xlu1 %v1936_v18, %s2163_s0  ;;  %v1130_v18 = vld [vmem:[%s2125_s14 + $0x18] sm:$0xff] }
 0x85c   : > { %v1197_v19 = vpack.c.bf16 %v1130_v18, %v1129_v17  ;;  %v1377_v17 = vld [vmem:[%s2131_s20 + $0x40] sm:$0xff]  ;;  %v1378_v18 = vld [vmem:[%s2131_s20 + $0x48] sm:$0xff] }
 0x8b5   : > { %v1230_v3 = vpop.xlane.xlu1 %1229 }
 0x8b6   : > { %1603 = vrcp.f32 %v1230_v3  ;;  %v1581_v3 = vld [vmem:[%s2127_s16] ss:$0 sm:$0xff] }
 0x8b7   : > { %1605 = vrcp.f32 %v1167_v7 }
 0x8bc   : > { %v1604_v4 = vpop.eup %1603 }
 0x8bd   : > { %v1232_v5 = vmul.f32 %v1604_v4, %v1602_v60  ;;  %v1606_v8 = vpop.eup %1605 }
 0x8be   : > { %v1169_v9 = vmul.f32 %v1606_v8, %v1600_v54  ;;  %v1383_v54 = vld [vmem:[%s2131_s20 + $0x70] sm:$0xff] }
 0x8bf   : > { %v1233_v6 = vpack.c.bf16 %v1232_v5, %v1232_v5  ;;  %v1393_v58 = vpack.c.bf16 %v1384_v55, %v1383_v54  ;;  %v1582_v5 = vld [vmem:[%s2128_s17] ss:$0 sm:$0xff] }
 0x8c0   : > { %v1170_v13 = vpack.c.bf16 %v1169_v9, %v1169_v9 }
 0x8c1   : > { %1557 = vmatmul.msk.bf16.vlgmr.msra.gmra.mxu2 %vm1174_vm12, %v1233_v6 }
 0x8c2   : > { %1398 = vmatpush.bf16.msrb.mxu2 %v1393_v58 }
 0x8cd   : > { %v1173_v10 = vpop.permute.xlu1 %1172 }
 0x8ce   : > { %v1180_v11 = vsel %vm1178_vm11, %v1173_v10, 0  ;;  %v1381_v10 = vld [vmem:[%s2131_s20 + $0x60] sm:$0xff] }
 0x8cf   : > { %1189 = vmatpush.bf16.msra.mxu1 %v1180_v11  ;;  %v1382_v11 = vld [vmem:[%s2131_s20 + $0x68] sm:$0xff] }
 0x8d2   : > { %1555 = vmatmul.msk.bf16.vlgmr.msra.gmra.mxu1 %vm1174_vm12, %v1170_v13  ;;  %v1392_v13 = vpack.c.bf16 %v1382_v11, %v1381_v10 }
 0x8d3   : > { %1283 = vmatpush.bf16.msrb.mxu1 %v1197_v19  ;;  %v1390_v19 = vpack.c.bf16 %v1378_v18, %v1377_v17 }
 0x8d4   : > { %1399 = vmatpush.bf16.msrb.mxu2 %v1392_v13 }
 0x8d7   : > { %1284 = vmatpush.bf16.msrb.mxu1 %v1196_v22  ;;  %v1389_v22 = vpack.c.bf16 %v1376_v21, %v1375_v20 }
 0x8d8   : > { %1400 = vmatpush.bf16.msrb.mxu2 %v1391_v16 }
 0x8dc   : > { %1401 = vmatpush.bf16.msrb.mxu2 %v1390_v19 }
 0x8e0   : > { %1402 = vmatpush.bf16.msrb.mxu2 %v1389_v22 }
 0x944   : > { %v1251_v23 = vpop.f32.mrf.mxu2 }
 0x945   : > { %v1255_v24 = vpack.c.bf16 %v1251_v23, %v1251_v23  ;;  %v1373_v23 = vld [vmem:[%s2131_s20 + $0x20] sm:$0xff] }
 0x947   : > { %1558 = vmatmul.msk.bf16.vlgmr.msra.gmra.mxu0 %vm865_vm1, %v1255_v24  ;;  %v1374_v24 = vld [vmem:[%s2131_s20 + $0x28] sm:$0xff] }
 0x94c   : > { %v1253_v25 = vpop.f32.mrf.mxu2 }
 0x94d   : > { %v1388_v25 = vpack.c.bf16 %v1374_v24, %v1373_v23 }
 0x94f   : > { %v1191_v26 = vpop.f32.mrf.mxu1  ;;  %1403 = vmatpush.bf16.msrb.mxu2 %v1388_v25 }
 0x950   : > { %v1195_v27 = vpack.c.bf16 %v1191_v26, %v1191_v26  ;;  %v1371_v26 = vld [vmem:[%s2131_s20 + $0x10] sm:$0xff] }
 0x952   : > { %1559 = vmatmul.msk.bf16.vlgmr.msrb.gmra.mxu1 %vm865_vm1, %v1195_v27  ;;  %v1372_v27 = vld [vmem:[%s2131_s20 + $0x18] sm:$0xff] }
 0x957   : > { %v1193_v28 = vpop.f32.mrf.mxu1 }
 0x958   : > { %v1387_v28 = vpack.c.bf16 %v1372_v27, %v1371_v26 }
 0x95a   : > { %1404 = vmatpush.bf16.msrb.mxu2 %v1387_v28 }
 0x9c4   : > { %v1270_v29 = vpop.f32.mrf.mxu0 }
 0x9cc   : > { %v1272_v30 = vpop.f32.mrf.mxu0 }
 0x9cd   : > { %v1370_v30 = vld [vmem:[%s2131_s20 + $0x8] sm:$0xff] }
 0x9cf   : > { %v1286_v33 = vpop.f32.mrf.mxu1 }
 0x9d0   : > { %v1287_v34 = vadd.f32 %v1286_v33, %v1270_v29  ;;  %v1369_v29 = vld [vmem:[%s2131_s20] sm:$0xff] }
 0x9d1   : > { %v1583_v33 = vld [vmem:[%s2130_s19] ss:$0 sm:$0xff] }
 0x9d2   : > { %v1293_v35 = vadd.f32 %v1580_v31, %v1287_v34  ;;  %v1386_v31 = vpack.c.bf16 %v1370_v30, %v1369_v29 }
 0x9d4   : > { %v1294_v36 = vadd.f32 %v1293_v35, %v1948_v32  ;;  %v1334_v32 = vld [vmem:[%s2129_s18 + $0x38] sm:$0xff]  ;;  %1405 = vmatpush.bf16.msrb.mxu2 %v1386_v31 }
 0x9d5   : > { %v1339_v44 = vpack.c.bf16 %v1334_v32, %v1333_v43 }
 0x9d6   : > { %v1297_v37 = vsel %vm1023_vm5, %v1294_v36, 0.0 }
 0x9d7   : > { %v1288_v38 = vpop.f32.mrf.mxu1  ;;  %1298 = vadd.xlane.f32.xlu2 %v1297_v37  ;;  %1351 = vmatpush.bf16.msra.mxu3 %v1339_v44 }
 0x9db   : > { %1352 = vmatpush.bf16.msra.mxu3 %v1338_v47 }
 0x9df   : > { %1353 = vmatpush.bf16.msra.mxu3 %v1337_v50 }
 0x9e3   : > { %1354 = vmatpush.bf16.msra.mxu3 %v1336_v53 }
 0xa4a   : > { %v1299_v39 = vpop.xlane.xlu2 %1298 }
 0xa4b   : > { %v1300_v40 = vmul.f32 %v1299_v39, %v1904_v57 }
 0xa4d   : > { %v1301_v41 = vsub.f32 %v1294_v36, %v1300_v40 }
 0xa4f   : > { %v1302_v12 = vmul.f32 %v1301_v41, %v1301_v41 }
 0xa51   : > { %v1303_v42 = vsel %vm1023_vm5, %v1302_v12, 0.0 }
 0xa52   : > { %1304 = vadd.xlane.f32.xlu1 %v1303_v42 }
 0xac5   : > { %v1305_v56 = vpop.xlane.xlu1 %1304 }
 0xac6   : > { %v1306_v59 = vmul.f32 %v1305_v56, %v1904_v57 }
 0xac8   : > { %v1307_v60 = vadd.f32 1e-05, %v1306_v59 }
 0xaca   : > { %1607 = vrsqrt.f32 %v1307_v60  ;;  %vm1314_vm14 = vweird.f32 %v1307_v60 }
 0xad0   : > { %v1608_v61 = vpop.eup %1607 }
 0xad1   : > { %v1309_v62 = vmul.f32 %v1608_v61, %v1307_v60  ;;  %vm1315_vm13 = vweird.f32 %v1608_v61 }
 0xad2   : > { %vm1316_vm15 = vmor %vm1314_vm14, %vm1315_vm13 }
 0xad3   : > { %v1310_v63 = vmul.f32 %v1608_v61, %v1309_v62 }
 0xad5   : > { %v1311_v0 = vmul.f32 0.5, %v1310_v63 }
 0xad7   : > { %v1312_v1 = vsub.f32 1.5, %v1311_v0 }
 0xad9   : > { %v1313_v2 = vmul.f32 %v1608_v61, %v1312_v1 }
 0xadb   : > { %v1317_v4 = vsel %vm1316_vm15, %v1608_v61, %v1313_v2  ;;  %v1585_v2 = vld [vmem:[%s2133_s22] ss:$0 sm:$0xff] }
 0xadc   : > { %v1318_v6 = vmul.f32 %v1317_v4, %v1301_v41 }
 0xade   : > { %v1322_v7 = vmul.f32 %v1581_v3, %v1318_v6 }
 0xae0   : > { %v1326_v8 = vadd.f32 %v1582_v5, %v1322_v7 }
 0xae2   : > { %v1335_v9 = vpack.c.bf16 %v1326_v8, %v1326_v8 }
 0xae4   : > { %1560 = vmatmul.msk.bf16.vlgmr.msra.gmra.mxu3 %vm820_vm0, %v1335_v9 }
 0xb67   : > { %v1356_v34 = vpop.f32.mrf.mxu3 }
 0xb68   : > { %v1357_v35 = vadd.f32 %v1583_v33, %v1356_v34 }
 0xb6a   : > { %v1360_v36 = vmul.f32 %v1357_v35, %v1357_v35 }
 0xb6c   : > { %v1361_v37 = vmul.f32 %v1360_v36, %v1357_v35 }
 0xb6e   : > { %v1362_v38 = vmul.f32 0.044715, %v1361_v37 }
 0xb6f   : > { %v1358_v39 = vpop.f32.mrf.mxu3 }
 0xb70   : > { %v1363_v40 = vadd.f32 %v1362_v38, %v1357_v35 }
 0xb72   : > { %v1364_v41 = vmul.f32 0.7978846, %v1363_v40 }
 0xb74   : > { %1609 = vtanh.f32 %v1364_v41 }
 0xb7a   : > { %v1610_v12 = vpop.eup %1609 }
 0xb7b   : > { %v1366_v42 = vadd.f32 1.0, %v1610_v12 }
 0xb7d   : > { %v1367_v43 = vmul.f32 0.5, %v1366_v42 }
 0xb7f   : > { %v1368_v32 = vmul.f32 %v1367_v43, %v1357_v35 }
 0xb81   : > { %v1385_v44 = vpack.c.bf16 %v1368_v32, %v1368_v32 }
 0xb83   : > { %1406 = vmatmul.bf16.vlgmr.msrb.gmra.mxu2 %v1385_v44 }
 0xc06   : > { %v1407_v46 = vpop.f32.mrf.mxu2 }
 0xc07   : > { %v1408_v47 = vadd.f32 %v1584_v45, %v1407_v46 }
 0xc09   : > { %v1411_v48 = vadd.f32 %v1408_v47, %v1326_v8 }
 0xc0b   : > { %v1414_v49 = vsel %vm1023_vm5, %v1411_v48, 0.0 }
 0xc0c   : > { %1415 = vadd.xlane.f32.xlu0 %v1414_v49 }
 0xc0e   : > { %v1409_v50 = vpop.f32.mrf.mxu2 }
 0xc7f   : > { %v1416_v51 = vpop.xlane.xlu0 %1415 }
 0xc80   : > { %v1417_v52 = vmul.f32 %v1416_v51, %v1904_v57 }
 0xc82   : > { %v1418_v53 = vsub.f32 %v1411_v48, %v1417_v52 }
 0xc84   : > { %v1419_v54 = vmul.f32 %v1418_v53, %v1418_v53 }
 0xc86   : > { %v1420_v55 = vsel %vm1023_vm5, %v1419_v54, 0.0 }
 0xc87   : > { %1421 = vadd.xlane.f32.xlu2 %v1420_v55 }
 0xcfa   : > { %v1422_v56 = vpop.xlane.xlu2 %1421 }
 0xcfb   : > { %v1423_v58 = vmul.f32 %v1422_v56, %v1904_v57  ;;  %v1586_v57 = vld [vmem:[%s2134_s23] ss:$0 sm:$0xff] }
 0xcfd   : > { %v1424_v59 = vadd.f32 1e-05, %v1423_v58 }
 0xcff   : > { %1611 = vrsqrt.f32 %v1424_v59  ;;  %vm1431_vm1 = vweird.f32 %v1424_v59 }
 0xd05   : > { %v1612_v60 = vpop.eup %1611 }
 0xd06   : > { %v1426_v61 = vmul.f32 %v1612_v60, %v1424_v59  ;;  %vm1432_vm0 = vweird.f32 %v1612_v60 }
 0xd07   : > { %vm1433_vm2 = vmor %vm1431_vm1, %vm1432_vm0 }
 0xd08   : > { %v1427_v62 = vmul.f32 %v1612_v60, %v1426_v61 }
 0xd0a   : > { %v1428_v63 = vmul.f32 0.5, %v1427_v62 }
 0xd0c   : > { %v1429_v0 = vsub.f32 1.5, %v1428_v63 }
 0xd0e   : > { %v1430_v1 = vmul.f32 %v1612_v60, %v1429_v0 }
 0xd10   : > { %v1434_v3 = vsel %vm1433_vm2, %v1612_v60, %v1430_v1 }
 0xd11   : > { %v1435_v4 = vmul.f32 %v1434_v3, %v1418_v53 }
 0xd13   : > { %v1439_v5 = vmul.f32 %v1585_v2, %v1435_v4 }
 0xd15   : > { %v1443_v6 = vadd.f32 %v1586_v57, %v1439_v5 }
 0xd17   : > { %1444 = vst.msk [vmem:[%s783_s8] sm:$0x3] %vm1023_vm5, %v1443_v6 }
 0xd18 PF: > { %s34_s5 = sadd.s32 1, %s1619_s5  }
 0xd19   : > { %p31_p4 = scmp.ge.s32.totalorder %s34_s5, 4  }
 0xd1b   :  { %33 = sbr.rel (!%p31_p4) target bundleno = 10 (0xa), region = 155 }

</bundles_post_ra>
